<compile_context>
chip_gen: v7x
topology: tpu7x:2x2x1
jax: 0.10.0
libtpu: 0.0.40
codegen_flags: <defaults>
</compile_context>

<pallas_src>
import jax
import jax.numpy as jnp
from jax.experimental import pallas as pl
from jax.experimental.pallas import tpu as pltpu


# ----------------------------------------------------------------------------
# Config / static shapes
# ----------------------------------------------------------------------------
IMG = 32                 # small image -> 2x2 grid of 16x16 patches
PATCH = 16
IN_CHANS = 3
N_PATCH = (IMG // PATCH) ** 2            # 4
T_REAL = N_PATCH + 1                     # 5 tokens (cls + patches)
T_PAD = 8                                # sublane-aligned token count
CPP = IN_CHANS * PATCH * PATCH           # 768 = patch vector length

D_REAL = 64                              # real embed dim
N_HEADS = 2
DH_REAL = D_REAL // N_HEADS              # 32
DH_PAD = 64                              # padded per-head dim
D_PAD = N_HEADS * DH_PAD                 # 128 = lane-aligned embed dim
MLP = 4 * D_REAL                         # 256 (already lane aligned)
DEPTH = 2

BC = 1000                                # timm backbone head width
BC_PAD = 1024                            # lane-padded backbone width
OUT_PAD = 128                            # packed branch-output slab width
NUM_CLASSES = 3
DROPOUT_NUM = 8
DROPOUT_P = 0.7

LN_EPS = 1e-6                            # timm ViT LayerNorm eps
MXU_DTYPE = jnp.bfloat16                 # matmul operand dtype (f32 accum)
BATCH = 2


def _mm(a, w):
    """bf16-operand MXU matmul with f32 accumulation."""
    return jnp.dot(a.astype(MXU_DTYPE), w.astype(MXU_DTYPE),
                   preferred_element_type=jnp.float32)


# ----------------------------------------------------------------------------
# The single fused kernel (one grid step == one batch element)
# ----------------------------------------------------------------------------
def _deit_kernel(patches_ref, add_ref, patch_w_ref,
                 ln1_g_ref, ln1_b_ref, qkv_w_ref, qkv_b_ref,
                 proj_w_ref, proj_b_ref, ln2_g_ref, ln2_b_ref,
                 fc1_w_ref, fc1_b_ref, fc2_w_ref, fc2_b_ref,
                 norm_g_ref, norm_b_ref, head_w_ref, head_b_ref,
                 masks_ref, branch_w_ref, branch_b_ref,
                 o_ref):
    # ---- patch embed + cls token + positional embedding -------------------
    # patches row 0 is zero (cls slot), rows T_REAL.. are padding.
    # add_ref row 0 = cls + pos[0]; rows 1..T_REAL-1 = pos[i] + conv bias.
    x = _mm(patches_ref[...], patch_w_ref[...]) + add_ref[...]      # [8,128] f32

    # real-feature lane mask (lanes >= D_REAL are zero padding everywhere)
    lane_valid = (jax.lax.broadcasted_iota(jnp.int32, (1, D_PAD), 1)
                  < D_REAL).astype(jnp.float32)
    # valid key positions for the padded sequence
    key_valid = jax.lax.broadcasted_iota(jnp.int32, (T_PAD, T_PAD), 1) < T_REAL

    def ln(v, g, b):
        # LayerNorm over the D_REAL real lanes only (pad lanes are exact zeros)
        mean = jnp.sum(v, axis=-1, keepdims=True) * (1.0 / D_REAL)
        diff = (v - mean) * lane_valid
        var = jnp.sum(diff * diff, axis=-1, keepdims=True) * (1.0 / D_REAL)
        return diff * jax.lax.rsqrt(var + LN_EPS) * g + b

    scale = DH_REAL ** -0.5
    for l in range(DEPTH):                               # static unroll
        # ---- LN1 -> fused QKV (bf16 value, no VMEM scratch) ----
        h = ln(x, ln1_g_ref[l], ln1_b_ref[l])
        qkv = (_mm(h, qkv_w_ref[l]) + qkv_b_ref[l]).astype(MXU_DTYPE)  # [8,384]

        # ---- per-head attention; head outputs stay in vregs ----
        heads_out = []
        for hh in range(N_HEADS):                        # static unroll
            q = qkv[:, hh * DH_PAD:(hh + 1) * DH_PAD]
            k = qkv[:, D_PAD + hh * DH_PAD:D_PAD + (hh + 1) * DH_PAD]
            v = qkv[:, 2 * D_PAD + hh * DH_PAD:2 * D_PAD + (hh + 1) * DH_PAD]
            # q @ k^T via contraction on the feature dim (no explicit transpose)
            s = jax.lax.dot_general(q, k, (((1,), (1,)), ((), ())),
                                    preferred_element_type=jnp.float32) * scale
            s = jnp.where(key_valid, s, -1e30)           # mask padded keys
            s = s - jnp.max(s, axis=-1, keepdims=True)
            p = jnp.exp(s)
            p = p / jnp.sum(p, axis=-1, keepdims=True)
            heads_out.append(jnp.dot(p.astype(MXU_DTYPE), v,
                                     preferred_element_type=jnp.float32))
        attn = jnp.concatenate(heads_out, axis=-1)       # [8,128] lane-dense

        # ---- attention projection + residual ----
        x = x + _mm(attn, proj_w_ref[l]) + proj_b_ref[l]

        # ---- LN2 -> MLP -> residual ----
        h = ln(x, ln2_g_ref[l], ln2_b_ref[l])
        h = _mm(h, fc1_w_ref[l]) + fc1_b_ref[l]
        h = jax.nn.gelu(h, approximate=True)
        x = x + _mm(h, fc2_w_ref[l]) + fc2_b_ref[l]

    # ---- final LN (cls row only) + backbone head ----
    cls = ln(x[0:1, :], norm_g_ref[...], norm_b_ref[...])           # [1,128]
    feats = _mm(cls, head_w_ref[...]) + head_b_ref[...]             # [1,1024]

    # ---- all three multi-sample-dropout branches as ONE K=3072 matmul ----
    m = masks_ref[...]                                               # [3,1024]
    xm = jnp.concatenate([feats * m[0:1], feats * m[1:2], feats * m[2:3]],
                         axis=-1)                                    # [1,3072]
    out = _mm(xm, branch_w_ref[...]) + branch_b_ref[...]             # [1,128]
    o_ref[...] = jnp.broadcast_to(out, o_ref.shape).astype(o_ref.dtype)


def _deit_pallas(patches_pad, masks, p):
    B = patches_pad.shape[0]
    c2 = lambda b: (0, 0)
    c3 = lambda b: (0, 0, 0)
    bt = lambda b: (b, 0, 0)
    blk2 = lambda s: pl.BlockSpec(s, c2)
    blk3 = lambda s: pl.BlockSpec(s, c3)
    in_specs = [
        pl.BlockSpec((None, T_PAD, CPP), bt),              # patches (per batch)
        blk2((T_PAD, D_PAD)),                              # add_embed
        blk2((CPP, D_PAD)),                                # patch_w
        blk3((DEPTH, 1, D_PAD)), blk3((DEPTH, 1, D_PAD)),  # ln1_g, ln1_b
        blk3((DEPTH, D_PAD, 3 * D_PAD)),                   # qkv_w
        blk3((DEPTH, 1, 3 * D_PAD)),                       # qkv_b
        blk3((DEPTH, D_PAD, D_PAD)),                       # proj_w
        blk3((DEPTH, 1, D_PAD)),                           # proj_b
        blk3((DEPTH, 1, D_PAD)), blk3((DEPTH, 1, D_PAD)),  # ln2_g, ln2_b
        blk3((DEPTH, D_PAD, MLP)),                         # fc1_w
        blk3((DEPTH, 1, MLP)),                             # fc1_b
        blk3((DEPTH, MLP, D_PAD)),                         # fc2_w
        blk3((DEPTH, 1, D_PAD)),                           # fc2_b
        blk2((1, D_PAD)), blk2((1, D_PAD)),                # norm_g, norm_b
        blk2((D_PAD, BC_PAD)),                             # head_w
        blk2((1, BC_PAD)),                                 # head_b
        pl.BlockSpec((None, 3, BC_PAD), bt),               # masks (per batch)
        blk2((3 * BC_PAD, OUT_PAD)),                       # branch_w
        blk2((1, OUT_PAD)),                                # branch_b
    ]
    out = pl.pallas_call(
        _deit_kernel,
        out_shape=jax.ShapeDtypeStruct((B, T_PAD, OUT_PAD), jnp.float32),
        grid=(B,),
        in_specs=in_specs,
        out_specs=pl.BlockSpec((None, T_PAD, OUT_PAD), bt),
        compiler_params=pltpu.CompilerParams(
            dimension_semantics=("parallel",)),   # v7x: split batch over 2 TCs
    )(patches_pad, p["add_embed"], p["patch_w"],
      p["ln1_g"], p["ln1_b"], p["qkv_w"], p["qkv_b"],
      p["proj_w"], p["proj_b"], p["ln2_g"], p["ln2_b"],
      p["fc1_w"], p["fc1_b"], p["fc2_w"], p["fc2_b"],
      p["norm_g"], p["norm_b"], p["head_w"], p["head_b"],
      masks, p["branch_w"], p["branch_b"])
    return out[:, 0, :]                                   # [B, OUT_PAD]


# ----------------------------------------------------------------------------
# Parameter init (synthetic) + padding/packing into the kernel layout
# ----------------------------------------------------------------------------
def _pad_tail(a, axis, new):
    pad = [(0, 0)] * a.ndim
    pad[axis] = (0, new - a.shape[axis])
    return jnp.pad(a, pad)


def _pad_head_layout(a, axis):
    """Map a D_REAL dim laid out as [H, DH_REAL] to D_PAD laid out as [H, DH_PAD]."""
    a = jnp.moveaxis(a, axis, -1)
    lead = a.shape[:-1]
    a = a.reshape(lead + (N_HEADS, DH_REAL))
    a = _pad_tail(a, -1, DH_PAD)
    a = a.reshape(lead + (N_HEADS * DH_PAD,))
    return jnp.moveaxis(a, -1, axis)


def _pad_qkv_w(w):                        # [64, 192] -> [128, 384]
    parts = []
    for i in range(3):
        blk = w[:, i * D_REAL:(i + 1) * D_REAL]
        blk = _pad_head_layout(blk, axis=1)       # head-interleaved col pad
        blk = _pad_tail(blk, 0, D_PAD)            # zero rows for pad lanes
        parts.append(blk)
    return jnp.concatenate(parts, axis=1)


def _pad_qkv_b(b):                        # [192] -> [1, 384]
    parts = [_pad_head_layout(b[i * D_REAL:(i + 1) * D_REAL], axis=0)
             for i in range(3)]
    return jnp.concatenate(parts, axis=0)[None, :]


def pack_params(raw):
    pblocks = []
    for blk in raw["blocks"]:
        pblocks.append(dict(
            ln1_g=_pad_tail(blk["ln1_g"], 0, D_PAD)[None, :],
            ln1_b=_pad_tail(blk["ln1_b"], 0, D_PAD)[None, :],
            qkv_w=_pad_qkv_w(blk["qkv_w"]),
            qkv_b=_pad_qkv_b(blk["qkv_b"]),
            proj_w=_pad_tail(_pad_head_layout(blk["proj_w"], 0), 1, D_PAD),
            proj_b=_pad_tail(blk["proj_b"], 0, D_PAD)[None, :],
            ln2_g=_pad_tail(blk["ln2_g"], 0, D_PAD)[None, :],
            ln2_b=_pad_tail(blk["ln2_b"], 0, D_PAD)[None, :],
            fc1_w=_pad_tail(blk["fc1_w"], 0, D_PAD),
            fc1_b=blk["fc1_b"][None, :],
            fc2_w=_pad_tail(blk["fc2_w"], 1, D_PAD),
            fc2_b=_pad_tail(blk["fc2_b"], 0, D_PAD)[None, :],
        ))
    stacked = {k: jnp.stack([pb[k] for pb in pblocks]) for k in pblocks[0]}
    for k in ("qkv_w", "proj_w", "fc1_w", "fc2_w"):
        stacked[k] = stacked[k].astype(MXU_DTYPE)

    # additive embed term (shared across batch): cls row = cls + pos[0];
    # patch rows = pos[i] + conv bias; pad rows = 0.
    cls_p = _pad_tail(raw["cls_token"], 1, D_PAD)
    pos_p = _pad_tail(raw["pos_embed"], 1, D_PAD)
    pb_p = _pad_tail(raw["patch_b"], 0, D_PAD)[None, :]
    add = jnp.zeros((T_PAD, D_PAD), jnp.float32)
    add = add.at[0:1].set(cls_p + pos_p[0:1])
    add = add.at[1:T_REAL].set(pos_p[1:] + pb_p)

    # packed branch weights: mask logits -> cols 0:3, gender -> 3:5, age -> 5:8
    branch_w = jnp.zeros((3 * BC_PAD, OUT_PAD), jnp.float32)
    branch_w = branch_w.at[0 * BC_PAD:0 * BC_PAD + BC, 0:3].set(raw["mask_w"])
    branch_w = branch_w.at[1 * BC_PAD:1 * BC_PAD + BC, 3:5].set(raw["gender_w"])
    branch_w = branch_w.at[2 * BC_PAD:2 * BC_PAD + BC, 5:8].set(raw["age_w"])
    branch_b = jnp.zeros((1, OUT_PAD), jnp.float32)   # torch init: constant 0

    head_w = _pad_tail(_pad_tail(raw["head_w"], 0, D_PAD), 1, BC_PAD)

    return dict(
        patch_w=_pad_tail(raw["patch_w"], 1, D_PAD).astype(MXU_DTYPE),
        add_embed=add,
        norm_g=_pad_tail(raw["norm_g"], 0, D_PAD)[None, :],
        norm_b=_pad_tail(raw["norm_b"], 0, D_PAD)[None, :],
        head_w=head_w.astype(MXU_DTYPE),
        head_b=_pad_tail(raw["head_b"], 0, BC_PAD)[None, :],
        branch_w=branch_w.astype(MXU_DTYPE),
        branch_b=branch_b,
        **stacked,
    )


def init_params(key):
    keys = iter(jax.random.split(key, 40))

    def nrm(shape, std=0.02):
        return jax.random.normal(next(keys), shape, jnp.float32) * std

    raw = dict(
        patch_w=nrm((CPP, D_REAL)),
        patch_b=jnp.zeros((D_REAL,), jnp.float32),
        cls_token=nrm((1, D_REAL)),
        pos_embed=nrm((T_REAL, D_REAL)),
        norm_g=jnp.ones((D_REAL,), jnp.float32),
        norm_b=jnp.zeros((D_REAL,), jnp.float32),
        head_w=nrm((D_REAL, BC)),
        head_b=jnp.zeros((BC,), jnp.float32),
        # branch heads: weight ~ N(0, 0.001), bias = 0 (matches torch init)
        mask_w=nrm((BC, NUM_CLASSES), std=0.001),
        gender_w=nrm((BC, NUM_CLASSES - 1), std=0.001),
        age_w=nrm((BC, NUM_CLASSES), std=0.001),
        blocks=[],
    )
    for _ in range(DEPTH):
        raw["blocks"].append(dict(
            ln1_g=jnp.ones((D_REAL,), jnp.float32), ln1_b=jnp.zeros((D_REAL,), jnp.float32),
            qkv_w=nrm((D_REAL, 3 * D_REAL)), qkv_b=jnp.zeros((3 * D_REAL,), jnp.float32),
            proj_w=nrm((D_REAL, D_REAL)), proj_b=jnp.zeros((D_REAL,), jnp.float32),
            ln2_g=jnp.ones((D_REAL,), jnp.float32), ln2_b=jnp.zeros((D_REAL,), jnp.float32),
            fc1_w=nrm((D_REAL, MLP)), fc1_b=jnp.zeros((MLP,), jnp.float32),
            fc2_w=nrm((MLP, D_REAL)), fc2_b=jnp.zeros((D_REAL,), jnp.float32),
        ))
    return raw, pack_params(raw)


# ----------------------------------------------------------------------------
# Wrapper-side glue
# ----------------------------------------------------------------------------
def _extract_patches(x, P):
    """NCHW image -> [B, n_patches, C*P*P] (channel-major flatten, as Conv2d)."""
    B, C, Hi, Wi = x.shape
    gh, gw = Hi // P, Wi // P
    x = x.reshape(B, C, gh, P, gw, P).transpose(0, 2, 4, 1, 3, 5)
    return x.reshape(B, gh * gw, C * P * P)


def _branch_masks(key, B, training):
    """Averaged, keep-prob-scaled dropout masks, one per branch: [B, 3, BC_PAD]."""
    if (not training) or DROPOUT_P <= 0.0:
        return jnp.ones((B, 3, BC_PAD), jnp.float32)
    keep = 1.0 - DROPOUT_P
    bern = jax.random.bernoulli(
        key, keep, (B, 3, DROPOUT_NUM, BC_PAD)).astype(jnp.float32)
    return jnp.mean(bern, axis=2) * (1.0 / keep)


def deit_forward(params, x, *, training=True, rng=None):
    B = x.shape[0]
    if rng is None:
        rng = jax.random.PRNGKey(0)
    patches = _extract_patches(x, PATCH)                     # [B, 4, 768]
    pat = jnp.zeros((B, T_PAD, CPP), MXU_DTYPE)              # cls + pad rows = 0
    pat = pat.at[:, 1:1 + N_PATCH, :].set(patches.astype(MXU_DTYPE))
    masks = _branch_masks(rng, B, training)                  # [B, 3, 1024]
    out = _deit_pallas(pat, masks, params)                   # [B, 128]
    return out[:, 0:3], out[:, 3:5], out[:, 5:8]


# ----------------------------------------------------------------------------
# Plain-JAX (unpadded) reference, used only to validate the fused kernel
# ----------------------------------------------------------------------------
def reference_forward(raw, x, masks):
    B = x.shape[0]
    patches = _extract_patches(x, PATCH).reshape(B * N_PATCH, CPP)
    emb = (_mm(patches, raw["patch_w"]) + raw["patch_b"]).reshape(B, N_PATCH, D_REAL)
    cls = jnp.broadcast_to(raw["cls_token"], (B, 1, D_REAL))
    z = jnp.concatenate([cls, emb], axis=1) + raw["pos_embed"][None]

    def ln(v, g, b):
        mean = jnp.mean(v, -1, keepdims=True)
        var = jnp.mean(jnp.square(v - mean), -1, keepdims=True)
        return (v - mean) * jax.lax.rsqrt(var + LN_EPS) * g + b

    for blk in raw["blocks"]:
        h = ln(z, blk["ln1_g"], blk["ln1_b"])
        qkv = _mm(h.reshape(B * T_REAL, D_REAL), blk["qkv_w"]) + blk["qkv_b"]
        qkv = qkv.reshape(B, T_REAL, 3, N_HEADS, DH_REAL).transpose(2, 0, 3, 1, 4)
        q, k, v = qkv[0], qkv[1], qkv[2]                     # [B, H, T, dh]
        s = jnp.einsum("bhqd,bhkd->bhqk", q.astype(MXU_DTYPE), k.astype(MXU_DTYPE),
                       preferred_element_type=jnp.float32) * (DH_REAL ** -0.5)
        p = jax.nn.softmax(s, axis=-1)
        o = jnp.einsum("bhqk,bhkd->bhqd", p.astype(MXU_DTYPE), v.astype(MXU_DTYPE),
                       preferred_element_type=jnp.float32)
        o = o.transpose(0, 2, 1, 3).reshape(B * T_REAL, D_REAL)
        z = z + (_mm(o, blk["proj_w"]) + blk["proj_b"]).reshape(B, T_REAL, D_REAL)
        h = ln(z, blk["ln2_g"], blk["ln2_b"])
        h = _mm(h.reshape(B * T_REAL, D_REAL), blk["fc1_w"]) + blk["fc1_b"]
        h = jax.nn.gelu(h, approximate=True)
        z = z + (_mm(h, blk["fc2_w"]) + blk["fc2_b"]).reshape(B, T_REAL, D_REAL)

    cls_f = ln(z[:, 0], raw["norm_g"], raw["norm_b"])
    feats = _mm(cls_f, raw["head_w"]) + raw["head_b"]
    m = masks[:, :, :BC]
    out_mask = _mm(feats * m[:, 0], raw["mask_w"])
    out_gender = _mm(feats * m[:, 1], raw["gender_w"])
    out_age = _mm(feats * m[:, 2], raw["age_w"])
    return out_mask, out_gender, out_age


# ----------------------------------------------------------------------------
if __name__ == "__main__":
    key = jax.random.PRNGKey(0)
    pkey, xkey, dkey = jax.random.split(key, 3)

    raw, params = init_params(pkey)
    x = jax.random.normal(xkey, (BATCH, IN_CHANS, IMG, IMG), jnp.float32)

    mask, gender, age = deit_forward(params, x, training=True, rng=dkey)
    jax.block_until_ready((mask, gender, age))

    assert mask.shape == (BATCH, NUM_CLASSES)
    assert gender.shape == (BATCH, NUM_CLASSES - 1)
    assert age.shape == (BATCH, NUM_CLASSES)
    assert all(bool(jnp.all(jnp.isfinite(t))) for t in (mask, gender, age))

    # cross-check the fused, padded kernel against the unpadded pure-JAX model
    masks = _branch_masks(dkey, BATCH, True)
    ref_m, ref_g, ref_a = reference_forward(raw, x, masks)
    for got, want in ((mask, ref_m), (gender, ref_g), (age, ref_a)):
        err = float(jnp.max(jnp.abs(got - want)))
        assert jnp.allclose(got, want, atol=2e-3, rtol=5e-2), err

    print("KERNEL_OK")
</pallas_src>

<mosaic_0001>
module attributes {stable_mosaic.version = 11 : i64} {
  func.func @_deit_kernel(%arg0: i32, %arg1: memref<1x8x768xbf16, #tpu.memory_space<vmem>>, %arg2: memref<8x128xf32, #tpu.memory_space<vmem>>, %arg3: memref<768x128xbf16, #tpu.memory_space<vmem>>, %arg4: memref<2x1x128xf32, #tpu.memory_space<vmem>>, %arg5: memref<2x1x128xf32, #tpu.memory_space<vmem>>, %arg6: memref<2x128x384xbf16, #tpu.memory_space<vmem>>, %arg7: memref<2x1x384xf32, #tpu.memory_space<vmem>>, %arg8: memref<2x128x128xbf16, #tpu.memory_space<vmem>>, %arg9: memref<2x1x128xf32, #tpu.memory_space<vmem>>, %arg10: memref<2x1x128xf32, #tpu.memory_space<vmem>>, %arg11: memref<2x1x128xf32, #tpu.memory_space<vmem>>, %arg12: memref<2x128x256xbf16, #tpu.memory_space<vmem>>, %arg13: memref<2x1x256xf32, #tpu.memory_space<vmem>>, %arg14: memref<2x256x128xbf16, #tpu.memory_space<vmem>>, %arg15: memref<2x1x128xf32, #tpu.memory_space<vmem>>, %arg16: memref<1x128xf32, #tpu.memory_space<vmem>>, %arg17: memref<1x128xf32, #tpu.memory_space<vmem>>, %arg18: memref<128x1024xbf16, #tpu.memory_space<vmem>>, %arg19: memref<1x1024xf32, #tpu.memory_space<vmem>>, %arg20: memref<1x3x1024xf32, #tpu.memory_space<vmem>>, %arg21: memref<3072x128xbf16, #tpu.memory_space<vmem>>, %arg22: memref<1x128xf32, #tpu.memory_space<vmem>>, %arg23: memref<1x8x128xf32, #tpu.memory_space<vmem>>) attributes {dimension_semantics = [#tpu.dimension_semantics<parallel>], iteration_bounds = array<i64: 2>, scalar_prefetch = 0 : i64, scratch_operands = 0 : i64, tpu.core_type = #tpu.core_type<tc>, window_params = [{transform_indices = @transform_0, window_bounds = array<i64: 1, 8, 768>}, {pipeline_mode = #tpu.pipeline_mode<synchronous>, transform_indices = @transform_1, window_bounds = array<i64: 8, 128>}, {pipeline_mode = #tpu.pipeline_mode<synchronous>, transform_indices = @transform_2, window_bounds = array<i64: 768, 128>}, {pipeline_mode = #tpu.pipeline_mode<synchronous>, transform_indices = @transform_3, window_bounds = array<i64: 2, 1, 128>}, {pipeline_mode = #tpu.pipeline_mode<synchronous>, transform_indices = @transform_4, window_bounds = array<i64: 2, 1, 128>}, {pipeline_mode = #tpu.pipeline_mode<synchronous>, transform_indices = @transform_5, window_bounds = array<i64: 2, 128, 384>}, {pipeline_mode = #tpu.pipeline_mode<synchronous>, transform_indices = @transform_6, window_bounds = array<i64: 2, 1, 384>}, {pipeline_mode = #tpu.pipeline_mode<synchronous>, transform_indices = @transform_7, window_bounds = array<i64: 2, 128, 128>}, {pipeline_mode = #tpu.pipeline_mode<synchronous>, transform_indices = @transform_8, window_bounds = array<i64: 2, 1, 128>}, {pipeline_mode = #tpu.pipeline_mode<synchronous>, transform_indices = @transform_9, window_bounds = array<i64: 2, 1, 128>}, {pipeline_mode = #tpu.pipeline_mode<synchronous>, transform_indices = @transform_10, window_bounds = array<i64: 2, 1, 128>}, {pipeline_mode = #tpu.pipeline_mode<synchronous>, transform_indices = @transform_11, window_bounds = array<i64: 2, 128, 256>}, {pipeline_mode = #tpu.pipeline_mode<synchronous>, transform_indices = @transform_12, window_bounds = array<i64: 2, 1, 256>}, {pipeline_mode = #tpu.pipeline_mode<synchronous>, transform_indices = @transform_13, window_bounds = array<i64: 2, 256, 128>}, {pipeline_mode = #tpu.pipeline_mode<synchronous>, transform_indices = @transform_14, window_bounds = array<i64: 2, 1, 128>}, {pipeline_mode = #tpu.pipeline_mode<synchronous>, transform_indices = @transform_15, window_bounds = array<i64: 1, 128>}, {pipeline_mode = #tpu.pipeline_mode<synchronous>, transform_indices = @transform_16, window_bounds = array<i64: 1, 128>}, {pipeline_mode = #tpu.pipeline_mode<synchronous>, transform_indices = @transform_17, window_bounds = array<i64: 128, 1024>}, {pipeline_mode = #tpu.pipeline_mode<synchronous>, transform_indices = @transform_18, window_bounds = array<i64: 1, 1024>}, {transform_indices = @transform_19, window_bounds = array<i64: 1, 3, 1024>}, {pipeline_mode = #tpu.pipeline_mode<synchronous>, transform_indices = @transform_20, window_bounds = array<i64: 3072, 128>}, {pipeline_mode = #tpu.pipeline_mode<synchronous>, transform_indices = @transform_21, window_bounds = array<i64: 1, 128>}, {transform_indices = @transform_22, window_bounds = array<i64: 1, 8, 128>}]} {
    %c0 = arith.constant 0 : index
    %c0_0 = arith.constant 0 : index
    %c0_1 = arith.constant 0 : index
    %0 = vector.load %arg1[%c0, %c0_0, %c0_1] : memref<1x8x768xbf16, #tpu.memory_space<vmem>>, vector<1x8x768xbf16>
    %1 = vector.shape_cast %0 : vector<1x8x768xbf16> to vector<8x768xbf16>
    %c0_2 = arith.constant 0 : index
    %c0_3 = arith.constant 0 : index
    %2 = vector.load %arg3[%c0_2, %c0_3] : memref<768x128xbf16, #tpu.memory_space<vmem>>, vector<768x128xbf16>
    %cst = arith.constant dense<0.000000e+00> : vector<8x128xf32>
    %3 = tpu.matmul %1, %2, %cst {dimension_numbers = #tpu.dot_dimension_numbers<[1], [0], [0], [1], [0, 0, 1, 1], [], []>} : vector<8x768xbf16>, vector<768x128xbf16>, vector<8x128xf32> -> vector<8x128xf32>
    %c0_4 = arith.constant 0 : index
    %c0_5 = arith.constant 0 : index
    %4 = vector.load %arg2[%c0_4, %c0_5] : memref<8x128xf32, #tpu.memory_space<vmem>>, vector<8x128xf32>
    %5 = arith.addf %3, %4 : vector<8x128xf32>
    %6 = tpu.iota {dimensions = array<i32: 1>} : vector<1x128xi32>
    %c64_i32 = arith.constant 64 : i32
    %7 = vector.broadcast %c64_i32 : i32 to vector<1x128xi32>
    %8 = arith.cmpi slt, %6, %7 : vector<1x128xi32>
    %9 = arith.extui %8 : vector<1x128xi1> to vector<1x128xi32>
    %10 = arith.sitofp %9 : vector<1x128xi32> to vector<1x128xf32>
    %11 = tpu.iota {dimensions = array<i32: 1>} : vector<8x8xi32>
    %c5_i32 = arith.constant 5 : i32
    %12 = vector.broadcast %c5_i32 : i32 to vector<8x8xi32>
    %13 = arith.cmpi slt, %11, %12 : vector<8x8xi32>
    %c0_6 = arith.constant 0 : index
    %c0_7 = arith.constant 0 : index
    %c0_8 = arith.constant 0 : index
    %14 = vector.load %arg4[%c0_6, %c0_7, %c0_8] : memref<2x1x128xf32, #tpu.memory_space<vmem>>, vector<1x1x128xf32>
    %15 = vector.shape_cast %14 : vector<1x1x128xf32> to vector<1x128xf32>
    %c0_9 = arith.constant 0 : index
    %c0_10 = arith.constant 0 : index
    %c0_11 = arith.constant 0 : index
    %16 = vector.load %arg5[%c0_9, %c0_10, %c0_11] : memref<2x1x128xf32, #tpu.memory_space<vmem>>, vector<1x1x128xf32>
    %17 = vector.shape_cast %16 : vector<1x1x128xf32> to vector<1x128xf32>
    %cst_12 = arith.constant dense<0.000000e+00> : vector<8xf32>
    %18 = vector.multi_reduction <add>, %5, %cst_12 [1] : vector<8x128xf32> to vector<8xf32>
    %19 = vector.shape_cast %18 : vector<8xf32> to vector<8x1xf32>
    %cst_13 = arith.constant 1.562500e-02 : f32
    %20 = vector.broadcast %cst_13 : f32 to vector<8x1xf32>
    %21 = arith.mulf %19, %20 : vector<8x1xf32>
    %22 = vector.broadcast %21 : vector<8x1xf32> to vector<8x128xf32>
    %23 = arith.subf %5, %22 : vector<8x128xf32>
    %24 = vector.broadcast %10 : vector<1x128xf32> to vector<8x128xf32>
    %25 = arith.mulf %23, %24 : vector<8x128xf32>
    %26 = arith.mulf %25, %25 : vector<8x128xf32>
    %cst_14 = arith.constant dense<0.000000e+00> : vector<8xf32>
    %27 = vector.multi_reduction <add>, %26, %cst_14 [1] : vector<8x128xf32> to vector<8xf32>
    %28 = vector.shape_cast %27 : vector<8xf32> to vector<8x1xf32>
    %cst_15 = arith.constant 1.562500e-02 : f32
    %29 = vector.broadcast %cst_15 : f32 to vector<8x1xf32>
    %30 = arith.mulf %28, %29 : vector<8x1xf32>
    %cst_16 = arith.constant 9.99999997E-7 : f32
    %31 = vector.broadcast %cst_16 : f32 to vector<8x1xf32>
    %32 = arith.addf %30, %31 : vector<8x1xf32>
    %33 = math.rsqrt %32 : vector<8x1xf32>
    %34 = vector.broadcast %33 : vector<8x1xf32> to vector<8x128xf32>
    %35 = arith.mulf %25, %34 : vector<8x128xf32>
    %36 = vector.broadcast %15 : vector<1x128xf32> to vector<8x128xf32>
    %37 = arith.mulf %35, %36 : vector<8x128xf32>
    %38 = vector.broadcast %17 : vector<1x128xf32> to vector<8x128xf32>
    %39 = arith.addf %37, %38 : vector<8x128xf32>
    %c0_17 = arith.constant 0 : index
    %c0_18 = arith.constant 0 : index
    %c0_19 = arith.constant 0 : index
    %40 = vector.load %arg6[%c0_17, %c0_18, %c0_19] : memref<2x128x384xbf16, #tpu.memory_space<vmem>>, vector<1x128x384xbf16>
    %41 = vector.shape_cast %40 : vector<1x128x384xbf16> to vector<128x384xbf16>
    %42 = arith.truncf %39 : vector<8x128xf32> to vector<8x128xbf16>
    %cst_20 = arith.constant dense<0.000000e+00> : vector<8x384xf32>
    %43 = tpu.matmul %42, %41, %cst_20 {dimension_numbers = #tpu.dot_dimension_numbers<[1], [0], [0], [1], [0, 0, 1, 1], [], []>} : vector<8x128xbf16>, vector<128x384xbf16>, vector<8x384xf32> -> vector<8x384xf32>
    %c0_21 = arith.constant 0 : index
    %c0_22 = arith.constant 0 : index
    %c0_23 = arith.constant 0 : index
    %44 = vector.load %arg7[%c0_21, %c0_22, %c0_23] : memref<2x1x384xf32, #tpu.memory_space<vmem>>, vector<1x1x384xf32>
    %45 = vector.shape_cast %44 : vector<1x1x384xf32> to vector<1x384xf32>
    %46 = vector.broadcast %45 : vector<1x384xf32> to vector<8x384xf32>
    %47 = arith.addf %43, %46 : vector<8x384xf32>
    %48 = arith.truncf %47 : vector<8x384xf32> to vector<8x384xbf16>
    %49 = vector.extract_strided_slice %48 {offsets = [0, 0], sizes = [8, 64], strides = [1, 1]} : vector<8x384xbf16> to vector<8x64xbf16>
    %50 = vector.extract_strided_slice %48 {offsets = [0, 128], sizes = [8, 64], strides = [1, 1]} : vector<8x384xbf16> to vector<8x64xbf16>
    %51 = vector.extract_strided_slice %48 {offsets = [0, 256], sizes = [8, 64], strides = [1, 1]} : vector<8x384xbf16> to vector<8x64xbf16>
    %cst_24 = arith.constant dense<0.000000e+00> : vector<8x8xf32>
    %52 = tpu.matmul %49, %50, %cst_24 {dimension_numbers = #tpu.dot_dimension_numbers<[1], [1], [0], [0], [0, 0, 1, 0], [], []>} : vector<8x64xbf16>, vector<8x64xbf16>, vector<8x8xf32> -> vector<8x8xf32>
    %cst_25 = arith.constant 0.176776692 : f32
    %53 = vector.broadcast %cst_25 : f32 to vector<8x8xf32>
    %54 = arith.mulf %52, %53 : vector<8x8xf32>
    %cst_26 = arith.constant -1.000000e+30 : f32
    %55 = vector.broadcast %cst_26 : f32 to vector<8x8xf32>
    %56 = arith.select %13, %54, %55 : vector<8x8xi1>, vector<8x8xf32>
    %cst_27 = arith.constant dense<0xFF800000> : vector<8xf32>
    %57 = vector.multi_reduction <maximumf>, %56, %cst_27 [1] : vector<8x8xf32> to vector<8xf32>
    %58 = vector.shape_cast %57 : vector<8xf32> to vector<8x1xf32>
    %59 = vector.broadcast %58 : vector<8x1xf32> to vector<8x8xf32>
    %60 = arith.subf %56, %59 : vector<8x8xf32>
    %61 = math.exp %60 : vector<8x8xf32>
    %cst_28 = arith.constant dense<0.000000e+00> : vector<8xf32>
    %62 = vector.multi_reduction <add>, %61, %cst_28 [1] : vector<8x8xf32> to vector<8xf32>
    %63 = vector.shape_cast %62 : vector<8xf32> to vector<8x1xf32>
    %64 = vector.broadcast %63 : vector<8x1xf32> to vector<8x8xf32>
    %65 = arith.divf %61, %64 : vector<8x8xf32>
    %66 = arith.truncf %65 : vector<8x8xf32> to vector<8x8xbf16>
    %cst_29 = arith.constant dense<0.000000e+00> : vector<8x64xf32>
    %67 = tpu.matmul %66, %51, %cst_29 {dimension_numbers = #tpu.dot_dimension_numbers<[1], [0], [0], [1], [0, 0, 1, 1], [], []>} : vector<8x8xbf16>, vector<8x64xbf16>, vector<8x64xf32> -> vector<8x64xf32>
    %68 = vector.extract_strided_slice %48 {offsets = [0, 64], sizes = [8, 64], strides = [1, 1]} : vector<8x384xbf16> to vector<8x64xbf16>
    %69 = vector.extract_strided_slice %48 {offsets = [0, 192], sizes = [8, 64], strides = [1, 1]} : vector<8x384xbf16> to vector<8x64xbf16>
    %70 = vector.extract_strided_slice %48 {offsets = [0, 320], sizes = [8, 64], strides = [1, 1]} : vector<8x384xbf16> to vector<8x64xbf16>
    %cst_30 = arith.constant dense<0.000000e+00> : vector<8x8xf32>
    %71 = tpu.matmul %68, %69, %cst_30 {dimension_numbers = #tpu.dot_dimension_numbers<[1], [1], [0], [0], [0, 0, 1, 0], [], []>} : vector<8x64xbf16>, vector<8x64xbf16>, vector<8x8xf32> -> vector<8x8xf32>
    %cst_31 = arith.constant 0.176776692 : f32
    %72 = vector.broadcast %cst_31 : f32 to vector<8x8xf32>
    %73 = arith.mulf %71, %72 : vector<8x8xf32>
    %cst_32 = arith.constant -1.000000e+30 : f32
    %74 = vector.broadcast %cst_32 : f32 to vector<8x8xf32>
    %75 = arith.select %13, %73, %74 : vector<8x8xi1>, vector<8x8xf32>
    %cst_33 = arith.constant dense<0xFF800000> : vector<8xf32>
    %76 = vector.multi_reduction <maximumf>, %75, %cst_33 [1] : vector<8x8xf32> to vector<8xf32>
    %77 = vector.shape_cast %76 : vector<8xf32> to vector<8x1xf32>
    %78 = vector.broadcast %77 : vector<8x1xf32> to vector<8x8xf32>
    %79 = arith.subf %75, %78 : vector<8x8xf32>
    %80 = math.exp %79 : vector<8x8xf32>
    %cst_34 = arith.constant dense<0.000000e+00> : vector<8xf32>
    %81 = vector.multi_reduction <add>, %80, %cst_34 [1] : vector<8x8xf32> to vector<8xf32>
    %82 = vector.shape_cast %81 : vector<8xf32> to vector<8x1xf32>
    %83 = vector.broadcast %82 : vector<8x1xf32> to vector<8x8xf32>
    %84 = arith.divf %80, %83 : vector<8x8xf32>
    %85 = arith.truncf %84 : vector<8x8xf32> to vector<8x8xbf16>
    %cst_35 = arith.constant dense<0.000000e+00> : vector<8x64xf32>
    %86 = tpu.matmul %85, %70, %cst_35 {dimension_numbers = #tpu.dot_dimension_numbers<[1], [0], [0], [1], [0, 0, 1, 1], [], []>} : vector<8x8xbf16>, vector<8x64xbf16>, vector<8x64xf32> -> vector<8x64xf32>
    %87 = tpu.concatenate %67, %86 in 1 : vector<8x64xf32>, vector<8x64xf32> -> vector<8x128xf32>
    %c0_36 = arith.constant 0 : index
    %c0_37 = arith.constant 0 : index
    %c0_38 = arith.constant 0 : index
    %88 = vector.load %arg8[%c0_36, %c0_37, %c0_38] : memref<2x128x128xbf16, #tpu.memory_space<vmem>>, vector<1x128x128xbf16>
    %89 = vector.shape_cast %88 : vector<1x128x128xbf16> to vector<128x128xbf16>
    %90 = arith.truncf %87 : vector<8x128xf32> to vector<8x128xbf16>
    %cst_39 = arith.constant dense<0.000000e+00> : vector<8x128xf32>
    %91 = tpu.matmul %90, %89, %cst_39 {dimension_numbers = #tpu.dot_dimension_numbers<[1], [0], [0], [1], [0, 0, 1, 1], [], []>} : vector<8x128xbf16>, vector<128x128xbf16>, vector<8x128xf32> -> vector<8x128xf32>
    %92 = arith.addf %5, %91 : vector<8x128xf32>
    %c0_40 = arith.constant 0 : index
    %c0_41 = arith.constant 0 : index
    %c0_42 = arith.constant 0 : index
    %93 = vector.load %arg9[%c0_40, %c0_41, %c0_42] : memref<2x1x128xf32, #tpu.memory_space<vmem>>, vector<1x1x128xf32>
    %94 = vector.shape_cast %93 : vector<1x1x128xf32> to vector<1x128xf32>
    %95 = vector.broadcast %94 : vector<1x128xf32> to vector<8x128xf32>
    %96 = arith.addf %92, %95 : vector<8x128xf32>
    %c0_43 = arith.constant 0 : index
    %c0_44 = arith.constant 0 : index
    %c0_45 = arith.constant 0 : index
    %97 = vector.load %arg10[%c0_43, %c0_44, %c0_45] : memref<2x1x128xf32, #tpu.memory_space<vmem>>, vector<1x1x128xf32>
    %98 = vector.shape_cast %97 : vector<1x1x128xf32> to vector<1x128xf32>
    %c0_46 = arith.constant 0 : index
    %c0_47 = arith.constant 0 : index
    %c0_48 = arith.constant 0 : index
    %99 = vector.load %arg11[%c0_46, %c0_47, %c0_48] : memref<2x1x128xf32, #tpu.memory_space<vmem>>, vector<1x1x128xf32>
    %100 = vector.shape_cast %99 : vector<1x1x128xf32> to vector<1x128xf32>
    %cst_49 = arith.constant dense<0.000000e+00> : vector<8xf32>
    %101 = vector.multi_reduction <add>, %96, %cst_49 [1] : vector<8x128xf32> to vector<8xf32>
    %102 = vector.shape_cast %101 : vector<8xf32> to vector<8x1xf32>
    %cst_50 = arith.constant 1.562500e-02 : f32
    %103 = vector.broadcast %cst_50 : f32 to vector<8x1xf32>
    %104 = arith.mulf %102, %103 : vector<8x1xf32>
    %105 = vector.broadcast %104 : vector<8x1xf32> to vector<8x128xf32>
    %106 = arith.subf %96, %105 : vector<8x128xf32>
    %107 = vector.broadcast %10 : vector<1x128xf32> to vector<8x128xf32>
    %108 = arith.mulf %106, %107 : vector<8x128xf32>
    %109 = arith.mulf %108, %108 : vector<8x128xf32>
    %cst_51 = arith.constant dense<0.000000e+00> : vector<8xf32>
    %110 = vector.multi_reduction <add>, %109, %cst_51 [1] : vector<8x128xf32> to vector<8xf32>
    %111 = vector.shape_cast %110 : vector<8xf32> to vector<8x1xf32>
    %cst_52 = arith.constant 1.562500e-02 : f32
    %112 = vector.broadcast %cst_52 : f32 to vector<8x1xf32>
    %113 = arith.mulf %111, %112 : vector<8x1xf32>
    %cst_53 = arith.constant 9.99999997E-7 : f32
    %114 = vector.broadcast %cst_53 : f32 to vector<8x1xf32>
    %115 = arith.addf %113, %114 : vector<8x1xf32>
    %116 = math.rsqrt %115 : vector<8x1xf32>
    %117 = vector.broadcast %116 : vector<8x1xf32> to vector<8x128xf32>
    %118 = arith.mulf %108, %117 : vector<8x128xf32>
    %119 = vector.broadcast %98 : vector<1x128xf32> to vector<8x128xf32>
    %120 = arith.mulf %118, %119 : vector<8x128xf32>
    %121 = vector.broadcast %100 : vector<1x128xf32> to vector<8x128xf32>
    %122 = arith.addf %120, %121 : vector<8x128xf32>
    %c0_54 = arith.constant 0 : index
    %c0_55 = arith.constant 0 : index
    %c0_56 = arith.constant 0 : index
    %123 = vector.load %arg12[%c0_54, %c0_55, %c0_56] : memref<2x128x256xbf16, #tpu.memory_space<vmem>>, vector<1x128x256xbf16>
    %124 = vector.shape_cast %123 : vector<1x128x256xbf16> to vector<128x256xbf16>
    %125 = arith.truncf %122 : vector<8x128xf32> to vector<8x128xbf16>
    %cst_57 = arith.constant dense<0.000000e+00> : vector<8x256xf32>
    %126 = tpu.matmul %125, %124, %cst_57 {dimension_numbers = #tpu.dot_dimension_numbers<[1], [0], [0], [1], [0, 0, 1, 1], [], []>} : vector<8x128xbf16>, vector<128x256xbf16>, vector<8x256xf32> -> vector<8x256xf32>
    %c0_58 = arith.constant 0 : index
    %c0_59 = arith.constant 0 : index
    %c0_60 = arith.constant 0 : index
    %127 = vector.load %arg13[%c0_58, %c0_59, %c0_60] : memref<2x1x256xf32, #tpu.memory_space<vmem>>, vector<1x1x256xf32>
    %128 = vector.shape_cast %127 : vector<1x1x256xf32> to vector<1x256xf32>
    %129 = vector.broadcast %128 : vector<1x256xf32> to vector<8x256xf32>
    %130 = arith.addf %126, %129 : vector<8x256xf32>
    %131 = arith.mulf %130, %130 : vector<8x256xf32>
    %132 = arith.mulf %130, %131 : vector<8x256xf32>
    %cst_61 = arith.constant 4.471500e-02 : f32
    %133 = vector.broadcast %cst_61 : f32 to vector<8x256xf32>
    %134 = arith.mulf %133, %132 : vector<8x256xf32>
    %135 = arith.addf %130, %134 : vector<8x256xf32>
    %cst_62 = arith.constant 0.797884583 : f32
    %136 = vector.broadcast %cst_62 : f32 to vector<8x256xf32>
    %137 = arith.mulf %136, %135 : vector<8x256xf32>
    %138 = math.tanh %137 : vector<8x256xf32>
    %cst_63 = arith.constant 1.000000e+00 : f32
    %139 = vector.broadcast %cst_63 : f32 to vector<8x256xf32>
    %140 = arith.addf %139, %138 : vector<8x256xf32>
    %cst_64 = arith.constant 5.000000e-01 : f32
    %141 = vector.broadcast %cst_64 : f32 to vector<8x256xf32>
    %142 = arith.mulf %141, %140 : vector<8x256xf32>
    %143 = arith.mulf %130, %142 : vector<8x256xf32>
    %c0_65 = arith.constant 0 : index
    %c0_66 = arith.constant 0 : index
    %c0_67 = arith.constant 0 : index
    %144 = vector.load %arg14[%c0_65, %c0_66, %c0_67] : memref<2x256x128xbf16, #tpu.memory_space<vmem>>, vector<1x256x128xbf16>
    %145 = vector.shape_cast %144 : vector<1x256x128xbf16> to vector<256x128xbf16>
    %146 = arith.truncf %143 : vector<8x256xf32> to vector<8x256xbf16>
    %cst_68 = arith.constant dense<0.000000e+00> : vector<8x128xf32>
    %147 = tpu.matmul %146, %145, %cst_68 {dimension_numbers = #tpu.dot_dimension_numbers<[1], [0], [0], [1], [0, 0, 1, 1], [], []>} : vector<8x256xbf16>, vector<256x128xbf16>, vector<8x128xf32> -> vector<8x128xf32>
    %148 = arith.addf %96, %147 : vector<8x128xf32>
    %c0_69 = arith.constant 0 : index
    %c0_70 = arith.constant 0 : index
    %c0_71 = arith.constant 0 : index
    %149 = vector.load %arg15[%c0_69, %c0_70, %c0_71] : memref<2x1x128xf32, #tpu.memory_space<vmem>>, vector<1x1x128xf32>
    %150 = vector.shape_cast %149 : vector<1x1x128xf32> to vector<1x128xf32>
    %151 = vector.broadcast %150 : vector<1x128xf32> to vector<8x128xf32>
    %152 = arith.addf %148, %151 : vector<8x128xf32>
    %c1 = arith.constant 1 : index
    %c0_72 = arith.constant 0 : index
    %c0_73 = arith.constant 0 : index
    %153 = vector.load %arg4[%c1, %c0_72, %c0_73] : memref<2x1x128xf32, #tpu.memory_space<vmem>>, vector<1x1x128xf32>
    %154 = vector.shape_cast %153 : vector<1x1x128xf32> to vector<1x128xf32>
    %c1_74 = arith.constant 1 : index
    %c0_75 = arith.constant 0 : index
    %c0_76 = arith.constant 0 : index
    %155 = vector.load %arg5[%c1_74, %c0_75, %c0_76] : memref<2x1x128xf32, #tpu.memory_space<vmem>>, vector<1x1x128xf32>
    %156 = vector.shape_cast %155 : vector<1x1x128xf32> to vector<1x128xf32>
    %cst_77 = arith.constant dense<0.000000e+00> : vector<8xf32>
    %157 = vector.multi_reduction <add>, %152, %cst_77 [1] : vector<8x128xf32> to vector<8xf32>
    %158 = vector.shape_cast %157 : vector<8xf32> to vector<8x1xf32>
    %cst_78 = arith.constant 1.562500e-02 : f32
    %159 = vector.broadcast %cst_78 : f32 to vector<8x1xf32>
    %160 = arith.mulf %158, %159 : vector<8x1xf32>
    %161 = vector.broadcast %160 : vector<8x1xf32> to vector<8x128xf32>
    %162 = arith.subf %152, %161 : vector<8x128xf32>
    %163 = vector.broadcast %10 : vector<1x128xf32> to vector<8x128xf32>
    %164 = arith.mulf %162, %163 : vector<8x128xf32>
    %165 = arith.mulf %164, %164 : vector<8x128xf32>
    %cst_79 = arith.constant dense<0.000000e+00> : vector<8xf32>
    %166 = vector.multi_reduction <add>, %165, %cst_79 [1] : vector<8x128xf32> to vector<8xf32>
    %167 = vector.shape_cast %166 : vector<8xf32> to vector<8x1xf32>
    %cst_80 = arith.constant 1.562500e-02 : f32
    %168 = vector.broadcast %cst_80 : f32 to vector<8x1xf32>
    %169 = arith.mulf %167, %168 : vector<8x1xf32>
    %cst_81 = arith.constant 9.99999997E-7 : f32
    %170 = vector.broadcast %cst_81 : f32 to vector<8x1xf32>
    %171 = arith.addf %169, %170 : vector<8x1xf32>
    %172 = math.rsqrt %171 : vector<8x1xf32>
    %173 = vector.broadcast %172 : vector<8x1xf32> to vector<8x128xf32>
    %174 = arith.mulf %164, %173 : vector<8x128xf32>
    %175 = vector.broadcast %154 : vector<1x128xf32> to vector<8x128xf32>
    %176 = arith.mulf %174, %175 : vector<8x128xf32>
    %177 = vector.broadcast %156 : vector<1x128xf32> to vector<8x128xf32>
    %178 = arith.addf %176, %177 : vector<8x128xf32>
    %c1_82 = arith.constant 1 : index
    %c0_83 = arith.constant 0 : index
    %c0_84 = arith.constant 0 : index
    %179 = vector.load %arg6[%c1_82, %c0_83, %c0_84] : memref<2x128x384xbf16, #tpu.memory_space<vmem>>, vector<1x128x384xbf16>
    %180 = vector.shape_cast %179 : vector<1x128x384xbf16> to vector<128x384xbf16>
    %181 = arith.truncf %178 : vector<8x128xf32> to vector<8x128xbf16>
    %cst_85 = arith.constant dense<0.000000e+00> : vector<8x384xf32>
    %182 = tpu.matmul %181, %180, %cst_85 {dimension_numbers = #tpu.dot_dimension_numbers<[1], [0], [0], [1], [0, 0, 1, 1], [], []>} : vector<8x128xbf16>, vector<128x384xbf16>, vector<8x384xf32> -> vector<8x384xf32>
    %c1_86 = arith.constant 1 : index
    %c0_87 = arith.constant 0 : index
    %c0_88 = arith.constant 0 : index
    %183 = vector.load %arg7[%c1_86, %c0_87, %c0_88] : memref<2x1x384xf32, #tpu.memory_space<vmem>>, vector<1x1x384xf32>
    %184 = vector.shape_cast %183 : vector<1x1x384xf32> to vector<1x384xf32>
    %185 = vector.broadcast %184 : vector<1x384xf32> to vector<8x384xf32>
    %186 = arith.addf %182, %185 : vector<8x384xf32>
    %187 = arith.truncf %186 : vector<8x384xf32> to vector<8x384xbf16>
    %188 = vector.extract_strided_slice %187 {offsets = [0, 0], sizes = [8, 64], strides = [1, 1]} : vector<8x384xbf16> to vector<8x64xbf16>
    %189 = vector.extract_strided_slice %187 {offsets = [0, 128], sizes = [8, 64], strides = [1, 1]} : vector<8x384xbf16> to vector<8x64xbf16>
    %190 = vector.extract_strided_slice %187 {offsets = [0, 256], sizes = [8, 64], strides = [1, 1]} : vector<8x384xbf16> to vector<8x64xbf16>
    %cst_89 = arith.constant dense<0.000000e+00> : vector<8x8xf32>
    %191 = tpu.matmul %188, %189, %cst_89 {dimension_numbers = #tpu.dot_dimension_numbers<[1], [1], [0], [0], [0, 0, 1, 0], [], []>} : vector<8x64xbf16>, vector<8x64xbf16>, vector<8x8xf32> -> vector<8x8xf32>
    %cst_90 = arith.constant 0.176776692 : f32
    %192 = vector.broadcast %cst_90 : f32 to vector<8x8xf32>
    %193 = arith.mulf %191, %192 : vector<8x8xf32>
    %cst_91 = arith.constant -1.000000e+30 : f32
    %194 = vector.broadcast %cst_91 : f32 to vector<8x8xf32>
    %195 = arith.select %13, %193, %194 : vector<8x8xi1>, vector<8x8xf32>
    %cst_92 = arith.constant dense<0xFF800000> : vector<8xf32>
    %196 = vector.multi_reduction <maximumf>, %195, %cst_92 [1] : vector<8x8xf32> to vector<8xf32>
    %197 = vector.shape_cast %196 : vector<8xf32> to vector<8x1xf32>
    %198 = vector.broadcast %197 : vector<8x1xf32> to vector<8x8xf32>
    %199 = arith.subf %195, %198 : vector<8x8xf32>
    %200 = math.exp %199 : vector<8x8xf32>
    %cst_93 = arith.constant dense<0.000000e+00> : vector<8xf32>
    %201 = vector.multi_reduction <add>, %200, %cst_93 [1] : vector<8x8xf32> to vector<8xf32>
    %202 = vector.shape_cast %201 : vector<8xf32> to vector<8x1xf32>
    %203 = vector.broadcast %202 : vector<8x1xf32> to vector<8x8xf32>
    %204 = arith.divf %200, %203 : vector<8x8xf32>
    %205 = arith.truncf %204 : vector<8x8xf32> to vector<8x8xbf16>
    %cst_94 = arith.constant dense<0.000000e+00> : vector<8x64xf32>
    %206 = tpu.matmul %205, %190, %cst_94 {dimension_numbers = #tpu.dot_dimension_numbers<[1], [0], [0], [1], [0, 0, 1, 1], [], []>} : vector<8x8xbf16>, vector<8x64xbf16>, vector<8x64xf32> -> vector<8x64xf32>
    %207 = vector.extract_strided_slice %187 {offsets = [0, 64], sizes = [8, 64], strides = [1, 1]} : vector<8x384xbf16> to vector<8x64xbf16>
    %208 = vector.extract_strided_slice %187 {offsets = [0, 192], sizes = [8, 64], strides = [1, 1]} : vector<8x384xbf16> to vector<8x64xbf16>
    %209 = vector.extract_strided_slice %187 {offsets = [0, 320], sizes = [8, 64], strides = [1, 1]} : vector<8x384xbf16> to vector<8x64xbf16>
    %cst_95 = arith.constant dense<0.000000e+00> : vector<8x8xf32>
    %210 = tpu.matmul %207, %208, %cst_95 {dimension_numbers = #tpu.dot_dimension_numbers<[1], [1], [0], [0], [0, 0, 1, 0], [], []>} : vector<8x64xbf16>, vector<8x64xbf16>, vector<8x8xf32> -> vector<8x8xf32>
    %cst_96 = arith.constant 0.176776692 : f32
    %211 = vector.broadcast %cst_96 : f32 to vector<8x8xf32>
    %212 = arith.mulf %210, %211 : vector<8x8xf32>
    %cst_97 = arith.constant -1.000000e+30 : f32
    %213 = vector.broadcast %cst_97 : f32 to vector<8x8xf32>
    %214 = arith.select %13, %212, %213 : vector<8x8xi1>, vector<8x8xf32>
    %cst_98 = arith.constant dense<0xFF800000> : vector<8xf32>
    %215 = vector.multi_reduction <maximumf>, %214, %cst_98 [1] : vector<8x8xf32> to vector<8xf32>
    %216 = vector.shape_cast %215 : vector<8xf32> to vector<8x1xf32>
    %217 = vector.broadcast %216 : vector<8x1xf32> to vector<8x8xf32>
    %218 = arith.subf %214, %217 : vector<8x8xf32>
    %219 = math.exp %218 : vector<8x8xf32>
    %cst_99 = arith.constant dense<0.000000e+00> : vector<8xf32>
    %220 = vector.multi_reduction <add>, %219, %cst_99 [1] : vector<8x8xf32> to vector<8xf32>
    %221 = vector.shape_cast %220 : vector<8xf32> to vector<8x1xf32>
    %222 = vector.broadcast %221 : vector<8x1xf32> to vector<8x8xf32>
    %223 = arith.divf %219, %222 : vector<8x8xf32>
    %224 = arith.truncf %223 : vector<8x8xf32> to vector<8x8xbf16>
    %cst_100 = arith.constant dense<0.000000e+00> : vector<8x64xf32>
    %225 = tpu.matmul %224, %209, %cst_100 {dimension_numbers = #tpu.dot_dimension_numbers<[1], [0], [0], [1], [0, 0, 1, 1], [], []>} : vector<8x8xbf16>, vector<8x64xbf16>, vector<8x64xf32> -> vector<8x64xf32>
    %226 = tpu.concatenate %206, %225 in 1 : vector<8x64xf32>, vector<8x64xf32> -> vector<8x128xf32>
    %c1_101 = arith.constant 1 : index
    %c0_102 = arith.constant 0 : index
    %c0_103 = arith.constant 0 : index
    %227 = vector.load %arg8[%c1_101, %c0_102, %c0_103] : memref<2x128x128xbf16, #tpu.memory_space<vmem>>, vector<1x128x128xbf16>
    %228 = vector.shape_cast %227 : vector<1x128x128xbf16> to vector<128x128xbf16>
    %229 = arith.truncf %226 : vector<8x128xf32> to vector<8x128xbf16>
    %cst_104 = arith.constant dense<0.000000e+00> : vector<8x128xf32>
    %230 = tpu.matmul %229, %228, %cst_104 {dimension_numbers = #tpu.dot_dimension_numbers<[1], [0], [0], [1], [0, 0, 1, 1], [], []>} : vector<8x128xbf16>, vector<128x128xbf16>, vector<8x128xf32> -> vector<8x128xf32>
    %231 = arith.addf %152, %230 : vector<8x128xf32>
    %c1_105 = arith.constant 1 : index
    %c0_106 = arith.constant 0 : index
    %c0_107 = arith.constant 0 : index
    %232 = vector.load %arg9[%c1_105, %c0_106, %c0_107] : memref<2x1x128xf32, #tpu.memory_space<vmem>>, vector<1x1x128xf32>
    %233 = vector.shape_cast %232 : vector<1x1x128xf32> to vector<1x128xf32>
    %234 = vector.broadcast %233 : vector<1x128xf32> to vector<8x128xf32>
    %235 = arith.addf %231, %234 : vector<8x128xf32>
    %c1_108 = arith.constant 1 : index
    %c0_109 = arith.constant 0 : index
    %c0_110 = arith.constant 0 : index
    %236 = vector.load %arg10[%c1_108, %c0_109, %c0_110] : memref<2x1x128xf32, #tpu.memory_space<vmem>>, vector<1x1x128xf32>
    %237 = vector.shape_cast %236 : vector<1x1x128xf32> to vector<1x128xf32>
    %c1_111 = arith.constant 1 : index
    %c0_112 = arith.constant 0 : index
    %c0_113 = arith.constant 0 : index
    %238 = vector.load %arg11[%c1_111, %c0_112, %c0_113] : memref<2x1x128xf32, #tpu.memory_space<vmem>>, vector<1x1x128xf32>
    %239 = vector.shape_cast %238 : vector<1x1x128xf32> to vector<1x128xf32>
    %cst_114 = arith.constant dense<0.000000e+00> : vector<8xf32>
    %240 = vector.multi_reduction <add>, %235, %cst_114 [1] : vector<8x128xf32> to vector<8xf32>
    %241 = vector.shape_cast %240 : vector<8xf32> to vector<8x1xf32>
    %cst_115 = arith.constant 1.562500e-02 : f32
    %242 = vector.broadcast %cst_115 : f32 to vector<8x1xf32>
    %243 = arith.mulf %241, %242 : vector<8x1xf32>
    %244 = vector.broadcast %243 : vector<8x1xf32> to vector<8x128xf32>
    %245 = arith.subf %235, %244 : vector<8x128xf32>
    %246 = vector.broadcast %10 : vector<1x128xf32> to vector<8x128xf32>
    %247 = arith.mulf %245, %246 : vector<8x128xf32>
    %248 = arith.mulf %247, %247 : vector<8x128xf32>
    %cst_116 = arith.constant dense<0.000000e+00> : vector<8xf32>
    %249 = vector.multi_reduction <add>, %248, %cst_116 [1] : vector<8x128xf32> to vector<8xf32>
    %250 = vector.shape_cast %249 : vector<8xf32> to vector<8x1xf32>
    %cst_117 = arith.constant 1.562500e-02 : f32
    %251 = vector.broadcast %cst_117 : f32 to vector<8x1xf32>
    %252 = arith.mulf %250, %251 : vector<8x1xf32>
    %cst_118 = arith.constant 9.99999997E-7 : f32
    %253 = vector.broadcast %cst_118 : f32 to vector<8x1xf32>
    %254 = arith.addf %252, %253 : vector<8x1xf32>
    %255 = math.rsqrt %254 : vector<8x1xf32>
    %256 = vector.broadcast %255 : vector<8x1xf32> to vector<8x128xf32>
    %257 = arith.mulf %247, %256 : vector<8x128xf32>
    %258 = vector.broadcast %237 : vector<1x128xf32> to vector<8x128xf32>
    %259 = arith.mulf %257, %258 : vector<8x128xf32>
    %260 = vector.broadcast %239 : vector<1x128xf32> to vector<8x128xf32>
    %261 = arith.addf %259, %260 : vector<8x128xf32>
    %c1_119 = arith.constant 1 : index
    %c0_120 = arith.constant 0 : index
    %c0_121 = arith.constant 0 : index
    %262 = vector.load %arg12[%c1_119, %c0_120, %c0_121] : memref<2x128x256xbf16, #tpu.memory_space<vmem>>, vector<1x128x256xbf16>
    %263 = vector.shape_cast %262 : vector<1x128x256xbf16> to vector<128x256xbf16>
    %264 = arith.truncf %261 : vector<8x128xf32> to vector<8x128xbf16>
    %cst_122 = arith.constant dense<0.000000e+00> : vector<8x256xf32>
    %265 = tpu.matmul %264, %263, %cst_122 {dimension_numbers = #tpu.dot_dimension_numbers<[1], [0], [0], [1], [0, 0, 1, 1], [], []>} : vector<8x128xbf16>, vector<128x256xbf16>, vector<8x256xf32> -> vector<8x256xf32>
    %c1_123 = arith.constant 1 : index
    %c0_124 = arith.constant 0 : index
    %c0_125 = arith.constant 0 : index
    %266 = vector.load %arg13[%c1_123, %c0_124, %c0_125] : memref<2x1x256xf32, #tpu.memory_space<vmem>>, vector<1x1x256xf32>
    %267 = vector.shape_cast %266 : vector<1x1x256xf32> to vector<1x256xf32>
    %268 = vector.broadcast %267 : vector<1x256xf32> to vector<8x256xf32>
    %269 = arith.addf %265, %268 : vector<8x256xf32>
    %270 = arith.mulf %269, %269 : vector<8x256xf32>
    %271 = arith.mulf %269, %270 : vector<8x256xf32>
    %cst_126 = arith.constant 4.471500e-02 : f32
    %272 = vector.broadcast %cst_126 : f32 to vector<8x256xf32>
    %273 = arith.mulf %272, %271 : vector<8x256xf32>
    %274 = arith.addf %269, %273 : vector<8x256xf32>
    %cst_127 = arith.constant 0.797884583 : f32
    %275 = vector.broadcast %cst_127 : f32 to vector<8x256xf32>
    %276 = arith.mulf %275, %274 : vector<8x256xf32>
    %277 = math.tanh %276 : vector<8x256xf32>
    %cst_128 = arith.constant 1.000000e+00 : f32
    %278 = vector.broadcast %cst_128 : f32 to vector<8x256xf32>
    %279 = arith.addf %278, %277 : vector<8x256xf32>
    %cst_129 = arith.constant 5.000000e-01 : f32
    %280 = vector.broadcast %cst_129 : f32 to vector<8x256xf32>
    %281 = arith.mulf %280, %279 : vector<8x256xf32>
    %282 = arith.mulf %269, %281 : vector<8x256xf32>
    %c1_130 = arith.constant 1 : index
    %c0_131 = arith.constant 0 : index
    %c0_132 = arith.constant 0 : index
    %283 = vector.load %arg14[%c1_130, %c0_131, %c0_132] : memref<2x256x128xbf16, #tpu.memory_space<vmem>>, vector<1x256x128xbf16>
    %284 = vector.shape_cast %283 : vector<1x256x128xbf16> to vector<256x128xbf16>
    %285 = arith.truncf %282 : vector<8x256xf32> to vector<8x256xbf16>
    %cst_133 = arith.constant dense<0.000000e+00> : vector<8x128xf32>
    %286 = tpu.matmul %285, %284, %cst_133 {dimension_numbers = #tpu.dot_dimension_numbers<[1], [0], [0], [1], [0, 0, 1, 1], [], []>} : vector<8x256xbf16>, vector<256x128xbf16>, vector<8x128xf32> -> vector<8x128xf32>
    %287 = arith.addf %235, %286 : vector<8x128xf32>
    %c1_134 = arith.constant 1 : index
    %c0_135 = arith.constant 0 : index
    %c0_136 = arith.constant 0 : index
    %288 = vector.load %arg15[%c1_134, %c0_135, %c0_136] : memref<2x1x128xf32, #tpu.memory_space<vmem>>, vector<1x1x128xf32>
    %289 = vector.shape_cast %288 : vector<1x1x128xf32> to vector<1x128xf32>
    %290 = vector.broadcast %289 : vector<1x128xf32> to vector<8x128xf32>
    %291 = arith.addf %287, %290 : vector<8x128xf32>
    %292 = vector.extract_strided_slice %291 {offsets = [0, 0], sizes = [1, 128], strides = [1, 1]} : vector<8x128xf32> to vector<1x128xf32>
    %c0_137 = arith.constant 0 : index
    %c0_138 = arith.constant 0 : index
    %293 = vector.load %arg16[%c0_137, %c0_138] : memref<1x128xf32, #tpu.memory_space<vmem>>, vector<1x128xf32>
    %c0_139 = arith.constant 0 : index
    %c0_140 = arith.constant 0 : index
    %294 = vector.load %arg17[%c0_139, %c0_140] : memref<1x128xf32, #tpu.memory_space<vmem>>, vector<1x128xf32>
    %cst_141 = arith.constant dense<0.000000e+00> : vector<1xf32>
    %295 = vector.multi_reduction <add>, %292, %cst_141 [1] : vector<1x128xf32> to vector<1xf32>
    %296 = vector.shape_cast %295 : vector<1xf32> to vector<1x1xf32>
    %cst_142 = arith.constant 1.562500e-02 : f32
    %297 = vector.broadcast %cst_142 : f32 to vector<1x1xf32>
    %298 = arith.mulf %296, %297 : vector<1x1xf32>
    %299 = vector.broadcast %298 : vector<1x1xf32> to vector<1x128xf32>
    %300 = arith.subf %292, %299 : vector<1x128xf32>
    %301 = arith.mulf %300, %10 : vector<1x128xf32>
    %302 = arith.mulf %301, %301 : vector<1x128xf32>
    %cst_143 = arith.constant dense<0.000000e+00> : vector<1xf32>
    %303 = vector.multi_reduction <add>, %302, %cst_143 [1] : vector<1x128xf32> to vector<1xf32>
    %304 = vector.shape_cast %303 : vector<1xf32> to vector<1x1xf32>
    %cst_144 = arith.constant 1.562500e-02 : f32
    %305 = vector.broadcast %cst_144 : f32 to vector<1x1xf32>
    %306 = arith.mulf %304, %305 : vector<1x1xf32>
    %cst_145 = arith.constant 9.99999997E-7 : f32
    %307 = vector.broadcast %cst_145 : f32 to vector<1x1xf32>
    %308 = arith.addf %306, %307 : vector<1x1xf32>
    %309 = math.rsqrt %308 : vector<1x1xf32>
    %310 = vector.broadcast %309 : vector<1x1xf32> to vector<1x128xf32>
    %311 = arith.mulf %301, %310 : vector<1x128xf32>
    %312 = arith.mulf %311, %293 : vector<1x128xf32>
    %313 = arith.addf %312, %294 : vector<1x128xf32>
    %c0_146 = arith.constant 0 : index
    %c0_147 = arith.constant 0 : index
    %314 = vector.load %arg18[%c0_146, %c0_147] : memref<128x1024xbf16, #tpu.memory_space<vmem>>, vector<128x1024xbf16>
    %315 = arith.truncf %313 : vector<1x128xf32> to vector<1x128xbf16>
    %cst_148 = arith.constant dense<0.000000e+00> : vector<1x1024xf32>
    %316 = tpu.matmul %315, %314, %cst_148 {dimension_numbers = #tpu.dot_dimension_numbers<[1], [0], [0], [1], [0, 0, 1, 1], [], []>} : vector<1x128xbf16>, vector<128x1024xbf16>, vector<1x1024xf32> -> vector<1x1024xf32>
    %c0_149 = arith.constant 0 : index
    %c0_150 = arith.constant 0 : index
    %317 = vector.load %arg19[%c0_149, %c0_150] : memref<1x1024xf32, #tpu.memory_space<vmem>>, vector<1x1024xf32>
    %318 = arith.addf %316, %317 : vector<1x1024xf32>
    %c0_151 = arith.constant 0 : index
    %c0_152 = arith.constant 0 : index
    %c0_153 = arith.constant 0 : index
    %319 = vector.load %arg20[%c0_151, %c0_152, %c0_153] : memref<1x3x1024xf32, #tpu.memory_space<vmem>>, vector<1x3x1024xf32>
    %320 = vector.shape_cast %319 : vector<1x3x1024xf32> to vector<3x1024xf32>
    %321 = vector.extract_strided_slice %320 {offsets = [0, 0], sizes = [1, 1024], strides = [1, 1]} : vector<3x1024xf32> to vector<1x1024xf32>
    %322 = arith.mulf %318, %321 : vector<1x1024xf32>
    %323 = vector.extract_strided_slice %320 {offsets = [1, 0], sizes = [1, 1024], strides = [1, 1]} : vector<3x1024xf32> to vector<1x1024xf32>
    %324 = arith.mulf %318, %323 : vector<1x1024xf32>
    %325 = vector.extract_strided_slice %320 {offsets = [2, 0], sizes = [1, 1024], strides = [1, 1]} : vector<3x1024xf32> to vector<1x1024xf32>
    %326 = arith.mulf %318, %325 : vector<1x1024xf32>
    %327 = tpu.concatenate %322, %324, %326 in 1 : vector<1x1024xf32>, vector<1x1024xf32>, vector<1x1024xf32> -> vector<1x3072xf32>
    %c0_154 = arith.constant 0 : index
    %c0_155 = arith.constant 0 : index
    %328 = vector.load %arg21[%c0_154, %c0_155] : memref<3072x128xbf16, #tpu.memory_space<vmem>>, vector<3072x128xbf16>
    %329 = arith.truncf %327 : vector<1x3072xf32> to vector<1x3072xbf16>
    %cst_156 = arith.constant dense<0.000000e+00> : vector<1x128xf32>
    %330 = tpu.matmul %329, %328, %cst_156 {dimension_numbers = #tpu.dot_dimension_numbers<[1], [0], [0], [1], [0, 0, 1, 1], [], []>} : vector<1x3072xbf16>, vector<3072x128xbf16>, vector<1x128xf32> -> vector<1x128xf32>
    %c0_157 = arith.constant 0 : index
    %c0_158 = arith.constant 0 : index
    %331 = vector.load %arg22[%c0_157, %c0_158] : memref<1x128xf32, #tpu.memory_space<vmem>>, vector<1x128xf32>
    %332 = arith.addf %330, %331 : vector<1x128xf32>
    %333 = vector.shape_cast %332 : vector<1x128xf32> to vector<1x128xf32>
    %334 = vector.broadcast %333 : vector<1x128xf32> to vector<8x128xf32>
    %c0_159 = arith.constant 0 : index
    %c0_160 = arith.constant 0 : index
    %c0_161 = arith.constant 0 : index
    %335 = vector.load %arg23[%c0_159, %c0_160, %c0_161] : memref<1x8x128xf32, #tpu.memory_space<vmem>>, vector<1x8x128xf32>
    %336 = vector.shape_cast %335 : vector<1x8x128xf32> to vector<8x128xf32>
    %337 = vector.shape_cast %334 : vector<8x128xf32> to vector<1x8x128xf32>
    tpu.vector_store %arg23[%c0_159, %c0_160, %c0_161], %337 {strides = array<i32>} : memref<1x8x128xf32, #tpu.memory_space<vmem>>, vector<1x8x128xf32>,
    return
  }
  func.func @transform_0(%arg0: i32) -> (i32, i32, i32) {
    %c0_i32 = arith.constant 0 : i32
    %c0_i32_0 = arith.constant 0 : i32
    %c0_i32_1 = arith.constant 0 : i32
    return %arg0, %c0_i32, %c0_i32_0 : i32, i32, i32
  }
  func.func @transform_1(%arg0: i32) -> (i32, i32) {
    %c0_i32 = arith.constant 0 : i32
    %c0_i32_0 = arith.constant 0 : i32
    %c0_i32_1 = arith.constant 0 : i32
    return %c0_i32, %c0_i32_0 : i32, i32
  }
  func.func @transform_2(%arg0: i32) -> (i32, i32) {
    %c0_i32 = arith.constant 0 : i32
    %c0_i32_0 = arith.constant 0 : i32
    %c0_i32_1 = arith.constant 0 : i32
    return %c0_i32, %c0_i32_0 : i32, i32
  }
  func.func @transform_3(%arg0: i32) -> (i32, i32, i32) {
    %c0_i32 = arith.constant 0 : i32
    %c0_i32_0 = arith.constant 0 : i32
    %c0_i32_1 = arith.constant 0 : i32
    %c0_i32_2 = arith.constant 0 : i32
    return %c0_i32, %c0_i32_0, %c0_i32_1 : i32, i32, i32
  }
  func.func @transform_4(%arg0: i32) -> (i32, i32, i32) {
    %c0_i32 = arith.constant 0 : i32
    %c0_i32_0 = arith.constant 0 : i32
    %c0_i32_1 = arith.constant 0 : i32
    %c0_i32_2 = arith.constant 0 : i32
    return %c0_i32, %c0_i32_0, %c0_i32_1 : i32, i32, i32
  }
  func.func @transform_5(%arg0: i32) -> (i32, i32, i32) {
    %c0_i32 = arith.constant 0 : i32
    %c0_i32_0 = arith.constant 0 : i32
    %c0_i32_1 = arith.constant 0 : i32
    %c0_i32_2 = arith.constant 0 : i32
    return %c0_i32, %c0_i32_0, %c0_i32_1 : i32, i32, i32
  }
  func.func @transform_6(%arg0: i32) -> (i32, i32, i32) {
    %c0_i32 = arith.constant 0 : i32
    %c0_i32_0 = arith.constant 0 : i32
    %c0_i32_1 = arith.constant 0 : i32
    %c0_i32_2 = arith.constant 0 : i32
    return %c0_i32, %c0_i32_0, %c0_i32_1 : i32, i32, i32
  }
  func.func @transform_7(%arg0: i32) -> (i32, i32, i32) {
    %c0_i32 = arith.constant 0 : i32
    %c0_i32_0 = arith.constant 0 : i32
    %c0_i32_1 = arith.constant 0 : i32
    %c0_i32_2 = arith.constant 0 : i32
    return %c0_i32, %c0_i32_0, %c0_i32_1 : i32, i32, i32
  }
  func.func @transform_8(%arg0: i32) -> (i32, i32, i32) {
    %c0_i32 = arith.constant 0 : i32
    %c0_i32_0 = arith.constant 0 : i32
    %c0_i32_1 = arith.constant 0 : i32
    %c0_i32_2 = arith.constant 0 : i32
    return %c0_i32, %c0_i32_0, %c0_i32_1 : i32, i32, i32
  }
  func.func @transform_9(%arg0: i32) -> (i32, i32, i32) {
    %c0_i32 = arith.constant 0 : i32
    %c0_i32_0 = arith.constant 0 : i32
    %c0_i32_1 = arith.constant 0 : i32
    %c0_i32_2 = arith.constant 0 : i32
    return %c0_i32, %c0_i32_0, %c0_i32_1 : i32, i32, i32
  }
  func.func @transform_10(%arg0: i32) -> (i32, i32, i32) {
    %c0_i32 = arith.constant 0 : i32
    %c0_i32_0 = arith.constant 0 : i32
    %c0_i32_1 = arith.constant 0 : i32
    %c0_i32_2 = arith.constant 0 : i32
    return %c0_i32, %c0_i32_0, %c0_i32_1 : i32, i32, i32
  }
  func.func @transform_11(%arg0: i32) -> (i32, i32, i32) {
    %c0_i32 = arith.constant 0 : i32
    %c0_i32_0 = arith.constant 0 : i32
    %c0_i32_1 = arith.constant 0 : i32
    %c0_i32_2 = arith.constant 0 : i32
    return %c0_i32, %c0_i32_0, %c0_i32_1 : i32, i32, i32
  }
  func.func @transform_12(%arg0: i32) -> (i32, i32, i32) {
    %c0_i32 = arith.constant 0 : i32
    %c0_i32_0 = arith.constant 0 : i32
    %c0_i32_1 = arith.constant 0 : i32
    %c0_i32_2 = arith.constant 0 : i32
    return %c0_i32, %c0_i32_0, %c0_i32_1 : i32, i32, i32
  }
  func.func @transform_13(%arg0: i32) -> (i32, i32, i32) {
    %c0_i32 = arith.constant 0 : i32
    %c0_i32_0 = arith.constant 0 : i32
    %c0_i32_1 = arith.constant 0 : i32
    %c0_i32_2 = arith.constant 0 : i32
    return %c0_i32, %c0_i32_0, %c0_i32_1 : i32, i32, i32
  }
  func.func @transform_14(%arg0: i32) -> (i32, i32, i32) {
    %c0_i32 = arith.constant 0 : i32
    %c0_i32_0 = arith.constant 0 : i32
    %c0_i32_1 = arith.constant 0 : i32
    %c0_i32_2 = arith.constant 0 : i32
    return %c0_i32, %c0_i32_0, %c0_i32_1 : i32, i32, i32
  }
  func.func @transform_15(%arg0: i32) -> (i32, i32) {
    %c0_i32 = arith.constant 0 : i32
    %c0_i32_0 = arith.constant 0 : i32
    %c0_i32_1 = arith.constant 0 : i32
    return %c0_i32, %c0_i32_0 : i32, i32
  }
  func.func @transform_16(%arg0: i32) -> (i32, i32) {
    %c0_i32 = arith.constant 0 : i32
    %c0_i32_0 = arith.constant 0 : i32
    %c0_i32_1 = arith.constant 0 : i32
    return %c0_i32, %c0_i32_0 : i32, i32
  }
  func.func @transform_17(%arg0: i32) -> (i32, i32) {
    %c0_i32 = arith.constant 0 : i32
    %c0_i32_0 = arith.constant 0 : i32
    %c0_i32_1 = arith.constant 0 : i32
    return %c0_i32, %c0_i32_0 : i32, i32
  }
  func.func @transform_18(%arg0: i32) -> (i32, i32) {
    %c0_i32 = arith.constant 0 : i32
    %c0_i32_0 = arith.constant 0 : i32
    %c0_i32_1 = arith.constant 0 : i32
    return %c0_i32, %c0_i32_0 : i32, i32
  }
  func.func @transform_19(%arg0: i32) -> (i32, i32, i32) {
    %c0_i32 = arith.constant 0 : i32
    %c0_i32_0 = arith.constant 0 : i32
    %c0_i32_1 = arith.constant 0 : i32
    return %arg0, %c0_i32, %c0_i32_0 : i32, i32, i32
  }
  func.func @transform_20(%arg0: i32) -> (i32, i32) {
    %c0_i32 = arith.constant 0 : i32
    %c0_i32_0 = arith.constant 0 : i32
    %c0_i32_1 = arith.constant 0 : i32
    return %c0_i32, %c0_i32_0 : i32, i32
  }
  func.func @transform_21(%arg0: i32) -> (i32, i32) {
    %c0_i32 = arith.constant 0 : i32
    %c0_i32_0 = arith.constant 0 : i32
    %c0_i32_1 = arith.constant 0 : i32
    return %c0_i32, %c0_i32_0 : i32, i32
  }
  func.func @transform_22(%arg0: i32) -> (i32, i32, i32) {
    %c0_i32 = arith.constant 0 : i32
    %c0_i32_0 = arith.constant 0 : i32
    %c0_i32_1 = arith.constant 0 : i32
    return %arg0, %c0_i32, %c0_i32_0 : i32, i32, i32
  }
}

</mosaic_0001>

<bundles_post_ra>
// kernel: tpu_custom_call.1
= control target key start
LH: loop header
LB: loop body
LE: loop exit
PB: predicated region body
PF: predicated region fallthrough
CT: control target
= control target key end

     0   :  { %s9977_s0 = inlined_call_operand.hbm [shape: bf16[2,8,768], index: 0, kind: input, shape index: {}]   ;;  %s9978_s1 = inlined_call_operand.hbm [shape: f32[8,128], index: 1, kind: input, shape index: {}]   ;;  %s9979_s2 = inlined_call_operand.hbm [shape: bf16[768,128], index: 2, kind: input, shape index: {}]   ;;  %s9980_s3 = inlined_call_operand.hbm [shape: f32[2,1,128], index: 3, kind: input, shape index: {}]   ;;  %s9981_s4 = inlined_call_operand.hbm [shape: f32[2,1,128], index: 4, kind: input, shape index: {}]   ;;  %s9982_s5 = inlined_call_operand.hbm [shape: bf16[2,128,384], index: 5, kind: input, shape index: {}]   ;;  %s9983_s6 = inlined_call_operand.vmem [shape: f32[2,1,384], index: 6, kind: input, shape index: {}]   ;;  %s9984_s7 = inlined_call_operand.vmem [shape: bf16[2,128,128], index: 7, kind: input, shape index: {}]   ;;  %s9985_s8 = inlined_call_operand.hbm [shape: f32[2,1,128], index: 8, kind: input, shape index: {}]   ;;  %s9986_s9 = inlined_call_operand.hbm [shape: f32[2,1,128], index: 9, kind: input, shape index: {}]   ;;  %s9987_s10 = inlined_call_operand.hbm [shape: f32[2,1,128], index: 10, kind: input, shape index: {}]   ;;  %s9988_s11 = inlined_call_operand.hbm [shape: bf16[2,128,256], index: 11, kind: input, shape index: {}]   ;;  %s9989_s12 = inlined_call_operand.hbm [shape: f32[2,1,256], index: 12, kind: input, shape index: {}]   ;;  %s9990_s13 = inlined_call_operand.hbm [shape: bf16[2,256,128], index: 13, kind: input, shape index: {}]   ;;  %s9991_s14 = inlined_call_operand.hbm [shape: f32[2,1,128], index: 14, kind: input, shape index: {}]   ;;  %s9992_s15 = inlined_call_operand.vmem [shape: f32[1,128], index: 15, kind: input, shape index: {}]   ;;  %s9993_s16 = inlined_call_operand.hbm [shape: f32[1,128], index: 16, kind: input, shape index: {}]   ;;  %s9994_s17 = inlined_call_operand.hbm [shape: bf16[128,1024], index: 17, kind: input, shape index: {}]   ;;  %s9995_s18 = inlined_call_operand.hbm [shape: f32[1,1024], index: 18, kind: input, shape index: {}]   ;;  %s9996_s19 = inlined_call_operand.vmem [shape: f32[2,3,1024], index: 19, kind: input, shape index: {}]   ;;  %s9997_s20 = inlined_call_operand.hbm [shape: bf16[3072,128], index: 20, kind: input, shape index: {}]   ;;  %s9998_s21 = inlined_call_operand.vmem [shape: f32[1,128], index: 21, kind: input, shape index: {}]   ;;  %s9999_s22 = inlined_call_operand.hbm [shape: f32[2,8,128], index: 22, kind: output, shape index: {}]  }
   0x1   :  { %10028 = sst [smem:[#allocation45_spill]] %s9977_s0 }
   0x2   :  { %10029 = sst [smem:[#allocation46_spill]] %s9978_s1 }
   0x3   :  { %10030 = sst [smem:[#allocation47_spill]] %s9979_s2 }
   0x4   :  { %10031 = sst [smem:[#allocation48_spill]] %s9980_s3 }
   0x5   :  { %10032 = sst [smem:[#allocation49_spill]] %s9981_s4 }
   0x6   :  { %10033 = sst [smem:[#allocation50_spill]] %s9982_s5 }
   0x7   :  { %10034 = sst [smem:[#allocation51_spill]] %s9983_s6 }
   0x8   :  { %10035 = sst [smem:[#allocation52_spill]] %s9984_s7 }
   0x9   :  { %10036 = sst [smem:[#allocation53_spill]] %s9986_s9 }
   0xa   :  { %10037 = sst [smem:[#allocation54_spill]] %s9988_s11 }
   0xb   :  { %10038 = sst [smem:[#allocation55_spill]] %s9992_s15 }
   0xc   :  { %10039 = sst [smem:[#allocation56_spill]] %s9996_s19 }
   0xd   :  { %10040 = sst [smem:[#allocation57_spill]] %s9998_s21 }
   0xe   :  { %10041 = sst [smem:[#allocation58_spill]] %s9999_s22 }
   0xf   :  { %27 = vsyncpa [#allocation3], 0 }
  0x10   :  { %29 = vsyncpa [#allocation3 + $0x1], 0 }
  0x11   :  { %30 = vsyncpa [#allocation6], 0 }
  0x12   :  { %31 = vsyncpa [#allocation9], 0 }
  0x13   :  { %32 = vsyncpa [#allocation12], 0 }
  0x14   :  { %33 = vsyncpa [#allocation15], 0 }
  0x15   :  { %34 = vsyncpa [#allocation18], 0 }
  0x16   :  { %35 = vsyncpa [#allocation21], 0 }
  0x17   :  { %36 = vsyncpa [#allocation24], 0 }
  0x18   :  { %37 = vsyncpa [#allocation27], 0 }
  0x19   :  { %38 = vsyncpa [#allocation4], 0 }
  0x1a   :  { %40 = vsyncpa [#allocation4 + $0x1], 0  ;;  %s9029_s3 = smov 0   ;;  %s9031_s28 = smov 0  }
  0x1b   :  { %s9033_s29 = smov 0   ;;  %s9035_s30 = smov 0  }
  0x1c LB: > { %10042 = sst [smem:[#allocation40_spill]] %s8867_s3  ;;  %s8881_s4 = smov [#allocation5]   ;;  %s8879_s30 = sphi %s9035_s30, %s10104_s30   ;;  %s8875_s29 = sphi %s9033_s29, %s10103_s29   ;;  %s8871_s28 = sphi %s9031_s28, %s10102_s28   ;;  %s8867_s3 = sphi %s9029_s3, %s10101_s3  }
  0x1d   : > { %10043 = sst [smem:[#allocation41_spill]] %s8871_s28  ;;  %s562_s0 = sshll.u32 %s8881_s4, 4  ;;  %s563_s0 = int_to_ptr.vmem [resolvable:$true] %s562_s0 }
  0x1e   : > { %10044 = sst [smem:[#allocation42_spill]] %s8875_s29  ;;  %s9050_s23 = sadd.s32 4294967295, %s8879_s30  }
  0x1f   : > { %10045 = sst [smem:[#allocation43_spill]] %s9050_s23  ;;  %p6564_p0 = scmp.ge.s32.totalorder %s8879_s30, 1 }
  0x20   : > { %p10008_p1 = scmp.eq.s32.totalorder %s9050_s23, 0  ;;  %p549_p2 = scmp.lt.s32.totalorder %s8879_s30, 3 }
  0x21   : > { %s8882_s5 = smov [#allocation8]   ;;  %s8883_s25 = smov [#allocation11]  }
  0x22   : > { %p9055_p3 = pnand %p6564_p0, %p549_p2  ;;  %s585_s24 = sshll.u32 %s8882_s5, 4  ;;  %s9062_s24 = int_to_ptr.vmem [resolvable:$true] %s585_s24 }
  0x23   : > { %s611_s26 = sshll.u32 %s8883_s25, 4  ;;  %s10049_s4 = sld [smem:[#allocation46_spill]]  ;;  %s9070_s26 = int_to_ptr.vmem [resolvable:$true] %s611_s26 }
  0x24   : > { %s10046_s1 = scalar_select %p9055_p3, 1, 0 }
  0x25   : > { %p7709_p5 = pneg %p9055_p3 }
  0x26   : > { %10047 = sst [smem:[#allocation44_spill]] %s10046_s1 }
  0x27   : > { %p9066_p6 = pnand %p7709_p5, %p10008_p1 }
  0x29   : > { %s8303_s22 = scalar_lea.hbm %s10049_s4, 128  ;;  %p9080_p8 = pneg %p9066_p6 }
  0x2a   : > { %p8304_p7 = scmp.ne.s32.totalorder %s10049_s4, %s8303_s22  ;;  %p8310_p11 = scmp.lt.u32.totalorder %s8303_s22, %s10049_s4 }
  0x2c   : > { %p8306_p9 = pnand %p9080_p8, %p8304_p7 }
  0x2e   : > { %p8307_p10 = pneg %p8306_p9 }
  0x30   : > { %p8312_p12 = pnand %p8310_p11, %p8307_p10 }
  0x32   : > { %8315 = shalt.err (!%p8312_p12)
}
  0x33   : > { %s8316_s2 = scalar_lea.vmem %s563_s0, 128  ;;  %p8324_p5 = scmp.lt.s32.totalorder %s563_s0, %s563_s0 }
  0x34   : > { %p8317_p13 = scmp.ne.s32.totalorder %s563_s0, %s8316_s2  ;;  %p8325_p4 = scmp.lt.s32.totalorder %s8316_s2, %s8316_s2 }
  0x36   : > { %p8319_p0 = pnand %p8317_p13, %p9080_p8  ;;  %p8326_p1 = por %p8325_p4, %p8324_p5 }
  0x38   : > { %p8320_p2 = pneg %p8319_p0 }
  0x3a   : > { %p8327_p3 = pnand %p8326_p1, %p8320_p2 }
  0x3c   : > { %8330 = shalt.err (!%p8327_p3)
}
  0x3d   : > { %7712 = dma.hbm_to_vmem [thread:$0]  (!%p9066_p6), %s10049_s4, 128, %s563_s0, [#allocation6]  }
  0x3e   : > { %s10051_s27 = sld [smem:[#allocation48_spill]] }
  0x44   : > { %s8331_s25 = scalar_lea.hbm %s10051_s27, 32 }
  0x45   : > { %p8332_p7 = scmp.ne.s32.totalorder %s10051_s27, %s8331_s25  ;;  %p8338_p1 = scmp.lt.u32.totalorder %s8331_s25, %s10051_s27 }
  0x47   : > { %p8334_p9 = pnand %p8332_p7, %p9080_p8 }
  0x49   : > { %p8335_p4 = pneg %p8334_p9 }
  0x4b   : > { %p8340_p3 = pnand %p8338_p1, %p8335_p4 }
  0x4d   : > { %8343 = shalt.err (!%p8340_p3)
}
  0x4e   : > { %s8344_s0 = scalar_lea.vmem %s9062_s24, 32  ;;  %p8352_p13 = scmp.lt.s32.totalorder %s9062_s24, %s9062_s24 }
  0x4f   : > { %p8345_p10 = scmp.ne.s32.totalorder %s9062_s24, %s8344_s0  ;;  %p8353_p0 = scmp.lt.s32.totalorder %s8344_s0, %s8344_s0 }
  0x51   : > { %p8347_p11 = pnand %p8345_p10, %p9080_p8  ;;  %p8354_p2 = por %p8353_p0, %p8352_p13 }
  0x53   : > { %p8348_p12 = pneg %p8347_p11 }
  0x55   : > { %p8355_p5 = pnand %p8354_p2, %p8348_p12 }
  0x57   : > { %8358 = shalt.err (!%p8355_p5)
}
  0x58   : > { %s10016_s7 = smov 16   ;;  %s10018_s23 = smov 1  }
  0x59   : > { %7718 = dma.hbm_to_vmem [thread:$0]  (!%p9066_p6), %s10051_s27, 32, %s9062_s24, [#allocation9], %s10016_s7, %s10016_s7, %s10018_s23  }
  0x5a   : > { %s10052_s22 = sld [smem:[#allocation50_spill]] }
  0x60   : > { %s8359_s25 = scalar_lea.hbm %s10052_s22, 6144 }
  0x61   : > { %p8360_p7 = scmp.ne.s32.totalorder %s10052_s22, %s8359_s25  ;;  %p8366_p1 = scmp.lt.u32.totalorder %s8359_s25, %s10052_s22 }
  0x63   : > { %p8362_p9 = pnand %p8360_p7, %p9080_p8 }
  0x65   : > { %p8363_p4 = pneg %p8362_p9 }
  0x67   : > { %p8368_p3 = pnand %p8366_p1, %p8363_p4 }
  0x69   : > { %8371 = shalt.err (!%p8368_p3)
}
  0x6a   : > { %s8372_s24 = scalar_lea.vmem %s9070_s26, 6144  ;;  %p8380_p13 = scmp.lt.s32.totalorder %s9070_s26, %s9070_s26 }
  0x6b   : > { %p8373_p10 = scmp.ne.s32.totalorder %s9070_s26, %s8372_s24  ;;  %p8381_p0 = scmp.lt.s32.totalorder %s8372_s24, %s8372_s24 }
  0x6d   : > { %p8375_p11 = pnand %p8373_p10, %p9080_p8  ;;  %p8382_p2 = por %p8381_p0, %p8380_p13 }
  0x6f   : > { %p8376_p12 = pneg %p8375_p11 }
  0x71   : > { %p8383_p5 = pnand %p8382_p2, %p8376_p12 }
  0x73   : > { %8386 = shalt.err (!%p8383_p5)
}
  0x74   : > { %s8886_s1 = smov 192   ;;  %s8887_s3 = smov 12  }
  0x75   : > { %7724 = dma.hbm_to_vmem [thread:$0]  (!%p9066_p6), %s10052_s22, 6144, %s9070_s26, [#allocation12], %s8886_s1, %s8886_s1, %s8887_s3  }
  0x76   : > { %s8888_s21 = smov [#allocation14]   ;;  %s8889_s25 = smov [#allocation17]  }
  0x77   : > { %s643_s15 = sshll.u32 %s8888_s21, 4  ;;  %s669_s2 = sshll.u32 %s8889_s25, 4  ;;  %s644_s15 = int_to_ptr.vmem [resolvable:$true] %s643_s15  ;;  %s670_s2 = int_to_ptr.vmem [resolvable:$true] %s669_s2 }
  0x78   : > { %s10053_s9 = sld [smem:[#allocation53_spill]] }
  0x7e   : > { %s8387_s7 = scalar_lea.hbm %s10053_s9, 32 }
  0x7f   : > { %p8388_p7 = scmp.ne.s32.totalorder %s10053_s9, %s8387_s7  ;;  %p8394_p1 = scmp.lt.u32.totalorder %s8387_s7, %s10053_s9 }
  0x81   : > { %p8390_p9 = pnand %p8388_p7, %p9080_p8 }
  0x83   : > { %p8391_p4 = pneg %p8390_p9 }
  0x85   : > { %p8396_p3 = pnand %p8394_p1, %p8391_p4 }
  0x87   : > { %8399 = shalt.err (!%p8396_p3)
}
  0x88   : > { %s8400_s26 = scalar_lea.vmem %s644_s15, 32  ;;  %p8408_p13 = scmp.lt.s32.totalorder %s644_s15, %s644_s15 }
  0x89   : > { %p8401_p10 = scmp.ne.s32.totalorder %s644_s15, %s8400_s26  ;;  %p8409_p0 = scmp.lt.s32.totalorder %s8400_s26, %s8400_s26 }
  0x8b   : > { %p8403_p11 = pnand %p8401_p10, %p9080_p8  ;;  %p8410_p2 = por %p8409_p0, %p8408_p13 }
  0x8d   : > { %p8404_p12 = pneg %p8403_p11 }
  0x8f   : > { %p8411_p5 = pnand %p8410_p2, %p8404_p12 }
  0x91   : > { %8414 = shalt.err (!%p8411_p5)
}
  0x92   : > { %s10054_s27 = smov 1   ;;  %s10055_s23 = smov 16  }
  0x93   : > { %7730 = dma.hbm_to_vmem [thread:$0]  (!%p9066_p6), %s10053_s9, 32, %s644_s15, [#allocation15], %s10055_s23, %s10055_s23, %s10054_s27  }
  0x94   : > { %s10056_s11 = sld [smem:[#allocation54_spill]] }
  0x9a   : > { %s8415_s3 = scalar_lea.hbm %s10056_s11, 4096 }
  0x9b   : > { %p8416_p7 = scmp.ne.s32.totalorder %s10056_s11, %s8415_s3  ;;  %p8422_p1 = scmp.lt.u32.totalorder %s8415_s3, %s10056_s11 }
  0x9d   : > { %p8418_p9 = pnand %p8416_p7, %p9080_p8 }
  0x9f   : > { %p8419_p4 = pneg %p8418_p9 }
  0xa1   : > { %p8424_p3 = pnand %p8422_p1, %p8419_p4 }
  0xa3   : > { %8427 = shalt.err (!%p8424_p3)
}
  0xa4   : > { %s8428_s0 = scalar_lea.vmem %s670_s2, 4096  ;;  %p8436_p13 = scmp.lt.s32.totalorder %s670_s2, %s670_s2 }
  0xa5   : > { %p8429_p10 = scmp.ne.s32.totalorder %s670_s2, %s8428_s0  ;;  %p8437_p0 = scmp.lt.s32.totalorder %s8428_s0, %s8428_s0 }
  0xa7   : > { %p8431_p11 = pnand %p8429_p10, %p9080_p8  ;;  %p8438_p2 = por %p8437_p0, %p8436_p13 }
  0xa9   : > { %p8432_p12 = pneg %p8431_p11 }
  0xab   : > { %p8439_p5 = pnand %p8438_p2, %p8432_p12 }
  0xad   : > { %8442 = shalt.err (!%p8439_p5)
}
  0xae   : > { %s8890_s15 = smov 128   ;;  %s8891_s24 = smov 8  }
  0xaf   : > { %7736 = dma.hbm_to_vmem [thread:$0]  (!%p9066_p6), %s10056_s11, 4096, %s670_s2, [#allocation18], %s8890_s15, %s8890_s15, %s8891_s24  }
  0xb0   : > { %s8892_s29 = smov [#allocation20]   ;;  %s8893_s1 = smov [#allocation23]  }
  0xb1   : > { %s695_s7 = sshll.u32 %s8892_s29, 4  ;;  %s725_s3 = sshll.u32 %s8893_s1, 4  ;;  %s696_s7 = int_to_ptr.vmem [resolvable:$true] %s695_s7  ;;  %s726_s3 = int_to_ptr.vmem [resolvable:$true] %s725_s3 }
  0xb2   : > { %s8443_s21 = scalar_lea.hbm %s9990_s13, 4096 }
  0xb3   : > { %p8444_p7 = scmp.ne.s32.totalorder %s9990_s13, %s8443_s21  ;;  %p8450_p1 = scmp.lt.u32.totalorder %s8443_s21, %s9990_s13 }
  0xb5   : > { %p8446_p9 = pnand %p8444_p7, %p9080_p8 }
  0xb7   : > { %p8447_p4 = pneg %p8446_p9 }
  0xb9   : > { %p8452_p3 = pnand %p8450_p1, %p8447_p4 }
  0xbb   : > { %8455 = shalt.err (!%p8452_p3)
}
  0xbc   : > { %s8456_s2 = scalar_lea.vmem %s696_s7, 4096  ;;  %p8464_p13 = scmp.lt.s32.totalorder %s696_s7, %s696_s7 }
  0xbd   : > { %p8457_p10 = scmp.ne.s32.totalorder %s696_s7, %s8456_s2  ;;  %p8465_p0 = scmp.lt.s32.totalorder %s8456_s2, %s8456_s2 }
  0xbf   : > { %p8459_p11 = pnand %p8457_p10, %p9080_p8  ;;  %p8466_p2 = por %p8465_p0, %p8464_p13 }
  0xc1   : > { %p8460_p12 = pneg %p8459_p11 }
  0xc3   : > { %p8467_p5 = pnand %p8466_p2, %p8460_p12 }
  0xc5   : > { %8470 = shalt.err (!%p8467_p5)
}
  0xc6   : > { %s10024_s15 = smov 64   ;;  %s10025_s24 = smov 4  }
  0xc7   : > { %7742 = dma.hbm_to_vmem [thread:$0]  (!%p9066_p6), %s9990_s13, 4096, %s696_s7, [#allocation21], %s10024_s15, %s10024_s15, %s10025_s24  }
  0xc8   : > { %s8471_s29 = scalar_lea.hbm %s9993_s16, 16 }
  0xc9   : > { %p8472_p7 = scmp.ne.s32.totalorder %s9993_s16, %s8471_s29  ;;  %p8478_p1 = scmp.lt.u32.totalorder %s8471_s29, %s9993_s16 }
  0xcb   : > { %p8474_p9 = pnand %p8472_p7, %p9080_p8 }
  0xcd   : > { %p8475_p4 = pneg %p8474_p9 }
  0xcf   : > { %p8480_p3 = pnand %p8478_p1, %p8475_p4 }
  0xd1   : > { %8483 = shalt.err (!%p8480_p3)
}
  0xd2   : > { %s8484_s25 = scalar_lea.vmem %s726_s3, 16  ;;  %s8491_s7 = scalar_lea.vmem %s726_s3, 32 }
  0xd3   : > { %p8485_p10 = scmp.ne.s32.totalorder %s726_s3, %s8484_s25  ;;  %p8492_p13 = scmp.lt.s32.totalorder %s726_s3, %s726_s3 }
  0xd4   : > { %p8493_p0 = scmp.lt.s32.totalorder %s8491_s7, %s8484_s25 }
  0xd5   : > { %p8487_p11 = pnand %p8485_p10, %p9080_p8 }
  0xd6   : > { %p8494_p2 = por %p8493_p0, %p8492_p13 }
  0xd7   : > { %p8488_p12 = pneg %p8487_p11 }
  0xd9   : > { %p8495_p5 = pnand %p8494_p2, %p8488_p12 }
  0xdb   : > { %8498 = shalt.err (!%p8495_p5)
}
  0xdc   : > { %7748 = dma.hbm_to_vmem [thread:$0]  (!%p9066_p6), %s9993_s16, 16, %s726_s3, [#allocation24]  }
  0xdd   : > { %s8896_s9 = smov [#allocation26]   ;;  %s8897_s26 = smov [#allocation7]  }
  0xde   : > { %s749_s22 = sshll.u32 %s8896_s9, 4  ;;  %s572_s28 = sshll.u32 %s8897_s26, 4  ;;  %s750_s22 = int_to_ptr.vmem [resolvable:$true] %s749_s22  ;;  %s573_s28 = int_to_ptr.vmem [resolvable:$true] %s572_s28 }
  0xdf   : > { %s8499_s4 = scalar_lea.hbm %s9995_s18, 128 }
  0xe0   : > { %p8500_p7 = scmp.ne.s32.totalorder %s9995_s18, %s8499_s4  ;;  %p8506_p1 = scmp.lt.u32.totalorder %s8499_s4, %s9995_s18 }
  0xe2   : > { %p8502_p9 = pnand %p8500_p7, %p9080_p8 }
  0xe4   : > { %p8503_p4 = pneg %p8502_p9 }
  0xe6   : > { %p8508_p3 = pnand %p8506_p1, %p8503_p4 }
  0xe8   : > { %8511 = shalt.err (!%p8508_p3)
}
  0xe9   : > { %s8512_s3 = scalar_lea.vmem %s750_s22, 128  ;;  %p8520_p13 = scmp.lt.s32.totalorder %s750_s22, %s750_s22 }
  0xea   : > { %p8513_p10 = scmp.ne.s32.totalorder %s750_s22, %s8512_s3  ;;  %p8521_p0 = scmp.lt.s32.totalorder %s8512_s3, %s8512_s3 }
  0xec   : > { %p8515_p11 = pnand %p8513_p10, %p9080_p8  ;;  %p8522_p2 = por %p8521_p0, %p8520_p13 }
  0xee   : > { %p8516_p12 = pneg %p8515_p11 }
  0xf0   : > { %p8523_p5 = pnand %p8522_p2, %p8516_p12 }
  0xf2   : > { %8526 = shalt.err (!%p8523_p5)
}
  0xf3   : > { %7754 = dma.hbm_to_vmem [thread:$0]  (!%p9066_p6), %s9995_s18, 128, %s750_s22, [#allocation27]  }
  0xf4   : > { %s10057_s29 = sld [smem:[#allocation47_spill]] }
  0xfa   : > { %s10058_s1 = smov %s10057_s29  ;;  %s8527_s4 = scalar_lea.hbm %s10057_s29, 6144 }
  0xfb   : > { %p8528_p7 = scmp.ne.s32.totalorder %s10058_s1, %s8527_s4  ;;  %p8534_p1 = scmp.lt.u32.totalorder %s8527_s4, %s10058_s1 }
  0xfd   : > { %p8530_p9 = pnand %p8528_p7, %p9080_p8 }
  0xff   : > { %p8531_p4 = pneg %p8530_p9 }
 0x101   : > { %p8536_p3 = pnand %p8534_p1, %p8531_p4 }
 0x103   : > { %8539 = shalt.err (!%p8536_p3)
}
 0x104   : > { %s8540_s3 = scalar_lea.vmem %s573_s28, 6144  ;;  %p8548_p13 = scmp.lt.s32.totalorder %s573_s28, %s573_s28 }
 0x105   : > { %p8541_p10 = scmp.ne.s32.totalorder %s573_s28, %s8540_s3  ;;  %p8549_p0 = scmp.lt.s32.totalorder %s8540_s3, %s8540_s3 }
 0x107   : > { %p8543_p11 = pnand %p8541_p10, %p9080_p8  ;;  %p8550_p2 = por %p8549_p0, %p8548_p13 }
 0x109   : > { %p8544_p12 = pneg %p8543_p11 }
 0x10b   : > { %p8551_p5 = pnand %p8550_p2, %p8544_p12 }
 0x10d   : > { %8554 = shalt.err (!%p8551_p5)
}
 0x10e   : > { %7715 = dma.hbm_to_vmem [thread:$0]  (!%p9066_p6), %s10058_s1, 6144, %s573_s28, [#allocation6], %s10024_s15, %s10024_s15, %s10025_s24  }
 0x10f   : > { %s8898_s2 = smov [#allocation10]   ;;  %s8899_s26 = smov [#allocation13]  }
 0x110   : > { %s598_s9 = sshll.u32 %s8898_s2, 4  ;;  %s630_s29 = sshll.u32 %s8899_s26, 4  ;;  %s599_s9 = int_to_ptr.vmem [resolvable:$true] %s598_s9  ;;  %s631_s29 = int_to_ptr.vmem [resolvable:$true] %s630_s29 }
 0x111   : > { %s10059_s21 = sld [smem:[#allocation49_spill]] }
 0x117   : > { %s8555_s25 = scalar_lea.hbm %s10059_s21, 32 }
 0x118   : > { %p8556_p7 = scmp.ne.s32.totalorder %s10059_s21, %s8555_s25  ;;  %p8562_p1 = scmp.lt.u32.totalorder %s8555_s25, %s10059_s21 }
 0x11a   : > { %p8558_p9 = pnand %p8556_p7, %p9080_p8 }
 0x11c   : > { %p8559_p4 = pneg %p8558_p9 }
 0x11e   : > { %p8564_p3 = pnand %p8562_p1, %p8559_p4 }
 0x120   : > { %8567 = shalt.err (!%p8564_p3)
}
 0x121   : > { %s8568_s28 = scalar_lea.vmem %s599_s9, 32  ;;  %p8576_p13 = scmp.lt.s32.totalorder %s599_s9, %s599_s9 }
 0x122   : > { %p8569_p10 = scmp.ne.s32.totalorder %s599_s9, %s8568_s28  ;;  %p8577_p0 = scmp.lt.s32.totalorder %s8568_s28, %s8568_s28 }
 0x124   : > { %p8571_p11 = pnand %p8569_p10, %p9080_p8  ;;  %p8578_p2 = por %p8577_p0, %p8576_p13 }
 0x126   : > { %p8572_p12 = pneg %p8571_p11 }
 0x128   : > { %p8579_p5 = pnand %p8578_p2, %p8572_p12 }
 0x12a   : > { %8582 = shalt.err (!%p8579_p5)
}
 0x12b   : > { %7721 = dma.hbm_to_vmem [thread:$0]  (!%p9066_p6), %s10059_s21, 32, %s599_s9, [#allocation9], %s10055_s23, %s10055_s23, %s10054_s27  }
 0x12c   : > { %s8583_s4 = scalar_lea.hbm %s9985_s8, 32 }
 0x12d   : > { %p8584_p7 = scmp.ne.s32.totalorder %s9985_s8, %s8583_s4  ;;  %p8590_p1 = scmp.lt.u32.totalorder %s8583_s4, %s9985_s8 }
 0x12f   : > { %p8586_p9 = pnand %p8584_p7, %p9080_p8 }
 0x131   : > { %p8587_p4 = pneg %p8586_p9 }
 0x133   : > { %p8592_p3 = pnand %p8590_p1, %p8587_p4 }
 0x135   : > { %8595 = shalt.err (!%p8592_p3)
}
 0x136   : > { %s8596_s22 = scalar_lea.vmem %s631_s29, 32  ;;  %p8604_p13 = scmp.lt.s32.totalorder %s631_s29, %s631_s29 }
 0x137   : > { %p8597_p10 = scmp.ne.s32.totalorder %s631_s29, %s8596_s22  ;;  %p8605_p0 = scmp.lt.s32.totalorder %s8596_s22, %s8596_s22 }
 0x139   : > { %p8599_p11 = pnand %p8597_p10, %p9080_p8  ;;  %p8606_p2 = por %p8605_p0, %p8604_p13 }
 0x13b   : > { %p8600_p12 = pneg %p8599_p11 }
 0x13d   : > { %p8607_p5 = pnand %p8606_p2, %p8600_p12 }
 0x13f   : > { %8610 = shalt.err (!%p8607_p5)
}
 0x140   : > { %7727 = dma.hbm_to_vmem [thread:$0]  (!%p9066_p6), %s9985_s8, 32, %s631_s29, [#allocation12], %s10055_s23, %s10055_s23, %s10054_s27  }
 0x141   : > { %s8900_s11 = smov [#allocation16]   ;;  %s8901_s2 = smov [#allocation19]  }
 0x142   : > { %s656_s0 = sshll.u32 %s8900_s11, 4  ;;  %s682_s26 = sshll.u32 %s8901_s2, 4  ;;  %s657_s0 = int_to_ptr.vmem [resolvable:$true] %s656_s0  ;;  %s683_s26 = int_to_ptr.vmem [resolvable:$true] %s682_s26 }
 0x143   : > { %s8611_s25 = scalar_lea.hbm %s9987_s10, 32 }
 0x144   : > { %p8612_p7 = scmp.ne.s32.totalorder %s9987_s10, %s8611_s25  ;;  %p8618_p1 = scmp.lt.u32.totalorder %s8611_s25, %s9987_s10 }
 0x146   : > { %p8614_p9 = pnand %p8612_p7, %p9080_p8 }
 0x148   : > { %p8615_p4 = pneg %p8614_p9 }
 0x14a   : > { %p8620_p3 = pnand %p8618_p1, %p8615_p4 }
 0x14c   : > { %8623 = shalt.err (!%p8620_p3)
}
 0x14d   : > { %s8624_s29 = scalar_lea.vmem %s657_s0, 32  ;;  %p8632_p13 = scmp.lt.s32.totalorder %s657_s0, %s657_s0 }
 0x14e   : > { %p8625_p10 = scmp.ne.s32.totalorder %s657_s0, %s8624_s29  ;;  %p8633_p0 = scmp.lt.s32.totalorder %s8624_s29, %s8624_s29 }
 0x150   : > { %p8627_p11 = pnand %p8625_p10, %p9080_p8  ;;  %p8634_p2 = por %p8633_p0, %p8632_p13 }
 0x152   : > { %p8628_p12 = pneg %p8627_p11 }
 0x154   : > { %p8635_p5 = pnand %p8634_p2, %p8628_p12 }
 0x156   : > { %8638 = shalt.err (!%p8635_p5)
}
 0x157   : > { %7733 = dma.hbm_to_vmem [thread:$0]  (!%p9066_p6), %s9987_s10, 32, %s657_s0, [#allocation15], %s10055_s23, %s10055_s23, %s10054_s27  }
 0x158   : > { %s8639_s19 = scalar_lea.hbm %s9989_s12, 64 }
 0x159   : > { %p8640_p7 = scmp.ne.s32.totalorder %s9989_s12, %s8639_s19  ;;  %p8646_p1 = scmp.lt.u32.totalorder %s8639_s19, %s9989_s12 }
 0x15b   : > { %p8642_p9 = pnand %p8640_p7, %p9080_p8 }
 0x15d   : > { %p8643_p4 = pneg %p8642_p9 }
 0x15f   : > { %p8648_p3 = pnand %p8646_p1, %p8643_p4 }
 0x161   : > { %8651 = shalt.err (!%p8648_p3)
}
 0x162   : > { %s8652_s9 = scalar_lea.vmem %s683_s26, 64  ;;  %p8660_p13 = scmp.lt.s32.totalorder %s683_s26, %s683_s26 }
 0x163   : > { %p8653_p10 = scmp.ne.s32.totalorder %s683_s26, %s8652_s9  ;;  %p8661_p0 = scmp.lt.s32.totalorder %s8652_s9, %s8652_s9 }
 0x165   : > { %p8655_p11 = pnand %p8653_p10, %p9080_p8  ;;  %p8662_p2 = por %p8661_p0, %p8660_p13 }
 0x167   : > { %p8656_p12 = pneg %p8655_p11 }
 0x169   : > { %p8663_p5 = pnand %p8662_p2, %p8656_p12 }
 0x16b   : > { %8666 = shalt.err (!%p8663_p5)
}
 0x16c   : > { %s8902_s0 = smov 32   ;;  %s8903_s29 = smov 2  }
 0x16d   : > { %7739 = dma.hbm_to_vmem [thread:$0]  (!%p9066_p6), %s9989_s12, 64, %s683_s26, [#allocation18], %s8902_s0, %s8902_s0, %s8903_s29  }
 0x16e   : > { %s8904_s2 = smov [#allocation22]   ;;  %s8905_s19 = smov [#allocation25]  }
 0x16f   : > { %s708_s4 = sshll.u32 %s8904_s2, 4  ;;  %s735_s25 = sshll.u32 %s8905_s19, 4  ;;  %s709_s4 = int_to_ptr.vmem [resolvable:$true] %s708_s4  ;;  %s736_s25 = int_to_ptr.vmem [resolvable:$true] %s735_s25 }
 0x170   : > { %s8667_s22 = scalar_lea.hbm %s9991_s14, 32 }
 0x171   : > { %p8668_p7 = scmp.ne.s32.totalorder %s9991_s14, %s8667_s22  ;;  %p8674_p1 = scmp.lt.u32.totalorder %s8667_s22, %s9991_s14 }
 0x173   : > { %p8670_p9 = pnand %p8668_p7, %p9080_p8 }
 0x175   : > { %p8671_p4 = pneg %p8670_p9 }
 0x177   : > { %p8676_p3 = pnand %p8674_p1, %p8671_p4 }
 0x179   : > { %8679 = shalt.err (!%p8676_p3)
}
 0x17a   : > { %s8680_s26 = scalar_lea.vmem %s709_s4, 32  ;;  %p8688_p13 = scmp.lt.s32.totalorder %s709_s4, %s709_s4 }
 0x17b   : > { %p8681_p10 = scmp.ne.s32.totalorder %s709_s4, %s8680_s26  ;;  %p8689_p0 = scmp.lt.s32.totalorder %s8680_s26, %s8680_s26 }
 0x17d   : > { %p8683_p11 = pnand %p8681_p10, %p9080_p8  ;;  %p8690_p2 = por %p8689_p0, %p8688_p13 }
 0x17f   : > { %p8684_p12 = pneg %p8683_p11 }
 0x181   : > { %p8691_p5 = pnand %p8690_p2, %p8684_p12 }
 0x183   : > { %8694 = shalt.err (!%p8691_p5)
}
 0x184   : > { %7745 = dma.hbm_to_vmem [thread:$0]  (!%p9066_p6), %s9991_s14, 32, %s709_s4, [#allocation21], %s10055_s23, %s10055_s23, %s10054_s27  }
 0x185   : > { %s8695_s28 = scalar_lea.hbm %s9994_s17, 8192 }
 0x186   : > { %p8696_p7 = scmp.ne.s32.totalorder %s9994_s17, %s8695_s28  ;;  %p8702_p1 = scmp.lt.u32.totalorder %s8695_s28, %s9994_s17 }
 0x188   : > { %p8698_p9 = pnand %p8696_p7, %p9080_p8 }
 0x18a   : > { %p8699_p4 = pneg %p8698_p9 }
 0x18c   : > { %p8704_p3 = pnand %p8702_p1, %p8699_p4 }
 0x18e   : > { %8707 = shalt.err (!%p8704_p3)
}
 0x18f   : > { %s8708_s3 = scalar_lea.vmem %s736_s25, 8192  ;;  %p8716_p13 = scmp.lt.s32.totalorder %s736_s25, %s736_s25 }
 0x190   : > { %p8709_p10 = scmp.ne.s32.totalorder %s736_s25, %s8708_s3  ;;  %p8717_p0 = scmp.lt.s32.totalorder %s8708_s3, %s8708_s3 }
 0x192   : > { %p8711_p11 = pnand %p8709_p10, %p9080_p8  ;;  %p8718_p2 = por %p8717_p0, %p8716_p13 }
 0x194   : > { %p8712_p12 = pneg %p8711_p11 }
 0x196   : > { %p8719_p5 = pnand %p8718_p2, %p8712_p12 }
 0x198   : > { %8722 = shalt.err (!%p8719_p5)
}
 0x199   : > { %s8906_s27 = smov 512   ;;  %s8907_s22 = smov [#allocation28]  }
 0x19a   : > { %7751 = dma.hbm_to_vmem [thread:$0]  (!%p9066_p6), %s9994_s17, 8192, %s736_s25, [#allocation24], %s8906_s27, %s8906_s27, %s8902_s0  }
 0x19b   : > { %s759_s9 = sshll.u32 %s8907_s22, 4  ;;  %s8723_s24 = scalar_lea.hbm %s9997_s20, 24576  ;;  %s760_s9 = int_to_ptr.vmem [resolvable:$true] %s759_s9 }
 0x19c   : > { %p8724_p7 = scmp.ne.s32.totalorder %s9997_s20, %s8723_s24  ;;  %p8730_p1 = scmp.lt.u32.totalorder %s8723_s24, %s9997_s20 }
 0x19e   : > { %p8726_p9 = pnand %p8724_p7, %p9080_p8 }
 0x1a0   : > { %p8727_p4 = pneg %p8726_p9 }
 0x1a2   : > { %p8732_p3 = pnand %p8730_p1, %p8727_p4 }
 0x1a4   : > { %8735 = shalt.err (!%p8732_p3)
}
 0x1a5   : > { %s8736_s0 = scalar_lea.vmem %s760_s9, 24576  ;;  %p8744_p13 = scmp.lt.s32.totalorder %s760_s9, %s760_s9 }
 0x1a6   : > { %p8737_p10 = scmp.ne.s32.totalorder %s760_s9, %s8736_s0  ;;  %p8745_p0 = scmp.lt.s32.totalorder %s8736_s0, %s8736_s0 }
 0x1a8   : > { %p8739_p11 = pnand %p8737_p10, %p9080_p8  ;;  %p8746_p2 = por %p8745_p0, %p8744_p13 }
 0x1aa   : > { %p8740_p12 = pneg %p8739_p11 }
 0x1ac   : > { %p8747_p5 = pnand %p8746_p2, %p8740_p12 }
 0x1ae   : > { %8750 = shalt.err (!%p8747_p5)
}
 0x1af   : > { %s10060_s25 = smov 4   ;;  %s10061_s2 = smov 64  }
 0x1b0   : > { %s10062_s3 = sld [smem:[#allocation42_spill]]  ;;  %s10063_s5 = sld [smem:[#allocation41_spill]] }
 0x1b1   : > { %s10064_s27 = sld [smem:[#allocation40_spill]]  ;;  %s10065_s23 = sld [smem:[#allocation43_spill]] }
 0x1b2   : > { %7757 = dma.hbm_to_vmem [thread:$0]  (!%p9066_p6), %s9997_s20, 24576, %s760_s9, [#allocation27], %s10061_s2, %s10061_s2, %s10060_s25  }
 0x1b3   : > { %s6563_s6 = sadd.s32 4294967294, %s8879_s30   ;;  %s9408_s4 = sadd.s32 1, %s8879_s30  }
 0x1b4   : > { %s50_s26 = ssub.s32 %s8879_s30, %s9408_s4  ;;  %p61_p9 = scmp.eq.s32.totalorder %s8879_s30, 0 }
 0x1b5   : > { %p51_p7 = scmp.eq.s32.totalorder %s50_s26, 0  ;;  %p542_p12 = scmp.eq.s32.totalorder %s6563_s6, 1 }
 0x1b6   : > { %s53_s22 = sadd.s32 1, %s10062_s3  ;;  %p60_p8 = scmp.ne.s32.totalorder %s10062_s3, %s10063_s5 }
 0x1b7   : > { %p66_p4 = scmp.ne.s32.totalorder %s10063_s5, %s10064_s27  ;;  %p536_p1 = scmp.eq.s32.totalorder %s10065_s23, 1 }
 0x1b8   : > { %s9420_s15 = scalar_select %p51_p7, %s10062_s3, %s53_s22  }
 0x1b9   : > { %p62_p3 = por %p61_p9, %p60_p8  ;;  %p10066_p10 = scmp.eq.s32.totalorder %s10065_s23, 0 }
 0x1ba   : > { %p9428_p6 = por %p536_p1, %p60_p8  ;;  %p7782_p13 = scmp.lt.s32.totalorder %s8879_s30, 2 }
 0x1bb   : > { %p9424_p11 = por %p10066_p10, %p66_p4  ;;  %s776_s1 = sand.u32 1, %s10062_s3  }
 0x1bc   : > { %s10068_s9 = scalar_select %p9428_p6, 1, 0 }
 0x1bd   : > { %p9434_p0 = por %p542_p12, %p66_p4  ;;  %s7638_s28 = smul.u32 24, %s776_s1 }
 0x1be   : > { %p9438_p2 = pnand %p7782_p13, %p62_p3  ;;  %s7639_s0 = smul.u32 384, %s8879_s30 }
 0x1bf   : > { %s10069_s29 = scalar_select %p9434_p0, 1, 0 }
 0x1c0   : > { %s10071_s19 = sld [smem:[#allocation45_spill]]  ;;  %s780_s3 = scalar_lea.vmem [#allocation2], %s7638_s28 }
 0x1c1   : > { %s788_s5 = sshll.u32 %s780_s3, 4  ;;  %s777_s27 = scalar_lea.sflag [#allocation3], %s776_s1  ;;  %s9448_s5 = int_to_ptr.vmem [resolvable:$true] %s788_s5 }
 0x1c2   : > { %p8753_p8 = pneg %p9438_p2 }
 0x1c6   : > { %s9446_s7 = scalar_lea.hbm %s10071_s19, %s7639_s0  ;;  %s8756_s26 = scalar_lea.hbm %s10071_s19, 768 }
 0x1c7   : > { %s8751_s23 = scalar_lea.hbm %s9446_s7, 384  ;;  %p8757_p4 = scmp.lt.u32.totalorder %s9446_s7, %s10071_s19 }
 0x1c8   : > { %p8752_p5 = scmp.ne.s32.totalorder %s9446_s7, %s8751_s23  ;;  %p8758_p1 = scmp.lt.u32.totalorder %s8756_s26, %s8751_s23 }
 0x1c9   : > { %p8760_p10 = scmp.lt.u32.totalorder %s8751_s23, %s9446_s7 }
 0x1ca   : > { %p8754_p7 = pnand %p8753_p8, %p8752_p5  ;;  %p8759_p3 = por %p8758_p1, %p8757_p4 }
 0x1cc   : > { %p8755_p9 = pneg %p8754_p7  ;;  %p8761_p12 = por %p8760_p10, %p8759_p3 }
 0x1ce   : > { %p8762_p13 = pnand %p8761_p12, %p8755_p9 }
 0x1d0   : > { %8765 = shalt.err (!%p8762_p13)
}
 0x1d1   : > { %s8766_s1 = scalar_lea.vmem %s9448_s5, 384  ;;  %s8908_s28 = smov [#allocation2]  }
 0x1d2   : > { %p8767_p5 = scmp.ne.s32.totalorder %s9448_s5, %s8766_s1  ;;  %s8771_s2 = sshll.u32 %s8908_s28, 4  ;;  %s8772_s2 = int_to_ptr.vmem [resolvable:$false] %s8771_s2 }
 0x1d3   : > { %s8773_s3 = scalar_lea.vmem %s8772_s2, 768  ;;  %p8774_p6 = scmp.lt.s32.totalorder %s9448_s5, %s8772_s2 }
 0x1d4   : > { %p8769_p7 = pnand %p8767_p5, %p8753_p8  ;;  %p8775_p4 = scmp.lt.s32.totalorder %s8773_s3, %s8766_s1 }
 0x1d6   : > { %p8770_p0 = pneg %p8769_p7  ;;  %p8776_p1 = por %p8775_p4, %p8774_p6 }
 0x1d8   : > { %p8777_p3 = pnand %p8776_p1, %p8770_p0 }
 0x1da   : > { %8780 = shalt.err (!%p8777_p3)
}
 0x1db   : > { %7761 = dma.hbm_to_vmem [thread:$0]  (!%p9438_p2), %s9446_s7, 384, %s9448_s5, %s777_s27  }
 0x1dc   : > { %s10072_s23 = sld [smem:[#allocation44_spill]] }
 0x1e2   : > { %p10073_p9 = scmp.ne.s32.totalorder %s10072_s23, 0 }
 0x1e3   : > { %s10074_s6 = sld [smem:[#allocation41_spill]] (!%p10073_p9) }
 0x1e4   : > { %805 = sbr.rel (%p10073_p9) target bundleno = 7609 (0x1db9), region = 108 }
 0x1e9   : > { %s9478_s22 = sand.u32 (!%p10073_p9), 1, %s10074_s6  }
 0x1ea   : > { %s7640_s26 = smul.u32 (!%p10073_p9), 24, %s9478_s22  ;;  %s808_s0 = scalar_lea.sflag (!%p10073_p9), [#allocation3], %s9478_s22 }
 0x1ec   : > { %s9482_s25 = scalar_lea.vmem [#allocation2], %s7640_s26 }
 0x1ed   : > { %8826 = dma.done.wait (%p9424_p11), %s808_s0, 384  }
 0x1ee   : > { %8828 = vsyncadd (%p9424_p11), %s808_s0, 4294966912  ;;  %s10075_s11 = sld [smem:[#allocation43_spill]] }
 0x1f4   : > { %p10076_p6 = scmp.eq.s32.totalorder %s10075_s11, 0 }
 0x1f6   : > { %8830 = dma.done.wait (%p10076_p6), [#allocation6], 6272   ;;  %p10077_p0 = pmov %p10076_p6 }
 0x1f8   : > { %8832 = vsyncadd (%p10077_p0), [#allocation6], 4294961024  ;;  %p10078_p2 = pmov %p10077_p0 }
 0x1f9   : > { %p10079_p8 = pmov %p10077_p0 }
 0x1fa   : > { %8834 = dma.done.wait (%p10078_p2), [#allocation9], 64  }
 0x1fb   : > { %8836 = vsyncadd (%p10079_p8), [#allocation9], 4294967232  ;;  %p10080_p10 = pmov %p10077_p0 }
 0x1fc   : > { %p10081_p12 = pmov %p10077_p0 }
 0x1fd   : > { %8838 = dma.done.wait (%p10080_p10), [#allocation12], 6176  }
 0x1fe   : > { %8840 = vsyncadd (%p10081_p12), [#allocation12], 4294961120  ;;  %p10082_p11 = pmov %p10077_p0 }
 0x1ff   : > { %p10083_p13 = pmov %p10077_p0 }
 0x200   : > { %8842 = dma.done.wait (%p10082_p11), [#allocation15], 64  }
 0x201   : > { %8844 = vsyncadd (%p10083_p13), [#allocation15], 4294967232  ;;  %p10084_p5 = pmov %p10077_p0 }
 0x202   : > { %p10085_p7 = pmov %p10077_p0 }
 0x203   : > { %8846 = dma.done.wait (%p10084_p5), [#allocation18], 4160  }
 0x204   : > { %8848 = vsyncadd (%p10085_p7), [#allocation18], 4294963136  ;;  %p10086_p4 = pmov %p10077_p0 }
 0x205   : > { %p10087_p1 = pmov %p10077_p0 }
 0x206   : > { %8850 = dma.done.wait (%p10086_p4), [#allocation21], 4128  }
 0x207   : > { %8852 = vsyncadd (%p10087_p1), [#allocation21], 4294963168  ;;  %p10088_p3 = pmov %p10077_p0 }
 0x208   : > { %p10089_p9 = pmov %p10077_p0 }
 0x209   : > { %8854 = dma.done.wait (%p10088_p3), [#allocation24], 8208  }
 0x20a   : > { %8856 = vsyncadd (%p10089_p9), [#allocation24], 4294959088  ;;  %p10090_p6 = pmov %p10077_p0 }
 0x20c   : > { %8858 = dma.done.wait (%p10090_p6), [#allocation27], 24704  }
 0x20d   : > { %8860 = vsyncadd (%p10077_p0), [#allocation27], 4294942592  ;;  %v7863_v0 = vld [vmem:[#allocation7 + $0x40] sm:$0xff]   ;;  %v7867_v4 = vld [vmem:[#allocation7 + $0x48] sm:$0xff]   ;;  %vm8911_vm1 = vmmov 0   ;;  %s10091_s5 = sld [smem:[#allocation51_spill]] }
 0x20e   : > { %v7864_v1 = vld [vmem:[#allocation7] sm:$0xff]   ;;  %7084 = vmatprep.subr.bf16.mxu0 %v7863_v0  ;;  %v7868_v5 = vld [vmem:[#allocation7 + $0x8] sm:$0xff]   ;;  %v7871_v8 = vld [vmem:[#allocation7 + $0x50] sm:$0xff]   ;;  %vm1772_vm2 = vcmask 523264   ;;  %s8912_s27 = smov 64   ;;  %vm1837_vm3 = vcmask 1043456  }
 0x20f   : > { %v7865_v2 = vld [vmem:[#allocation7 + $0xc0] sm:$0xff]   ;;  %7085 = vmatpush3.bf16.msra.mxu0 %v7864_v1  ;;  %v7869_v6 = vld [vmem:[#allocation7 + $0xc8] sm:$0xff]   ;;  %v7872_v9 = vld [vmem:[#allocation7 + $0x10] sm:$0xff]   ;;  %vm1821_vm5 = vcmask 64512   ;;  %s10092_s2 = sld [smem:[#allocation52_spill]]  ;;  %vm3509_vm6 = vcmask 1040384  }
 0x210   : > { %v7866_v3 = vld [vmem:[#allocation7 + $0x80] sm:$0xff]   ;;  %7106 = vmatprep.subr.bf16.mxu1 %v7865_v2  ;;  %7086 = vmatprep.subr.bf16.mxu0 %v7867_v4  ;;  %v7870_v7 = vld [vmem:[#allocation7 + $0x88] sm:$0xff]   ;;  %v7873_v10 = vld [vmem:[#allocation7 + $0xd0] sm:$0xff]   ;;  %s10093_s26 = sld [smem:[#allocation55_spill]]  ;;  %p941_p2 = scmp.lt.s32.totalorder %s10075_s11, 1 }
 0x211   : > { %7107 = vmatpush3.bf16.msra.mxu1 %v7866_v3  ;;  %v7874_v11 = vld [vmem:[#allocation7 + $0x90] sm:$0xff]   ;;  %v7875_v12 = vld [vmem:[#allocation7 + $0x58] sm:$0xff]   ;;  %v7879_v16 = vld [vmem:[#allocation7 + $0x60] sm:$0xff]   ;;  %s10094_s1 = sld [smem:[#allocation56_spill]]  ;;  %s6600_s6 = sshll.u32 %s9478_s22, 3 }
 0x212   : > { %7108 = vmatprep.subr.bf16.mxu1 %v7869_v6  ;;  %v7876_v13 = vld [vmem:[#allocation7 + $0x18] sm:$0xff]   ;;  %v7880_v17 = vld [vmem:[#allocation7 + $0x20] sm:$0xff]   ;;  %v7883_v20 = vld [vmem:[#allocation7 + $0x68] sm:$0xff]   ;;  %s942_s0 = scalar_select %p941_p2, %s10075_s11, 1 }
 0x213   : > { %7087 = vmatpush3.bf16.msra.mxu0 %v7868_v5  ;;  %v7877_v14 = vld [vmem:[#allocation7 + $0xd8] sm:$0xff]   ;;  %v7881_v18 = vld [vmem:[#allocation7 + $0xe0] sm:$0xff]   ;;  %v7884_v21 = vld [vmem:[#allocation7 + $0x28] sm:$0xff]   ;;  %s6316_s3 = scalar_lea.sflag [#allocation4], %s9478_s22  ;;  %p10097_p10 = scmp.ne.s32.totalorder %s10068_s9, 0 }
 0x214   : > { %7088 = vmatprep.subr.bf16.mxu0 %v7871_v8  ;;  %v7878_v15 = vld [vmem:[#allocation7 + $0x98] sm:$0xff]   ;;  %v7882_v19 = vld [vmem:[#allocation7 + $0xa0] sm:$0xff]   ;;  %v7885_v22 = vld [vmem:[#allocation7 + $0xe8] sm:$0xff]  }
 0x215   : > { %7109 = vmatpush3.bf16.msra.mxu1 %v7870_v7  ;;  %v7886_v23 = vld [vmem:[#allocation7 + $0xa8] sm:$0xff]   ;;  %v7887_v24 = vld [vmem:[#allocation7 + $0x70] sm:$0xff]   ;;  %v7891_v28 = vld [vmem:[#allocation7 + $0x78] sm:$0xff]  }
 0x216   : > { %7110 = vmatprep.subr.bf16.mxu1 %v7873_v10  ;;  %v7888_v25 = vld [vmem:[#allocation7 + $0x30] sm:$0xff]   ;;  %v7892_v29 = vld [vmem:[#allocation7 + $0x38] sm:$0xff]   ;;  %v947_v31 = vld [vmem:[%s9482_s25] sm:$0xff] }
 0x217   : > { %7089 = vmatpush3.bf16.msra.mxu0 %v7872_v9  ;;  %v7889_v26 = vld [vmem:[#allocation7 + $0xf0] sm:$0xff]   ;;  %v7893_v30 = vld [vmem:[#allocation7 + $0xf8] sm:$0xff]   ;;  %v6603_v32 = vcombine.low %v947_v31, %v947_v31  ;;  %v6604_v33 = vcombine.high %v947_v31, %v947_v31  ;;  %v7897_v35 = vld [vmem:[#allocation7 + $0x140] sm:$0xff]  }
 0x218   : > { %7090 = vmatprep.subr.bf16.mxu0 %v7875_v12  ;;  %v7890_v27 = vld [vmem:[#allocation7 + $0xb0] sm:$0xff]   ;;  %v7896_v34 = vld [vmem:[#allocation7 + $0xb8] sm:$0xff]   ;;  %v7900_v39 = vld [vmem:[#allocation7 + $0x100] sm:$0xff]   ;;  %v8909_v12 = vmov 0.0  }
 0x219   : > { %7111 = vmatpush3.bf16.msra.mxu1 %v7874_v11  ;;  %v948_v36 = vld [vmem:[%s9482_s25 + $0x8] sm:$0xff]  ;;  %1388 = vmatprep.mubr.bf16.mxu0 %v6604_v33  ;;  %v7905_v44 = vld [vmem:[#allocation7 + $0x158] sm:$0xff]   ;;  %v7907_v46 = vld [vmem:[#allocation7 + $0x160] sm:$0xff]  }
 0x21a   : > { %7112 = vmatprep.subr.bf16.mxu1 %v7877_v14  ;;  %v6605_v37 = vcombine.low %v948_v36, %v948_v36  ;;  %v6606_v38 = vcombine.high %v948_v36, %v948_v36  ;;  %v7901_v40 = vld [vmem:[#allocation7 + $0x148] sm:$0xff]   ;;  %v7903_v42 = vld [vmem:[#allocation7 + $0x150] sm:$0xff]   ;;  %v7906_v45 = vld [vmem:[#allocation7 + $0x118] sm:$0xff]  }
 0x21b   : > { %7091 = vmatpush3.bf16.msra.mxu0 %v7876_v13  ;;  %v7902_v41 = vld [vmem:[#allocation7 + $0x108] sm:$0xff]   ;;  %v7904_v43 = vld [vmem:[#allocation7 + $0x110] sm:$0xff]   ;;  %v7908_v47 = vld [vmem:[#allocation7 + $0x120] sm:$0xff]  }
 0x21c   : > { %7092 = vmatprep.subr.bf16.mxu0 %v7879_v16  ;;  %1428 = vmatprep.mubr.bf16.mxu1 %v6606_v38  ;;  %v7909_v48 = vld [vmem:[#allocation7 + $0x168] sm:$0xff]   ;;  %v949_v49 = vld [vmem:[%s9482_s25 + $0x10] sm:$0xff]  ;;  %s7083_s25 = sshll.u32 %s942_s0, 5  ;;  %s940_s0 = scalar_lea.vmem [#allocation29], %s6600_s6 }
 0x21d   : > { %7113 = vmatpush3.bf16.msra.mxu1 %v7878_v15  ;;  %v6608_v50 = vcombine.high %v949_v49, %v949_v49  ;;  %v7910_v51 = vld [vmem:[#allocation7 + $0x128] sm:$0xff]   ;;  %v7911_v52 = vld [vmem:[#allocation7 + $0x170] sm:$0xff]   ;;  %v7913_v54 = vld [vmem:[#allocation7 + $0x178] sm:$0xff]   ;;  %v6607_v56 = vcombine.low %v949_v49, %v949_v49  ;;  %s945_s28 = scalar_lea.vmem %s10094_s1, %s7083_s25  ;;  %s6329_s25 = sshll.u32 %s940_s0, 4  ;;  %s9935_s25 = int_to_ptr.vmem [resolvable:$true] %s6329_s25 }
 0x21e   : > { %7114 = vmatprep.subr.bf16.mxu1 %v7881_v18  ;;  %v7912_v53 = vld [vmem:[#allocation7 + $0x130] sm:$0xff]   ;;  %v7914_v55 = vld [vmem:[#allocation7 + $0x138] sm:$0xff]   ;;  %v7923_v16 = vld [vmem:[#allocation11 + $0x1c] ss:$12 sps:$4 sm:$0xff]   ;;  %s10096_s1 = sld [smem:[#allocation58_spill]]  ;;  %s8781_s23 = scalar_lea.vmem %s9935_s25, 128 }
 0x21f   : > { %7093 = vmatpush3.bf16.msra.mxu0 %v7880_v17  ;;  %v1046_v58 = vld [vmem:[#allocation5] sm:$0xff]  ;;  %v7917_v13 = vld [vmem:[#allocation11] ss:$12 sps:$4 sm:$0xff]   ;;  %v7919_v14 = vld [vmem:[#allocation11 + $0x4] ss:$12 sps:$4 sm:$0xff]   ;;  %p8782_p8 = scmp.ne.s32.totalorder %s9935_s25, %s8781_s23 }
 0x220   : > { %7094 = vmatprep.subr.bf16.mxu0 %v7883_v20  ;;  %v7920_v15 = vld [vmem:[#allocation11 + $0x8] ss:$12 sps:$4 sm:$0xff]   ;;  %v7921_v17 = vld [vmem:[#allocation11 + $0x18] ss:$12 sps:$4 sm:$0xff]   ;;  %v7924_v18 = vld [vmem:[#allocation11 + $0x20] ss:$12 sps:$4 sm:$0xff]  }
 0x221   : > { %7115 = vmatpush3.bf16.msra.mxu1 %v7882_v19  ;;  %v7927_v19 = vld [vmem:[#allocation11 + $0x34] ss:$12 sps:$4 sm:$0xff]   ;;  %v7925_v20 = vld [vmem:[#allocation11 + $0x30] ss:$12 sps:$4 sm:$0xff]   ;;  %p8783_p12 = pnand %p8782_p8, %p10097_p10 }
 0x222   : > { %7116 = vmatprep.subr.bf16.mxu1 %v7885_v22  ;;  %v7929_v31 = vld [vmem:[#allocation11 + $0x48] ss:$12 sps:$4 sm:$0xff]   ;;  %v7933_v33 = vld [vmem:[#allocation11 + $0x60] ss:$12 sps:$4 sm:$0xff]  }
 0x223   : > { %7095 = vmatpush3.bf16.msra.mxu0 %v7884_v21  ;;  %v1476_v21 = vlaneseq  ;;  %v7939_v36 = vld [vmem:[#allocation11 + $0x7c] ss:$12 sps:$4 sm:$0xff]   ;;  %v7940_v38 = vld [vmem:[#allocation11 + $0x80] ss:$12 sps:$4 sm:$0xff]   ;;  %p8784_p11 = pneg %p8783_p12 }
 0x224   : > { %7096 = vmatprep.subr.bf16.mxu0 %v7887_v24 }
 0x225   : > { %7117 = vmatpush3.bf16.msra.mxu1 %v7886_v23  ;;  %v9530_v22 = vand.u32 127, %v1476_v21 }
 0x226   : > { %7118 = vmatprep.subr.bf16.mxu1 %v7889_v26 }
 0x227   : > { %7097 = vmatpush3.bf16.msra.mxu0 %v7888_v25  ;;  %vm1478_vm0 = vcmp.lt.s32.totalorder %v9530_v22, 64  ;;  %vm1481_vm4 = vcmp.lt.s32.totalorder %v9530_v22, 5 }
 0x228   : > { %7098 = vmatprep.subr.bf16.mxu0 %v7891_v28  ;;  %v9534_v25 = vsel %vm1478_vm0, 1.0, %v8909_v12 }
 0x229   : > { %7119 = vmatpush3.bf16.msra.mxu1 %v7890_v27 }
 0x22a   : > { %7120 = vmatprep.subr.bf16.mxu1 %v7893_v30  ;;  %v7931_v30 = vld [vmem:[#allocation11 + $0x4c] ss:$12 sps:$4 sm:$0xff]  }
 0x22b   : > { %7099 = vmatpush3.bf16.msra.mxu0 %v7892_v29  ;;  %v7928_v29 = vld [vmem:[#allocation11 + $0x38] ss:$12 sps:$4 sm:$0xff]  }
 0x22c   : > { %7128 = vmatprep.subr.bf16.mxu0 %v7897_v35  ;;  %v7936_v35 = vld [vmem:[#allocation11 + $0x68] ss:$12 sps:$4 sm:$0xff]  }
 0x22d   : > { %7121 = vmatpush3.bf16.msra.mxu1 %v7896_v34  ;;  %v7935_v34 = vld [vmem:[#allocation11 + $0x64] ss:$12 sps:$4 sm:$0xff]  }
 0x22e   : > { %1389 = vmatmul.mubr.bf16.vlgmr.msra.gmra.mrb[0].mxu0 %v6603_v32  ;;  %1688 = vmatprep.subr.bf16.mxu1 %v7919_v14  ;;  %v7932_v32 = vld [vmem:[#allocation11 + $0x50] ss:$12 sps:$4 sm:$0xff]  }
 0x22f   : > { %7129 = vmatpush3.bf16.msra.mxu0 %v7900_v39  ;;  %1468 = vmatprep.mubr.bf16.mxu0 %v6608_v50  ;;  %v7943_v39 = vld [vmem:[#allocation11 + $0x94] ss:$12 sps:$4 sm:$0xff]   ;;  %v6658_v50 = vld [vmem:[#allocation8] ss:$0 sm:$0xff] }
 0x230   : > { %1429 = vmatmul.mubr.bf16.vlgmr.msra.gmra.mrb[0].mxu1 %v6605_v37  ;;  %7130 = vmatprep.subr.bf16.mxu0 %v7901_v40  ;;  %v7937_v37 = vld [vmem:[#allocation11 + $0x78] ss:$12 sps:$4 sm:$0xff]   ;;  %v8910_v40 = vmov 0  }
 0x231   : > { %1689 = vmatpush1.bf16.msra.mxu1 %v7917_v13  ;;  %1720 = vmatprep.mubr.bf16.mxu1 %v8910_v40 }
 0x232   : > { %1690 = vmatprep.subr.bf16.mxu1 %v7923_v16 }
 0x233   : > { %7131 = vmatpush3.bf16.msra.mxu0 %v7902_v41  ;;  %v7941_v41 = vld [vmem:[#allocation11 + $0x90] ss:$12 sps:$4 sm:$0xff]  }
 0x234   : > { %7132 = vmatprep.subr.bf16.mxu0 %v7903_v42  ;;  %v7944_v42 = vld [vmem:[#allocation11 + $0x98] ss:$12 sps:$4 sm:$0xff]  }
 0x235   : > { %1691 = vmatpush1.bf16.msra.mxu1 %v7921_v17 }
 0x236   : > { %1692 = vmatprep.subr.bf16.mxu1 %v7927_v19 }
 0x237   : > { %7133 = vmatpush3.bf16.msra.mxu0 %v7904_v43  ;;  %v7947_v43 = vld [vmem:[#allocation11 + $0xac] ss:$12 sps:$4 sm:$0xff]  }
 0x238   : > { %7134 = vmatprep.subr.bf16.mxu0 %v7905_v44  ;;  %v7945_v44 = vld [vmem:[#allocation11 + $0xa8] ss:$12 sps:$4 sm:$0xff]  }
 0x239   : > { %1693 = vmatpush1.bf16.msra.mxu1 %v7925_v20 }
 0x23a   : > { %1694 = vmatprep.subr.bf16.mxu1 %v7931_v30 }
 0x23b   : > { %7135 = vmatpush3.bf16.msra.mxu0 %v7906_v45  ;;  %v7948_v45 = vld [vmem:[#allocation11 + $0xb0] ss:$12 sps:$4 sm:$0xff]  }
 0x23c   : > { %7136 = vmatprep.subr.bf16.mxu0 %v7907_v46 }
 0x23d   : > { %1695 = vmatpush1.bf16.msra.mxu1 %v7929_v31 }
 0x23e   : > { %1696 = vmatprep.subr.bf16.mxu1 %v7935_v34 }
 0x23f   : > { %7137 = vmatpush3.bf16.msra.mxu0 %v7908_v47 }
 0x240   : > { %7138 = vmatprep.subr.bf16.mxu0 %v7909_v48 }
 0x241   : > { %1697 = vmatpush1.bf16.msra.mxu1 %v7933_v33 }
 0x242   : > { %1698 = vmatprep.subr.bf16.mxu1 %v7939_v36 }
 0x243   : > { %7139 = vmatpush3.bf16.msra.mxu0 %v7910_v51 }
 0x244   : > { %7140 = vmatprep.subr.bf16.mxu0 %v7911_v52  ;;  %v6659_v52 = vld [vmem:[#allocation10] ss:$0 sm:$0xff] }
 0x245   : > { %1699 = vmatpush1.bf16.msra.mxu1 %v7937_v37 }
 0x246   : > { %1700 = vmatprep.subr.bf16.mxu1 %v7943_v39 }
 0x247   : > { %7141 = vmatpush3.bf16.msra.mxu0 %v7912_v53 }
 0x248   : > { %7142 = vmatprep.subr.bf16.mxu0 %v7913_v54 }
 0x249   : > { %1701 = vmatpush1.bf16.msra.mxu1 %v7941_v41 }
 0x24a   : > { %1702 = vmatprep.subr.bf16.mxu1 %v7947_v43 }
 0x24b   : > { %7143 = vmatpush3.bf16.msra.mxu0 %v7914_v55 }
 0x24c   : > { %7510 = vmatprep.subr.bf16.mxu0 %v8909_v12 }
 0x24d   : > { %1703 = vmatpush1.bf16.msra.mxu1 %v7945_v44 }
 0x24e   : > { %1469 = vmatmul.mubr.bf16.vlgmr.msra.gmra.mrb[4].mxu0 %v6607_v56  ;;  %7530 = vmatprep.subr.bf16.mxu1 %v8909_v12  ;;  %v9553_v56 = vshrl.u32 %v1476_v21, 7 }
 0x24f   : > { %7511 = vmatpush3.bf16.msra.mxu0 %v7920_v15  ;;  %7526 = vmatprep.mubr.msk.bf16.mxu0 %vm8911_vm1, %v8909_v12 }
 0x250   : > { %7512 = vmatprep.subr.bf16.mxu0 %v8909_v12 }
 0x253   : > { %7513 = vmatpush3.bf16.msra.mxu0 %v7924_v18 }
 0x254   : > { %7514 = vmatprep.subr.bf16.mxu0 %v8909_v12 }
 0x257   : > { %7515 = vmatpush3.bf16.msra.mxu0 %v7928_v29 }
 0x258   : > { %7516 = vmatprep.subr.bf16.mxu0 %v8909_v12 }
 0x25b   : > { %7517 = vmatpush3.bf16.msra.mxu0 %v7932_v32 }
 0x25c   : > { %7518 = vmatprep.subr.bf16.mxu0 %v8909_v12 }
 0x25f   : > { %7519 = vmatpush3.bf16.msra.mxu0 %v7936_v35 }
 0x260   : > { %7520 = vmatprep.subr.bf16.mxu0 %v8909_v12 }
 0x263   : > { %7521 = vmatpush3.bf16.msra.mxu0 %v7940_v38 }
 0x264   : > { %7522 = vmatprep.subr.bf16.mxu0 %v8909_v12 }
 0x267   : > { %7523 = vmatpush3.bf16.msra.mxu0 %v7944_v42 }
 0x268   : > { %7524 = vmatprep.subr.bf16.mxu0 %v8909_v12 }
 0x26b   : > { %7525 = vmatpush3.bf16.msra.mxu0 %v7948_v45 }
 0x26c   : > { %7554 = vmatprep.subr.bf16.mxu0 %v8909_v12 }
 0x301   : > { %v7100_v57 = vpop.f32.mrb[0].mxu0 }
 0x302   : > { %v7101_v59 = vpop.f32.mrb[1].mxu0 }
 0x303   : > { %v7102_v60 = vadd.f32 %v7101_v59, %v7100_v57  ;;  %v7103_v61 = vpop.f32.mrb[2].mxu0  ;;  %v7122_v62 = vpop.f32.mrb[0].mxu1  ;;  %v9556_v57 = vsub.s32 1, %v9553_v56  ;;  %v9562_v59 = vsub.s32 2, %v9553_v56 }
 0x304   : > { %v7104_v63 = vpop.f32.mrb[3].mxu0  ;;  %v7123_v0 = vpop.f32.mrb[1].mxu1  ;;  %v9566_v61 = vsub.s32 0, %v9553_v56 }
 0x305   : > { %v1391_v1 = vadd.f32 %v7102_v60, %v1046_v58  ;;  %v7124_v2 = vadd.f32 %v7123_v0, %v7122_v62  ;;  %v7125_v3 = vpop.f32.mrb[2].mxu1  ;;  %v1543_v58 = vld [vmem:[%s10091_s5] sm:$0x7] }
 0x306   : > { %v7126_v4 = vpop.f32.mrb[3].mxu1  ;;  %v1552_v60 = vrot.slane %v1543_v58, %v9556_v57 }
 0x307   : > { %v1431_v5 = vadd.f32 %v7124_v2, %v1391_v1  ;;  %v1556_v2 = vrot.slane %v1543_v58, %v9562_v59 }
 0x321   : > { %v7144_v6 = vpop.f32.mrb[4].mxu0 }
 0x322   : > { %v7145_v7 = vpop.f32.mrb[5].mxu0 }
 0x323   : > { %v7146_v8 = vadd.f32 %v7145_v7, %v7144_v6  ;;  %v7147_v9 = vpop.f32.mrb[6].mxu0 }
 0x324   : > { %v7148_v10 = vpop.f32.mrb[7].mxu0 }
 0x325   : > { %v9523_v11 = vadd.f32 %v7146_v8, %v1431_v5  ;;  %v1548_v8 = vrot.slane %v1543_v58, %v9566_v61 }
 0x327   : > { %1484 = vadd.xlane.f32.xlu0 %v9523_v11 }
 0x3b4   : > { %v1485_v23 = vpop.xlane.xlu0 %1484 }
 0x3b5   : > { %v1486_v24 = vmul.f32 0.015625, %v1485_v23 }
 0x3b7   : > { %v1487_v26 = vsub.f32 %v9523_v11, %v1486_v24 }
 0x3b9   : > { %v1488_v27 = vmul.f32 %v9534_v25, %v1487_v26 }
 0x3bb   : > { %v1489_v28 = vmul.f32 %v1488_v27, %v1488_v27 }
 0x3bd   : > { %1490 = vadd.xlane.f32.xlu0 %v1489_v28 }
 0x44a   : > { %v1491_v46 = vpop.xlane.xlu0 %1490 }
 0x44b   : > { %v1492_v47 = vmul.f32 0.015625, %v1491_v46 }
 0x44d   : > { %v1493_v48 = vadd.f32 1e-06, %v1492_v47 }
 0x44f   : > { %8269 = vrsqrt.f32 %v1493_v48 }
 0x459   : > { %v8270_v49 = vpop.eup %8269 }
 0x45a   : > { %v1495_v51 = vmul.f32 %v8270_v49, %v1488_v27 }
 0x45c   : > { %v1502_v53 = vmul.f32 %v6658_v50, %v1495_v51 }
 0x45e   : > { %v1509_v54 = vadd.f32 %v6659_v52, %v1502_v53 }
 0x460   : > { %v1542_v55 = vpack.c.bf16 %v1509_v54, %v1509_v54 }
 0x462   : > { %1721 = vmatmul.mubr.bf16.vlgmr.msra.gmra.mrb[4].mxu1 %v1542_v55  ;;  %7527 = vmatmul.mubr.bf16.vlgmr.msra.gmra.mrb[8].mxu0 %v1542_v55 }
 0x463   : > { %7532 = vmatprep.mubr.msk.bf16.mxu1 %vm8911_vm1, %v8909_v12  ;;  %7570 = vmatprep.mubr.msk.bf16.mxu0 %vm8911_vm1, %v8909_v12 }
 0x535   : > { %v1722_v62 = vpop.f32.mrb[4].mxu1  ;;  %v1763_v63 = vpop.f32.mrb[8].mxu0 }
 0x536   : > { %v1724_v0 = vpop.f32.mrb[5].mxu1  ;;  %v7528_v1 = vpop.f32.mrb[9].mxu0  ;;  %v1764_v10 = vadd.f32 %v1763_v63, %v1556_v2  ;;  %v1723_v14 = vadd.f32 %v1722_v62, %v1548_v8  ;;  %v7949_v2 = vld [vmem:[%s10092_s2] sm:$0xff]   ;;  %v7955_v8 = vld [vmem:[%s10092_s2 + $0x30] sm:$0xff]  }
 0x537   : > { %v1725_v3 = vadd.f32 %v1724_v0, %v1552_v60  ;;  %v1726_v4 = vpop.f32.mrb[6].mxu1  ;;  %v1766_v5 = vpop.f32.mrb[10].mxu0  ;;  %7555 = vmatpush3.bf16.msra.mxu0 %v7949_v2  ;;  %v7984_v2 = vld [vmem:[#allocation20 + $0x8] sm:$0xff]  }
 0x538   : > { %v1727_v6 = vpop.f32.mrb[7].mxu1  ;;  %v7529_v7 = vpop.f32.mrb[11].mxu0  ;;  %v1771_v15 = vpack.c.bf16 %v1764_v10, %v1764_v10  ;;  %v1769_v16 = vpack.c.bf16 %v1723_v14, %v1723_v14  ;;  %7556 = vmatprep.subr.bf16.mxu0 %v8909_v12  ;;  %v7951_v4 = vld [vmem:[%s10092_s2 + $0x10] sm:$0xff]   ;;  %v7952_v5 = vld [vmem:[%s10092_s2 + $0x18] sm:$0xff]  }
 0x539   : > { %v1770_v9 = vpack.c.bf16 %v1725_v3, %v1725_v3  ;;  %v7950_v3 = vld [vmem:[%s10092_s2 + $0x8] sm:$0xff]   ;;  %v7953_v6 = vld [vmem:[%s10092_s2 + $0x20] sm:$0xff]  }
 0x53a   : > { %v1839_v17 = vsel %vm1837_vm3, %v1771_v15, 0  ;;  %v7954_v7 = vld [vmem:[%s10092_s2 + $0x28] sm:$0xff]  }
 0x53b   : > { %v1777_v13 = vsel %vm1772_vm2, %v1770_v9, 0  ;;  %1885 = vrot.lane.b32.xlu0 %v1770_v9, %s8912_s27  ;;  %7557 = vmatpush3.bf16.msra.mxu0 %v7950_v3  ;;  %v7956_v9 = vld [vmem:[%s10092_s2 + $0x38] sm:$0xff]  }
 0x53c   : > { %7531 = vmatpush3.bf16.xpose.msra.mxu1 %v1777_v13  ;;  %7558 = vmatprep.subr.bf16.mxu0 %v8909_v12  ;;  %v7985_v3 = vld [vmem:[#allocation20 + $0x50] sm:$0xff]  }
 0x53d   : > { %7536 = vmatprep.subr.bf16.mxu1 %v8909_v12 }
 0x53f   : > { %7559 = vmatpush3.bf16.msra.mxu0 %v7951_v4  ;;  %v7986_v4 = vld [vmem:[#allocation20 + $0x10] sm:$0xff]  }
 0x540   : > { %7560 = vmatprep.subr.bf16.mxu0 %v8909_v12 }
 0x543   : > { %7533 = vmatmul.mubr.msk.bf16.vlgmr.msra.gmra.mrb[8].mxu1 %vm1772_vm2, %v1769_v16  ;;  %7561 = vmatpush3.bf16.msra.mxu0 %v7952_v5  ;;  %v7987_v5 = vld [vmem:[#allocation20 + $0x58] sm:$0xff]  }
 0x544   : > { %7537 = vmatpush3.bf16.msra.mxu1 %v1839_v17  ;;  %7538 = vmatprep.mubr.msk.bf16.mxu1 %vm8911_vm1, %v8909_v12 }
 0x545   : > { %7542 = vmatprep.subr.bf16.mxu1 %v8909_v12  ;;  %7562 = vmatprep.subr.bf16.mxu0 %v8909_v12 }
 0x547   : > { %7563 = vmatpush3.bf16.msra.mxu0 %v7953_v6  ;;  %v7988_v6 = vld [vmem:[#allocation20 + $0x18] sm:$0xff]  }
 0x548   : > { %7564 = vmatprep.subr.bf16.mxu0 %v8909_v12 }
 0x54b   : > { %7565 = vmatpush3.bf16.msra.mxu0 %v7954_v7  ;;  %v7989_v7 = vld [vmem:[#allocation20 + $0x60] sm:$0xff]  }
 0x54c   : > { %7566 = vmatprep.subr.bf16.mxu0 %v8909_v12 }
 0x54f   : > { %7567 = vmatpush3.bf16.msra.mxu0 %v7955_v8  ;;  %v7990_v8 = vld [vmem:[#allocation20 + $0x20] sm:$0xff]  }
 0x550   : > { %7568 = vmatprep.subr.bf16.mxu0 %v8909_v12 }
 0x553   : > { %7569 = vmatpush3.bf16.msra.mxu0 %v7956_v9  ;;  %v7991_v9 = vld [vmem:[#allocation20 + $0x68] sm:$0xff]  }
 0x5ad   : > { %v1886_v35 = vpop.permute.xlu0 %1885 }
 0x5ae   : > { %v1891_v37 = vsel %vm1772_vm2, %v1886_v35, 0 }
 0x616   : > { %v1813_v18 = vpop.f32.mrb[8].mxu1 }
 0x617   : > { %v1819_v19 = vmul.f32 0.17677669, %v1813_v18  ;;  %v7534_v20 = vpop.f32.mrb[9].mxu1 }
 0x618   : > { %v1816_v21 = vpop.f32.mrb[10].mxu1  ;;  %v6696_v20 = vld [vmem:[#allocation13] ss:$0 sm:$0xff] }
 0x619   : > { %v7535_v23 = vpop.f32.mrb[11].mxu1  ;;  %v1820_v24 = vsel %vm1481_vm4, %v1819_v19, -1e+30 }
 0x61a   : > { %v1822_v26 = vsel %vm1821_vm5, %v1820_v24, -inf }
 0x61b   : > { %1823 = vmax.xlane.f32.xlu1 %v1822_v26 }
 0x6a8   : > { %v1824_v27 = vpop.xlane.xlu1 %1823 }
 0x6a9   : > { %v1825_v28 = vsub.f32 %v1820_v24, %v1824_v27 }
 0x6ab   : > { %v1826_v29 = vmul.f32 1.442695, %v1825_v28  ;;  %v7957_v28 = vld [vmem:[#allocation17] ss:$8 sps:$4 sm:$0xff]  }
 0x6ad   : > { %8271 = vpow2.f32 %v1826_v29  ;;  %v7959_v29 = vld [vmem:[#allocation17 + $0x4] ss:$8 sps:$4 sm:$0xff]  }
 0x6b7   : > { %v8272_v30 = vpop.eup %8271 }
 0x6b8   : > { %v1828_v31 = vsel %vm1821_vm5, %v8272_v30, 0.0 }
 0x6b9   : > { %1829 = vadd.xlane.f32.xlu1 %v1828_v31  ;;  %v7960_v31 = vld [vmem:[#allocation17 + $0x10] ss:$8 sps:$4 sm:$0xff]  }
 0x6ca   : > { %1882 = vrot.lane.b32.xlu1 %v1769_v16, %s8912_s27 }
 0x746   : > { %v1830_v32 = vpop.xlane.xlu1 %1829 }
 0x747   : > { %8273 = vrcp.f32 %v1830_v32  ;;  %v7965_v32 = vld [vmem:[#allocation17 + $0x24] ss:$8 sps:$4 sm:$0xff]  }
 0x74a   : > { %v1883_v38 = vpop.permute.xlu1 %1882 }
 0x751   : > { %v8274_v33 = vpop.eup %8273 }
 0x752   : > { %v1832_v34 = vmul.f32 %v8274_v33, %v8272_v30  ;;  %v7962_v30 = vld [vmem:[#allocation17 + $0x14] ss:$8 sps:$4 sm:$0xff]   ;;  %v7963_v33 = vld [vmem:[#allocation17 + $0x20] ss:$8 sps:$4 sm:$0xff]  }
 0x754   : > { %v1833_v36 = vpack.c.bf16 %v1832_v34, %v1832_v34 }
 0x756   : > { %7539 = vmatmul.mubr.msk.bf16.vlgmr.msra.gmra.mrb[12].mxu1 %vm1821_vm5, %v1833_v36 }
 0x757   : > { %7543 = vmatpush3.bf16.xpose.msra.mxu1 %v1891_v37  ;;  %7544 = vmatprep.mubr.msk.bf16.mxu1 %vm8911_vm1, %v8909_v12 }
 0x758   : > { %7548 = vmatprep.subr.bf16.mxu1 %v8909_v12 }
 0x75e   : > { %7545 = vmatmul.mubr.msk.bf16.vlgmr.msra.gmra.mrb[16].mxu1 %vm1772_vm2, %v1883_v38  ;;  %v7968_v38 = vld [vmem:[#allocation17 + $0x34] ss:$8 sps:$4 sm:$0xff]  }
 0x75f   : > { %7550 = vmatprep.mubr.msk.bf16.mxu1 %vm8911_vm1, %v8909_v12 }
 0x829   : > { %v1875_v39 = vpop.f32.mrb[12].mxu1 }
 0x82a   : > { %v7540_v41 = vpop.f32.mrb[13].mxu1 }
 0x82b   : > { %v1878_v42 = vpop.f32.mrb[14].mxu1  ;;  %v7971_v41 = vld [vmem:[#allocation17 + $0x44] ss:$8 sps:$4 sm:$0xff]  }
 0x82c   : > { %v7541_v43 = vpop.f32.mrb[15].mxu1  ;;  %v7969_v42 = vld [vmem:[#allocation17 + $0x40] ss:$8 sps:$4 sm:$0xff]  }
 0x82d   : > { %v7974_v43 = vld [vmem:[#allocation17 + $0x54] ss:$8 sps:$4 sm:$0xff]  }
 0x831   : > { %v1927_v44 = vpop.f32.mrb[16].mxu1 }
 0x832   : > { %v1933_v45 = vmul.f32 0.17677669, %v1927_v44  ;;  %v7546_v46 = vpop.f32.mrb[17].mxu1  ;;  %v7972_v44 = vld [vmem:[#allocation17 + $0x50] ss:$8 sps:$4 sm:$0xff]  }
 0x833   : > { %v1930_v47 = vpop.f32.mrb[18].mxu1  ;;  %v7975_v46 = vld [vmem:[#allocation17 + $0x60] ss:$8 sps:$4 sm:$0xff]  }
 0x834   : > { %v7547_v48 = vpop.f32.mrb[19].mxu1  ;;  %v1934_v49 = vsel %vm1481_vm4, %v1933_v45, -1e+30  ;;  %v7977_v45 = vld [vmem:[#allocation17 + $0x64] ss:$8 sps:$4 sm:$0xff]  }
 0x835   : > { %v1935_v50 = vsel %vm1821_vm5, %v1934_v49, -inf  ;;  %v7980_v47 = vld [vmem:[#allocation17 + $0x74] ss:$8 sps:$4 sm:$0xff]   ;;  %v7978_v48 = vld [vmem:[#allocation17 + $0x70] ss:$8 sps:$4 sm:$0xff]  }
 0x836   : > { %1936 = vmax.xlane.f32.xlu1 %v1935_v50 }
 0x8c3   : > { %v1937_v51 = vpop.xlane.xlu1 %1936 }
 0x8c4   : > { %v1938_v52 = vsub.f32 %v1934_v49, %v1937_v51 }
 0x8c6   : > { %v1939_v53 = vmul.f32 1.442695, %v1938_v52 }
 0x8c8   : > { %8275 = vpow2.f32 %v1939_v53  ;;  %v6697_v53 = vld [vmem:[#allocation14] ss:$0 sm:$0xff] }
 0x8d2   : > { %v8276_v54 = vpop.eup %8275 }
 0x8d3   : > { %v1941_v55 = vsel %vm1821_vm5, %v8276_v54, 0.0 }
 0x8d4   : > { %1942 = vadd.xlane.f32.xlu0 %v1941_v55  ;;  %v6698_v55 = vld [vmem:[#allocation16] ss:$0 sm:$0xff] }
 0x8ea   : > { %1948 = vrot.lane.b32.xlu0 %v1771_v15, %s8912_s27 }
 0x961   : > { %v1943_v58 = vpop.xlane.xlu0 %1942 }
 0x962   : > { %8277 = vrcp.f32 %v1943_v58 }
 0x965   : > { %v1949_v60 = vpop.permute.xlu0 %1948 }
 0x966   : > { %v1954_v62 = vsel %vm1837_vm3, %v1949_v60, 0 }
 0x967   : > { %7549 = vmatpush3.bf16.msra.mxu1 %v1954_v62 }
 0x968   : > { %2252 = vmatprep.subr.bf16.mxu1 %v7959_v29 }
 0x96c   : > { %v8278_v63 = vpop.eup %8277 }
 0x96d   : > { %v1945_v0 = vmul.f32 %v8278_v63, %v8276_v54  ;;  %v7981_v63 = vld [vmem:[#allocation20 + $0x40] sm:$0xff]  }
 0x96e   : > { %7176 = vmatprep.subr.bf16.mxu0 %v7981_v63  ;;  %v8000_v63 = vld [vmem:[#allocation11 + $0xc8] ss:$12 sps:$4 sm:$0xff]  }
 0x96f   : > { %v1946_v1 = vpack.c.bf16 %v1945_v0, %v1945_v0  ;;  %v7982_v0 = vld [vmem:[#allocation20] sm:$0xff]  }
 0x971   : > { %7551 = vmatmul.mubr.msk.bf16.vlgmr.msra.gmra.mrb[20].mxu1 %vm1821_vm5, %v1946_v1  ;;  %v7983_v1 = vld [vmem:[#allocation20 + $0x48] sm:$0xff]  }
 0x972   : > { %2284 = vmatprep.mubr.bf16.mxu1 %v8910_v40  ;;  %2253 = vmatpush1.bf16.msra.mxu1 %v7957_v28 }
 0x973   : > { %2254 = vmatprep.subr.bf16.mxu1 %v7962_v30 }
 0x976   : > { %2255 = vmatpush1.bf16.msra.mxu1 %v7960_v31 }
 0x977   : > { %2256 = vmatprep.subr.bf16.mxu1 %v7965_v32 }
 0x97a   : > { %2257 = vmatpush1.bf16.msra.mxu1 %v7963_v33 }
 0x97b   : > { %2258 = vmatprep.subr.bf16.mxu1 %v7968_v38 }
 0xa44   : > { %v1990_v10 = vpop.f32.mrb[20].mxu1 }
 0xa45   : > { %1997 = vrot.lane.b32.xlu1 %v1990_v10, %s8912_s27  ;;  %v7552_v13 = vpop.f32.mrb[21].mxu1  ;;  %v7992_v10 = vld [vmem:[#allocation20 + $0x28] sm:$0xff]  }
 0xa46   : > { %v1993_v14 = vpop.f32.mrb[22].mxu1  ;;  %v7993_v13 = vld [vmem:[#allocation20 + $0x70] sm:$0xff]  }
 0xa47   : > { %v7553_v15 = vpop.f32.mrb[23].mxu1  ;;  %v7994_v14 = vld [vmem:[#allocation20 + $0x30] sm:$0xff]  }
 0xa48   : > { %v7995_v15 = vld [vmem:[#allocation20 + $0x78] sm:$0xff]  }
 0xab7   : > { %v1998_v16 = vpop.permute.xlu1 %1997 }
 0xab8   : > { %v2000_v17 = vsel %vm1772_vm2, %v1875_v39, %v1998_v16  ;;  %v7966_v39 = vld [vmem:[#allocation17 + $0x30] ss:$8 sps:$4 sm:$0xff]   ;;  %v7996_v16 = vld [vmem:[#allocation20 + $0x38] sm:$0xff]  }
 0xab9   : > { %v2017_v18 = vpack.c.bf16 %v2000_v17, %v2000_v17  ;;  %2259 = vmatpush1.bf16.msra.mxu1 %v7966_v39  ;;  %v2160_v17 = vld [vmem:[#allocation19] sm:$0x3] }
 0xaba   : > { %2260 = vmatprep.subr.bf16.mxu1 %v7971_v41 }
 0xabb   : > { %7571 = vmatmul.mubr.bf16.vlgmr.msra.gmra.mrb[12].mxu0 %v2017_v18  ;;  %v2165_v18 = vrot.slane %v2160_v17, %v9566_v61 }
 0xabc   : > { %7177 = vmatpush3.bf16.msra.mxu0 %v7982_v0  ;;  %v8003_v0 = vld [vmem:[#allocation11 + $0xdc] ss:$12 sps:$4 sm:$0xff]  }
 0xabd   : > { %2261 = vmatpush1.bf16.msra.mxu1 %v7969_v42  ;;  %7178 = vmatprep.subr.bf16.mxu0 %v7983_v1  ;;  %v8004_v1 = vld [vmem:[#allocation11 + $0xe0] ss:$12 sps:$4 sm:$0xff]  }
 0xabe   : > { %2262 = vmatprep.subr.bf16.mxu1 %v7974_v43 }
 0xac0   : > { %7179 = vmatpush3.bf16.msra.mxu0 %v7984_v2  ;;  %v8001_v2 = vld [vmem:[#allocation11 + $0xd8] ss:$12 sps:$4 sm:$0xff]  }
 0xac1   : > { %2263 = vmatpush1.bf16.msra.mxu1 %v7972_v44  ;;  %7180 = vmatprep.subr.bf16.mxu0 %v7985_v3  ;;  %v8007_v3 = vld [vmem:[#allocation11 + $0xf4] ss:$12 sps:$4 sm:$0xff]  }
 0xac2   : > { %2264 = vmatprep.subr.bf16.mxu1 %v7977_v45 }
 0xac4   : > { %7181 = vmatpush3.bf16.msra.mxu0 %v7986_v4 }
 0xac5   : > { %2265 = vmatpush1.bf16.msra.mxu1 %v7975_v46  ;;  %7182 = vmatprep.subr.bf16.mxu0 %v7987_v5 }
 0xac6   : > { %2266 = vmatprep.subr.bf16.mxu1 %v7980_v47 }
 0xac8   : > { %7183 = vmatpush3.bf16.msra.mxu0 %v7988_v6 }
 0xac9   : > { %2267 = vmatpush1.bf16.msra.mxu1 %v7978_v48  ;;  %7184 = vmatprep.subr.bf16.mxu0 %v7989_v7 }
 0xacc   : > { %7185 = vmatpush3.bf16.msra.mxu0 %v7990_v8 }
 0xacd   : > { %7186 = vmatprep.subr.bf16.mxu0 %v7991_v9  ;;  %v8008_v9 = vld [vmem:[#allocation11 + $0xf8] ss:$12 sps:$4 sm:$0xff]  }
 0xad0   : > { %7187 = vmatpush3.bf16.msra.mxu0 %v7992_v10  ;;  %v8011_v10 = vld [vmem:[#allocation11 + $0x10c] ss:$12 sps:$4 sm:$0xff]  }
 0xad1   : > { %7188 = vmatprep.subr.bf16.mxu0 %v7993_v13  ;;  %v8009_v13 = vld [vmem:[#allocation11 + $0x108] ss:$12 sps:$4 sm:$0xff]  }
 0xad4   : > { %7189 = vmatpush3.bf16.msra.mxu0 %v7994_v14  ;;  %v8012_v14 = vld [vmem:[#allocation11 + $0x110] ss:$12 sps:$4 sm:$0xff]  }
 0xad5   : > { %7190 = vmatprep.subr.bf16.mxu0 %v7995_v15  ;;  %v8015_v15 = vld [vmem:[#allocation11 + $0x124] ss:$12 sps:$4 sm:$0xff]  }
 0xad8   : > { %7191 = vmatpush3.bf16.msra.mxu0 %v7996_v16  ;;  %v8013_v16 = vld [vmem:[#allocation11 + $0x120] ss:$12 sps:$4 sm:$0xff]  }
 0xad9   : > { %7574 = vmatprep.subr.bf16.mxu0 %v8909_v12 }
 0xb8e   : > { %v2100_v19 = vpop.f32.mrb[12].mxu0 }
 0xb8f   : > { %v2106_v21 = vadd.f32 %v2100_v19, %v9523_v11  ;;  %v7572_v23 = vpop.f32.mrb[13].mxu0  ;;  %v2169_v19 = vrot.slane %v2160_v17, %v9556_v57  ;;  %v8016_v17 = vld [vmem:[#allocation11 + $0x128] ss:$12 sps:$4 sm:$0xff]  }
 0xb90   : > { %v2103_v24 = vpop.f32.mrb[14].mxu0 }
 0xb91   : > { %v9634_v26 = vadd.f32 %v6696_v20, %v2106_v21  ;;  %v7573_v27 = vpop.f32.mrb[15].mxu0 }
 0xb93   : > { %2117 = vadd.xlane.f32.xlu1 %v9634_v26 }
 0xc20   : > { %v2118_v11 = vpop.xlane.xlu1 %2117 }
 0xc21   : > { %v2119_v34 = vmul.f32 0.015625, %v2118_v11 }
 0xc23   : > { %v2120_v35 = vsub.f32 %v9634_v26, %v2119_v34 }
 0xc25   : > { %v2121_v36 = vmul.f32 %v9534_v25, %v2120_v35 }
 0xc27   : > { %v2122_v37 = vmul.f32 %v2121_v36, %v2121_v36 }
 0xc29   : > { %2123 = vadd.xlane.f32.xlu0 %v2122_v37 }
 0xcb6   : > { %v2124_v49 = vpop.xlane.xlu0 %2123 }
 0xcb7   : > { %v2125_v50 = vmul.f32 0.015625, %v2124_v49 }
 0xcb9   : > { %v2126_v51 = vadd.f32 1e-06, %v2125_v50 }
 0xcbb   : > { %8279 = vrsqrt.f32 %v2126_v51 }
 0xcc5   : > { %v8280_v52 = vpop.eup %8279 }
 0xcc6   : > { %v2128_v54 = vmul.f32 %v8280_v52, %v2121_v36 }
 0xcc8   : > { %v2135_v58 = vmul.f32 %v6697_v53, %v2128_v54  ;;  %v6731_v54 = vld [vmem:[#allocation22] ss:$0 sm:$0xff] }
 0xcca   : > { %v2142_v60 = vadd.f32 %v6698_v55, %v2135_v58 }
 0xccc   : > { %v2159_v62 = vpack.c.bf16 %v2142_v60, %v2142_v60  ;;  %v7997_v60 = vld [vmem:[#allocation11 + $0xc0] ss:$12 sps:$4 sm:$0xff]  }
 0xcce   : > { %2285 = vmatmul.mubr.bf16.vlgmr.msra.gmra.mrb[24].mxu1 %v2159_v62  ;;  %v7999_v62 = vld [vmem:[#allocation11 + $0xc4] ss:$12 sps:$4 sm:$0xff]  }
 0xccf   : > { %2732 = vmatprep.mubr.bf16.mxu1 %v8910_v40  ;;  %2700 = vmatprep.subr.bf16.mxu1 %v7999_v62 }
 0xcd0   : > { %2701 = vmatpush1.bf16.msra.mxu1 %v7997_v60 }
 0xcd1   : > { %2702 = vmatprep.subr.bf16.mxu1 %v8003_v0 }
 0xcd4   : > { %2703 = vmatpush1.bf16.msra.mxu1 %v8001_v2 }
 0xcd5   : > { %2704 = vmatprep.subr.bf16.mxu1 %v8007_v3 }
 0xda1   : > { %v2286_v20 = vpop.f32.mrb[24].mxu1 }
 0xda2   : > { %v2287_v21 = vadd.f32 %v2286_v20, %v2165_v18  ;;  %v2288_v23 = vpop.f32.mrb[25].mxu1  ;;  %v8019_v18 = vld [vmem:[#allocation11 + $0x13c] ss:$12 sps:$4 sm:$0xff]   ;;  %v8020_v20 = vld [vmem:[#allocation11 + $0x140] ss:$12 sps:$4 sm:$0xff]  }
 0xda3   : > { %v2289_v24 = vadd.f32 %v2288_v23, %v2169_v19  ;;  %v2290_v27 = vpop.f32.mrb[26].mxu1  ;;  %v8017_v19 = vld [vmem:[#allocation11 + $0x138] ss:$12 sps:$4 sm:$0xff]   ;;  %v8021_v23 = vld [vmem:[#allocation11 + $0x150] ss:$12 sps:$4 sm:$0xff]  }
 0xda4   : > { %v2293_v28 = vmul.f32 %v2287_v21, %v2287_v21  ;;  %v2291_v29 = vpop.f32.mrb[27].mxu1  ;;  %v8027_v27 = vld [vmem:[#allocation11 + $0x16c] ss:$12 sps:$4 sm:$0xff]  }
 0xda5   : > { %v2294_v30 = vmul.f32 %v2289_v24, %v2289_v24  ;;  %v8028_v29 = vld [vmem:[#allocation11 + $0x170] ss:$12 sps:$4 sm:$0xff]  }
 0xda6   : > { %v2295_v31 = vmul.f32 %v2293_v28, %v2287_v21  ;;  %v8025_v28 = vld [vmem:[#allocation11 + $0x168] ss:$12 sps:$4 sm:$0xff]  }
 0xda7   : > { %v2296_v32 = vmul.f32 %v2294_v30, %v2289_v24 }
 0xda8   : > { %v2297_v33 = vmul.f32 0.044715, %v2295_v31 }
 0xda9   : > { %v2298_v11 = vmul.f32 0.044715, %v2296_v32 }
 0xdaa   : > { %v2299_v34 = vadd.f32 %v2297_v33, %v2287_v21 }
 0xdab   : > { %v2300_v35 = vadd.f32 %v2298_v11, %v2289_v24  ;;  %v6732_v11 = vld [vmem:[#allocation8 + $0x1] ss:$0 sm:$0xff] }
 0xdac   : > { %v2301_v36 = vmul.f32 0.7978846, %v2299_v34 }
 0xdad   : > { %v2302_v37 = vmul.f32 0.7978846, %v2300_v35  ;;  %v6733_v35 = vld [vmem:[#allocation10 + $0x1] ss:$0 sm:$0xff] }
 0xdae   : > { %8281 = vtanh.f32 %v2301_v36 }
 0xdaf   : > { %8283 = vtanh.f32 %v2302_v37 }
 0xdb8   : > { %v8282_v38 = vpop.eup %8281 }
 0xdb9   : > { %v8284_v39 = vpop.eup %8283  ;;  %v2305_v41 = vadd.f32 1.0, %v8282_v38 }
 0xdba   : > { %v2306_v42 = vadd.f32 1.0, %v8284_v39  ;;  %v6734_v39 = vld [vmem:[%s10091_s5 + $0x3] sm:$0x7] }
 0xdbb   : > { %v2307_v43 = vmul.f32 0.5, %v2305_v41  ;;  %v2564_v41 = vrot.slane %v6734_v39, %v9556_v57 }
 0xdbc   : > { %v2308_v44 = vmul.f32 0.5, %v2306_v42 }
 0xdbd   : > { %v2309_v45 = vmul.f32 %v2307_v43, %v2287_v21  ;;  %v8023_v21 = vld [vmem:[#allocation11 + $0x154] ss:$12 sps:$4 sm:$0xff]  }
 0xdbe   : > { %v2310_v46 = vmul.f32 %v2308_v44, %v2289_v24  ;;  %v8024_v24 = vld [vmem:[#allocation11 + $0x158] ss:$12 sps:$4 sm:$0xff]  }
 0xdbf   : > { %v2343_v48 = vpack.c.bf16 %v2309_v45, %v2309_v45 }
 0xdc0   : > { %v2344_v47 = vpack.c.bf16 %v2310_v46, %v2310_v46  ;;  %v2568_v46 = vrot.slane %v6734_v39, %v9562_v59 }
 0xdc2   : > { %2473 = vmatprep.mubr.bf16.mxu0 %v2344_v47 }
 0xdc3   : > { %2474 = vmatmul.mubr.bf16.vlgmr.msra.gmra.mrb[16].mxu0 %v2343_v48 }
 0xdc4   : > { %7590 = vmatprep.mubr.msk.bf16.mxu0 %vm8911_vm1, %v8909_v12  ;;  %7575 = vmatpush3.bf16.msra.mxu0 %v8000_v63 }
 0xdc5   : > { %7576 = vmatprep.subr.bf16.mxu0 %v8909_v12 }
 0xdc8   : > { %7577 = vmatpush3.bf16.msra.mxu0 %v8004_v1 }
 0xdc9   : > { %7578 = vmatprep.subr.bf16.mxu0 %v8909_v12 }
 0xdcc   : > { %7579 = vmatpush3.bf16.msra.mxu0 %v8008_v9 }
 0xdcd   : > { %7580 = vmatprep.subr.bf16.mxu0 %v8909_v12 }
 0xdd0   : > { %7581 = vmatpush3.bf16.msra.mxu0 %v8012_v14 }
 0xdd1   : > { %7582 = vmatprep.subr.bf16.mxu0 %v8909_v12 }
 0xdd4   : > { %7583 = vmatpush3.bf16.msra.mxu0 %v8016_v17 }
 0xdd5   : > { %7584 = vmatprep.subr.bf16.mxu0 %v8909_v12 }
 0xdd8   : > { %7585 = vmatpush3.bf16.msra.mxu0 %v8020_v20 }
 0xdd9   : > { %7586 = vmatprep.subr.bf16.mxu0 %v8909_v12 }
 0xddc   : > { %7587 = vmatpush3.bf16.msra.mxu0 %v8024_v24 }
 0xddd   : > { %7588 = vmatprep.subr.bf16.mxu0 %v8909_v12 }
 0xde0   : > { %7589 = vmatpush3.bf16.msra.mxu0 %v8028_v29 }
 0xde1   : > { %7618 = vmatprep.subr.bf16.mxu0 %v8909_v12 }
 0xe96   : > { %v7192_v49 = vpop.f32.mrb[16].mxu0 }
 0xe97   : > { %v7193_v50 = vpop.f32.mrb[17].mxu0 }
 0xe98   : > { %v7194_v51 = vadd.f32 %v7193_v50, %v7192_v49  ;;  %v7195_v52 = vpop.f32.mrb[18].mxu0 }
 0xe99   : > { %v7196_v53 = vpop.f32.mrb[19].mxu0  ;;  %v2560_v52 = vrot.slane %v6734_v39, %v9566_v61 }
 0xe9a   : > { %v2481_v55 = vadd.f32 %v7194_v51, %v9634_v26  ;;  %v8005_v26 = vld [vmem:[#allocation11 + $0xf0] ss:$12 sps:$4 sm:$0xff]  }
 0xe9b   : > { %2705 = vmatpush1.bf16.msra.mxu1 %v8005_v26 }
 0xe9c   : > { %v9646_v58 = vadd.f32 %v6731_v54, %v2481_v55  ;;  %2706 = vmatprep.subr.bf16.mxu1 %v8011_v10 }
 0xe9e   : > { %2494 = vadd.xlane.f32.xlu0 %v9646_v58 }
 0xe9f   : > { %2707 = vmatpush1.bf16.msra.mxu1 %v8009_v13 }
 0xea0   : > { %2708 = vmatprep.subr.bf16.mxu1 %v8015_v15 }
 0xea3   : > { %2709 = vmatpush1.bf16.msra.mxu1 %v8013_v16 }
 0xea4   : > { %2710 = vmatprep.subr.bf16.mxu1 %v8019_v18 }
 0xea7   : > { %2711 = vmatpush1.bf16.msra.mxu1 %v8017_v19 }
 0xea8   : > { %2712 = vmatprep.subr.bf16.mxu1 %v8023_v21 }
 0xeab   : > { %2713 = vmatpush1.bf16.msra.mxu1 %v8021_v23 }
 0xeac   : > { %2714 = vmatprep.subr.bf16.mxu1 %v8027_v27 }
 0xeaf   : > { %2715 = vmatpush1.bf16.msra.mxu1 %v8025_v28 }
 0xeb0   : > { %7594 = vmatprep.subr.bf16.mxu1 %v8909_v12 }
 0xf2b   : > { %v2495_v4 = vpop.xlane.xlu0 %2494 }
 0xf2c   : > { %v2496_v5 = vmul.f32 0.015625, %v2495_v4 }
 0xf2e   : > { %v2497_v6 = vsub.f32 %v9646_v58, %v2496_v5 }
 0xf30   : > { %v2498_v7 = vmul.f32 %v9534_v25, %v2497_v6 }
 0xf32   : > { %v2499_v8 = vmul.f32 %v2498_v7, %v2498_v7 }
 0xf34   : > { %2500 = vadd.xlane.f32.xlu1 %v2499_v8 }
 0xfc1   : > { %v2501_v30 = vpop.xlane.xlu1 %2500 }
 0xfc2   : > { %v2502_v31 = vmul.f32 0.015625, %v2501_v30 }
 0xfc4   : > { %v2503_v32 = vadd.f32 1e-06, %v2502_v31 }
 0xfc6   : > { %8285 = vrsqrt.f32 %v2503_v32 }
 0xfd0   : > { %v8286_v33 = vpop.eup %8285 }
 0xfd1   : > { %v2505_v34 = vmul.f32 %v8286_v33, %v2498_v7 }
 0xfd3   : > { %v2512_v36 = vmul.f32 %v6732_v11, %v2505_v34 }
 0xfd5   : > { %v2519_v37 = vadd.f32 %v6733_v35, %v2512_v36 }
 0xfd7   : > { %v2553_v38 = vpack.c.bf16 %v2519_v37, %v2519_v37 }
 0xfd9   : > { %2733 = vmatmul.mubr.bf16.vlgmr.msra.gmra.mrb[28].mxu1 %v2553_v38  ;;  %7591 = vmatmul.mubr.bf16.vlgmr.msra.gmra.mrb[20].mxu0 %v2553_v38 }
 0xfda   : > { %7596 = vmatprep.mubr.msk.bf16.mxu1 %vm8911_vm1, %v8909_v12  ;;  %7634 = vmatprep.mubr.msk.bf16.mxu0 %vm8911_vm1, %v8909_v12 }
0x10ac   : > { %v2734_v42 = vpop.f32.mrb[28].mxu1  ;;  %v2775_v43 = vpop.f32.mrb[20].mxu0 }
0x10ad   : > { %v2736_v44 = vpop.f32.mrb[29].mxu1  ;;  %v7592_v45 = vpop.f32.mrb[21].mxu0  ;;  %v2776_v54 = vadd.f32 %v2775_v43, %v2568_v46  ;;  %v2735_v60 = vadd.f32 %v2734_v42, %v2560_v52  ;;  %v8030_v46 = vld [vmem:[%s10092_s2 + $0x48] sm:$0xff]   ;;  %v8036_v52 = vld [vmem:[%s10092_s2 + $0x78] sm:$0xff]  }
0x10ae   : > { %v2737_v47 = vadd.f32 %v2736_v44, %v2564_v41  ;;  %v2738_v48 = vpop.f32.mrb[30].mxu1  ;;  %v2778_v49 = vpop.f32.mrb[22].mxu0  ;;  %v8029_v45 = vld [vmem:[%s10092_s2 + $0x40] sm:$0xff]  }
0x10af   : > { %v2739_v50 = vpop.f32.mrb[31].mxu1  ;;  %v7593_v51 = vpop.f32.mrb[23].mxu0  ;;  %v2783_v62 = vpack.c.bf16 %v2776_v54, %v2776_v54  ;;  %v2781_v63 = vpack.c.bf16 %v2735_v60, %v2735_v60  ;;  %7619 = vmatpush3.bf16.msra.mxu0 %v8029_v45  ;;  %v8032_v48 = vld [vmem:[%s10092_s2 + $0x58] sm:$0xff]   ;;  %v8033_v49 = vld [vmem:[%s10092_s2 + $0x60] sm:$0xff]  }
0x10b0   : > { %v2782_v53 = vpack.c.bf16 %v2737_v47, %v2737_v47  ;;  %7620 = vmatprep.subr.bf16.mxu0 %v8909_v12  ;;  %v8031_v47 = vld [vmem:[%s10092_s2 + $0x50] sm:$0xff]   ;;  %v8034_v50 = vld [vmem:[%s10092_s2 + $0x68] sm:$0xff]  }
0x10b1   : > { %v2848_v0 = vsel %vm1837_vm3, %v2783_v62, 0  ;;  %v8035_v51 = vld [vmem:[%s10092_s2 + $0x70] sm:$0xff]  }
0x10b2   : > { %v2788_v55 = vsel %vm1772_vm2, %v2782_v53, 0  ;;  %v8066_v45 = vld [vmem:[#allocation20 + $0x90] sm:$0xff]  }
0x10b3   : > { %7595 = vmatpush3.bf16.xpose.msra.mxu1 %v2788_v55  ;;  %7621 = vmatpush3.bf16.msra.mxu0 %v8030_v46  ;;  %v8067_v46 = vld [vmem:[#allocation20 + $0xd8] sm:$0xff]  }
0x10b4   : > { %7600 = vmatprep.subr.bf16.mxu1 %v8909_v12  ;;  %7622 = vmatprep.subr.bf16.mxu0 %v8909_v12 }
0x10b7   : > { %7623 = vmatpush3.bf16.msra.mxu0 %v8031_v47  ;;  %v8068_v47 = vld [vmem:[#allocation20 + $0x98] sm:$0xff]  }
0x10b8   : > { %7624 = vmatprep.subr.bf16.mxu0 %v8909_v12 }
0x10ba   : > { %7597 = vmatmul.mubr.msk.bf16.vlgmr.msra.gmra.mrb[32].mxu1 %vm1772_vm2, %v2781_v63 }
0x10bb   : > { %7601 = vmatpush3.bf16.msra.mxu1 %v2848_v0  ;;  %7602 = vmatprep.mubr.msk.bf16.mxu1 %vm8911_vm1, %v8909_v12 }
0x10bc   : > { %7606 = vmatprep.subr.bf16.mxu1 %v8909_v12  ;;  %7625 = vmatpush3.bf16.msra.mxu0 %v8032_v48  ;;  %v8069_v48 = vld [vmem:[#allocation20 + $0xe0] sm:$0xff]  }
0x10bd   : > { %7626 = vmatprep.subr.bf16.mxu0 %v8909_v12 }
0x10c0   : > { %7627 = vmatpush3.bf16.msra.mxu0 %v8033_v49  ;;  %v8070_v49 = vld [vmem:[#allocation20 + $0xa0] sm:$0xff]  }
0x10c1   : > { %7628 = vmatprep.subr.bf16.mxu0 %v8909_v12 }
0x10c4   : > { %7629 = vmatpush3.bf16.msra.mxu0 %v8034_v50  ;;  %v8071_v50 = vld [vmem:[#allocation20 + $0xe8] sm:$0xff]  }
0x10c5   : > { %7630 = vmatprep.subr.bf16.mxu0 %v8909_v12 }
0x10c8   : > { %7631 = vmatpush3.bf16.msra.mxu0 %v8035_v51  ;;  %v8072_v51 = vld [vmem:[#allocation20 + $0xa8] sm:$0xff]  }
0x10c9   : > { %7632 = vmatprep.subr.bf16.mxu0 %v8909_v12 }
0x10cc   : > { %7633 = vmatpush3.bf16.msra.mxu0 %v8036_v52  ;;  %v8073_v52 = vld [vmem:[#allocation20 + $0xf0] sm:$0xff]  }
0x118d   : > { %v2824_v1 = vpop.f32.mrb[32].mxu1 }
0x118e   : > { %v2830_v2 = vmul.f32 0.17677669, %v2824_v1  ;;  %v7598_v3 = vpop.f32.mrb[33].mxu1 }
0x118f   : > { %v2827_v26 = vpop.f32.mrb[34].mxu1 }
0x1190   : > { %v7599_v4 = vpop.f32.mrb[35].mxu1  ;;  %v2831_v5 = vsel %vm1481_vm4, %v2830_v2, -1e+30  ;;  %v6787_v2 = vld [vmem:[#allocation13 + $0x1] ss:$0 sm:$0xff] }
0x1191   : > { %v2832_v6 = vsel %vm1821_vm5, %v2831_v5, -inf }
0x1192   : > { %2833 = vmax.xlane.f32.xlu0 %v2832_v6  ;;  %v8037_v6 = vld [vmem:[#allocation17 + $0x80] ss:$8 sps:$4 sm:$0xff]  }
0x11a8   : > { %2894 = vrot.lane.b32.xlu0 %v2782_v53, %s8912_s27 }
0x121f   : > { %v2834_v7 = vpop.xlane.xlu0 %2833 }
0x1220   : > { %v2835_v8 = vsub.f32 %v2831_v5, %v2834_v7  ;;  %v8039_v7 = vld [vmem:[#allocation17 + $0x84] ss:$8 sps:$4 sm:$0xff]  }
0x1222   : > { %v2836_v9 = vmul.f32 1.442695, %v2835_v8  ;;  %v8042_v8 = vld [vmem:[#allocation17 + $0x94] ss:$8 sps:$4 sm:$0xff]  }
0x1223   : > { %v2895_v17 = vpop.permute.xlu0 %2894 }
0x1224   : > { %8287 = vpow2.f32 %v2836_v9  ;;  %v2900_v19 = vsel %vm1772_vm2, %v2895_v17, 0  ;;  %v8040_v9 = vld [vmem:[#allocation17 + $0x90] ss:$8 sps:$4 sm:$0xff]  }
0x122e   : > { %v8288_v10 = vpop.eup %8287 }
0x122f   : > { %v2838_v13 = vsel %vm1821_vm5, %v8288_v10, 0.0 }
0x1230   : > { %2839 = vadd.xlane.f32.xlu1 %v2838_v13  ;;  %v8043_v13 = vld [vmem:[#allocation17 + $0xa0] ss:$8 sps:$4 sm:$0xff]  }
0x1241   : > { %2891 = vrot.lane.b32.xlu1 %v2781_v63, %s8912_s27 }
0x12bd   : > { %v2840_v14 = vpop.xlane.xlu1 %2839 }
0x12be   : > { %8289 = vrcp.f32 %v2840_v14 }
0x12c1   : > { %v2892_v20 = vpop.permute.xlu1 %2891 }
0x12c8   : > { %v8290_v15 = vpop.eup %8289 }
0x12c9   : > { %v2842_v16 = vmul.f32 %v8290_v15, %v8288_v10  ;;  %v8045_v10 = vld [vmem:[#allocation17 + $0xa4] ss:$8 sps:$4 sm:$0xff]  }
0x12cb   : > { %v2843_v18 = vpack.c.bf16 %v2842_v16, %v2842_v16 }
0x12cd   : > { %7603 = vmatmul.mubr.msk.bf16.vlgmr.msra.gmra.mrb[36].mxu1 %vm1821_vm5, %v2843_v18  ;;  %v8048_v18 = vld [vmem:[#allocation17 + $0xb4] ss:$8 sps:$4 sm:$0xff]  }
0x12ce   : > { %7607 = vmatpush3.bf16.xpose.msra.mxu1 %v2900_v19  ;;  %7608 = vmatprep.mubr.msk.bf16.mxu1 %vm8911_vm1, %v8909_v12  ;;  %v8046_v19 = vld [vmem:[#allocation17 + $0xb0] ss:$8 sps:$4 sm:$0xff]  }
0x12cf   : > { %7612 = vmatprep.subr.bf16.mxu1 %v8909_v12 }
0x12d5   : > { %7609 = vmatmul.mubr.msk.bf16.vlgmr.msra.gmra.mrb[40].mxu1 %vm1772_vm2, %v2892_v20  ;;  %v8051_v20 = vld [vmem:[#allocation17 + $0xc4] ss:$8 sps:$4 sm:$0xff]  }
0x12d6   : > { %7614 = vmatprep.mubr.msk.bf16.mxu1 %vm8911_vm1, %v8909_v12 }
0x13a0   : > { %v2884_v21 = vpop.f32.mrb[36].mxu1 }
0x13a1   : > { %v7604_v23 = vpop.f32.mrb[37].mxu1 }
0x13a2   : > { %v2887_v24 = vpop.f32.mrb[38].mxu1  ;;  %v8054_v23 = vld [vmem:[#allocation17 + $0xd4] ss:$8 sps:$4 sm:$0xff]  }
0x13a3   : > { %v7605_v27 = vpop.f32.mrb[39].mxu1  ;;  %v8052_v24 = vld [vmem:[#allocation17 + $0xd0] ss:$8 sps:$4 sm:$0xff]  }
0x13a4   : > { %v8057_v27 = vld [vmem:[#allocation17 + $0xe4] ss:$8 sps:$4 sm:$0xff]  }
0x13a8   : > { %v2936_v28 = vpop.f32.mrb[40].mxu1 }
0x13a9   : > { %v2942_v29 = vmul.f32 0.17677669, %v2936_v28  ;;  %v7610_v30 = vpop.f32.mrb[41].mxu1  ;;  %v8055_v28 = vld [vmem:[#allocation17 + $0xe0] ss:$8 sps:$4 sm:$0xff]  }
0x13aa   : > { %v2939_v31 = vpop.f32.mrb[42].mxu1  ;;  %v8058_v30 = vld [vmem:[#allocation17 + $0xf0] ss:$8 sps:$4 sm:$0xff]  }
0x13ab   : > { %v7611_v32 = vpop.f32.mrb[43].mxu1  ;;  %v2943_v33 = vsel %vm1481_vm4, %v2942_v29, -1e+30  ;;  %v8060_v29 = vld [vmem:[#allocation17 + $0xf4] ss:$8 sps:$4 sm:$0xff]  }
0x13ac   : > { %v2944_v11 = vsel %vm1821_vm5, %v2943_v33, -inf }
0x13ad   : > { %2945 = vmax.xlane.f32.xlu1 %v2944_v11 }
0x143a   : > { %v2946_v34 = vpop.xlane.xlu1 %2945 }
0x143b   : > { %v2947_v35 = vsub.f32 %v2943_v33, %v2946_v34  ;;  %v6788_v34 = vld [vmem:[#allocation14 + $0x1] ss:$0 sm:$0xff] }
0x143d   : > { %v2948_v36 = vmul.f32 1.442695, %v2947_v35 }
0x143f   : > { %8291 = vpow2.f32 %v2948_v36  ;;  %v6789_v36 = vld [vmem:[#allocation16 + $0x1] ss:$0 sm:$0xff] }
0x1449   : > { %v8292_v37 = vpop.eup %8291 }
0x144a   : > { %v2950_v38 = vsel %vm1821_vm5, %v8292_v37, 0.0 }
0x144b   : > { %2951 = vadd.xlane.f32.xlu0 %v2950_v38 }
0x1461   : > { %2957 = vrot.lane.b32.xlu0 %v2783_v62, %s8912_s27 }
0x14d8   : > { %v2952_v39 = vpop.xlane.xlu0 %2951 }
0x14d9   : > { %8293 = vrcp.f32 %v2952_v39 }
0x14dc   : > { %v2958_v41 = vpop.permute.xlu0 %2957 }
0x14dd   : > { %v2963_v42 = vsel %vm1837_vm3, %v2958_v41, 0  ;;  %v8061_v41 = vld [vmem:[#allocation20 + $0xc0] sm:$0xff]  }
0x14de   : > { %7613 = vmatpush3.bf16.msra.mxu1 %v2963_v42  ;;  %v8062_v42 = vld [vmem:[#allocation20 + $0x80] sm:$0xff]   ;;  %7224 = vmatprep.subr.bf16.mxu0 %v8061_v41 }
0x14df   : > { %3267 = vmatprep.subr.bf16.mxu1 %v8039_v7 }
0x14e3   : > { %v8294_v22 = vpop.eup %8293 }
0x14e4   : > { %v2954_v43 = vmul.f32 %v8294_v22, %v8292_v37  ;;  %v8063_v22 = vld [vmem:[#allocation20 + $0xc8] sm:$0xff]  }
0x14e6   : > { %v2955_v44 = vpack.c.bf16 %v2954_v43, %v2954_v43  ;;  %v8064_v43 = vld [vmem:[#allocation20 + $0x88] sm:$0xff]  }
0x14e8   : > { %7615 = vmatmul.mubr.msk.bf16.vlgmr.msra.gmra.mrb[44].mxu1 %vm1821_vm5, %v2955_v44  ;;  %v8065_v44 = vld [vmem:[#allocation20 + $0xd0] sm:$0xff]  }
0x14e9   : > { %3299 = vmatprep.mubr.bf16.mxu1 %v8910_v40  ;;  %3268 = vmatpush1.bf16.msra.mxu1 %v8037_v6 }
0x14ea   : > { %3269 = vmatprep.subr.bf16.mxu1 %v8042_v8 }
0x14ed   : > { %3270 = vmatpush1.bf16.msra.mxu1 %v8040_v9 }
0x14ee   : > { %3271 = vmatprep.subr.bf16.mxu1 %v8045_v10 }
0x14f1   : > { %3272 = vmatpush1.bf16.msra.mxu1 %v8043_v13 }
0x14f2   : > { %3273 = vmatprep.subr.bf16.mxu1 %v8048_v18 }
0x14f5   : > { %3274 = vmatpush1.bf16.msra.mxu1 %v8046_v19 }
0x14f6   : > { %3275 = vmatprep.subr.bf16.mxu1 %v8051_v20 }
0x15bb   : > { %v2999_v53 = vpop.f32.mrb[44].mxu1 }
0x15bc   : > { %3006 = vrot.lane.b32.xlu1 %v2999_v53, %s8912_s27  ;;  %v7616_v54 = vpop.f32.mrb[45].mxu1  ;;  %v8074_v53 = vld [vmem:[#allocation20 + $0xb0] sm:$0xff]   ;;  %s10095_s27 = sld [smem:[#allocation57_spill]] }
0x15bd   : > { %v3002_v55 = vpop.f32.mrb[46].mxu1  ;;  %v8075_v54 = vld [vmem:[#allocation20 + $0xf8] sm:$0xff]  }
0x15be   : > { %v7617_v60 = vpop.f32.mrb[47].mxu1  ;;  %v8076_v55 = vld [vmem:[#allocation20 + $0xb8] sm:$0xff]  }
0x15bf   : > { %v3175_v60 = vld [vmem:[#allocation19 + $0x2] sm:$0x3] }
0x162e   : > { %v3007_v62 = vpop.permute.xlu1 %3006 }
0x162f   : > { %v3009_v63 = vsel %vm1772_vm2, %v2884_v21, %v3007_v62  ;;  %v8049_v21 = vld [vmem:[#allocation17 + $0xc0] ss:$8 sps:$4 sm:$0xff]   ;;  %v3180_v62 = vrot.slane %v3175_v60, %v9566_v61 }
0x1630   : > { %v3027_v0 = vpack.c.bf16 %v3009_v63, %v3009_v63  ;;  %3276 = vmatpush1.bf16.msra.mxu1 %v8049_v21  ;;  %v3184_v63 = vrot.slane %v3175_v60, %v9556_v57 }
0x1631   : > { %3277 = vmatprep.subr.bf16.mxu1 %v8054_v23 }
0x1632   : > { %7635 = vmatmul.mubr.bf16.vlgmr.msra.gmra.mrb[24].mxu0 %v3027_v0 }
0x1633   : > { %7225 = vmatpush3.bf16.msra.mxu0 %v8062_v42 }
0x1634   : > { %3278 = vmatpush1.bf16.msra.mxu1 %v8052_v24  ;;  %7226 = vmatprep.subr.bf16.mxu0 %v8063_v22  ;;  %v3531_v22 = vld [vmem:[#allocation25 + $0x28] sm:$0xff] }
0x1635   : > { %3279 = vmatprep.subr.bf16.mxu1 %v8057_v27 }
0x1637   : > { %7227 = vmatpush3.bf16.msra.mxu0 %v8064_v43  ;;  %v3534_v43 = vld [vmem:[#allocation25 + $0x40] sm:$0xff] }
0x1638   : > { %3280 = vmatpush1.bf16.msra.mxu1 %v8055_v28  ;;  %7228 = vmatprep.subr.bf16.mxu0 %v8065_v44  ;;  %v3538_v44 = vld [vmem:[#allocation25 + $0x60] sm:$0xff] }
0x1639   : > { %3281 = vmatprep.subr.bf16.mxu1 %v8060_v29 }
0x163b   : > { %7229 = vmatpush3.bf16.msra.mxu0 %v8066_v45 }
0x163c   : > { %3282 = vmatpush1.bf16.msra.mxu1 %v8058_v30  ;;  %7230 = vmatprep.subr.bf16.mxu0 %v8067_v46 }
0x163f   : > { %7231 = vmatpush3.bf16.msra.mxu0 %v8068_v47  ;;  %v6832_v47 = vcombine.high %v3534_v43, %v3538_v44 }
0x1640   : > { %7232 = vmatprep.subr.bf16.mxu0 %v8069_v48  ;;  %v3535_v48 = vld [vmem:[#allocation25 + $0x48] sm:$0xff] }
0x1643   : > { %7233 = vmatpush3.bf16.msra.mxu0 %v8070_v49  ;;  %v3539_v49 = vld [vmem:[#allocation25 + $0x68] sm:$0xff] }
0x1644   : > { %7234 = vmatprep.subr.bf16.mxu0 %v8071_v50  ;;  %v3542_v50 = vld [vmem:[#allocation25 + $0x80] sm:$0xff] }
0x1647   : > { %7235 = vmatpush3.bf16.msra.mxu0 %v8072_v51  ;;  %v3546_v51 = vld [vmem:[#allocation25 + $0xa0] sm:$0xff] }
0x1648   : > { %7236 = vmatprep.subr.bf16.mxu0 %v8073_v52  ;;  %v3543_v52 = vld [vmem:[#allocation25 + $0x88] sm:$0xff]  ;;  %v6840_v60 = vcombine.high %v3542_v50, %v3546_v51 }
0x164b   : > { %7237 = vmatpush3.bf16.msra.mxu0 %v8074_v53  ;;  %v3547_v53 = vld [vmem:[#allocation25 + $0xa8] sm:$0xff] }
0x164c   : > { %7238 = vmatprep.subr.bf16.mxu0 %v8075_v54  ;;  %v6831_v54 = vcombine.low %v3534_v43, %v3538_v44 }
0x164f   : > { %7239 = vmatpush3.bf16.msra.mxu0 %v8076_v55  ;;  %v6833_v55 = vcombine.low %v3535_v48, %v3539_v49 }
0x1705   : > { %v3110_v1 = vpop.f32.mrb[24].mxu0 }
0x1706   : > { %v3116_v12 = vadd.f32 %v3110_v1, %v9646_v58  ;;  %v7636_v3 = vpop.f32.mrb[25].mxu0 }
0x1707   : > { %v3113_v26 = vpop.f32.mrb[26].mxu0 }
0x1708   : > { %v9733_v4 = vadd.f32 %v6787_v2, %v3116_v12  ;;  %v7637_v5 = vpop.f32.mrb[27].mxu0 }
0x170a   : > { %3130 = vadd.xlane.f32.xlu1 %v9733_v4 }
0x1797   : > { %v3131_v58 = vpop.xlane.xlu1 %3130 }
0x1798   : > { %v3132_v14 = vmul.f32 0.015625, %v3131_v58 }
0x179a   : > { %v3133_v15 = vsub.f32 %v9733_v4, %v3132_v14 }
0x179c   : > { %v3134_v16 = vmul.f32 %v9534_v25, %v3133_v15 }
0x179e   : > { %v3135_v17 = vmul.f32 %v3134_v16, %v3134_v16 }
0x17a0   : > { %3136 = vadd.xlane.f32.xlu0 %v3135_v17 }
0x182d   : > { %v3137_v31 = vpop.xlane.xlu0 %3136 }
0x182e   : > { %v3138_v32 = vmul.f32 0.015625, %v3137_v31 }
0x1830   : > { %v3139_v33 = vadd.f32 1e-06, %v3138_v32 }
0x1832   : > { %8295 = vrsqrt.f32 %v3139_v33 }
0x183c   : > { %v8296_v11 = vpop.eup %8295 }
0x183d   : > { %v3141_v35 = vmul.f32 %v8296_v11, %v3134_v16  ;;  %v6822_v11 = vld [vmem:[#allocation22 + $0x1] ss:$0 sm:$0xff] }
0x183f   : > { %v3148_v37 = vmul.f32 %v6788_v34, %v3141_v35 }
0x1841   : > { %v3155_v38 = vadd.f32 %v6789_v36, %v3148_v37  ;;  %v3526_v37 = vld [vmem:[#allocation25] sm:$0xff] }
0x1843   : > { %v3173_v39 = vpack.c.bf16 %v3155_v38, %v3155_v38  ;;  %v3530_v38 = vld [vmem:[#allocation25 + $0x20] sm:$0xff] }
0x1844   : > { %v6823_v41 = vcombine.low %v3526_v37, %v3530_v38  ;;  %v6824_v42 = vcombine.high %v3526_v37, %v3530_v38 }
0x1845   : > { %3300 = vmatmul.mubr.bf16.vlgmr.msra.gmra.mrb[48].mxu1 %v3173_v39  ;;  %v3527_v39 = vld [vmem:[#allocation25 + $0x8] sm:$0xff] }
0x1846   : > { %3985 = vmatprep.mubr.bf16.mxu1 %v8910_v40  ;;  %v6825_v45 = vcombine.low %v3527_v39, %v3531_v22  ;;  %v6826_v46 = vcombine.high %v3527_v39, %v3531_v22  ;;  %3953 = vmatprep.subr.bf16.mxu1 %v6824_v42  ;;  %v3586_v42 = vld [vmem:[#allocation25 + $0x1e0] sm:$0xff]  ;;  %v3583_v22 = vld [vmem:[#allocation25 + $0x1c8] sm:$0xff] }
0x1847   : > { %3954 = vmatpush1.bf16.msra.mxu1 %v6823_v41  ;;  %v3582_v41 = vld [vmem:[#allocation25 + $0x1c0] sm:$0xff] }
0x1848   : > { %3994 = vmatprep.subr.bf16.mxu0 %v6826_v46  ;;  %3955 = vmatprep.subr.bf16.mxu1 %v6832_v47  ;;  %v6879_v43 = vcombine.low %v3582_v41, %v3586_v42  ;;  %v6880_v44 = vcombine.high %v3582_v41, %v3586_v42  ;;  %v3528_v46 = vld [vmem:[#allocation25 + $0x10] sm:$0xff] }
0x1849   : > { %v3532_v47 = vld [vmem:[#allocation25 + $0x30] sm:$0xff] }
0x184b   : > { %3956 = vmatpush1.bf16.msra.mxu1 %v6831_v54 }
0x184c   : > { %3957 = vmatprep.subr.bf16.mxu1 %v6840_v60 }
0x1918   : > { %v3301_v0 = vpop.f32.mrb[48].mxu1 }
0x1919   : > { %v3302_v1 = vadd.f32 %v3301_v0, %v3180_v62  ;;  %v3303_v2 = vpop.f32.mrb[49].mxu1  ;;  %v6842_v62 = vcombine.high %v3543_v52, %v3547_v53  ;;  %v6841_v0 = vcombine.low %v3543_v52, %v3547_v53  ;;  %v3533_v52 = vld [vmem:[#allocation25 + $0x38] sm:$0xff] }
0x191a   : > { %v3304_v12 = vadd.f32 %v3303_v2, %v3184_v63  ;;  %v3305_v3 = vpop.f32.mrb[50].mxu1  ;;  %v6839_v63 = vcombine.low %v3542_v50, %v3546_v51  ;;  %v6827_v50 = vcombine.low %v3528_v46, %v3532_v47  ;;  %v3529_v51 = vld [vmem:[#allocation25 + $0x18] sm:$0xff] }
0x191b   : > { %v3308_v26 = vmul.f32 %v3302_v1, %v3302_v1  ;;  %v3306_v5 = vpop.f32.mrb[51].mxu1  ;;  %v6829_v53 = vcombine.low %v3529_v51, %v3533_v52  ;;  %v6830_v54 = vcombine.high %v3529_v51, %v3533_v52  ;;  %v3584_v51 = vld [vmem:[#allocation25 + $0x1d0] sm:$0xff] }
0x191c   : > { %v3309_v6 = vmul.f32 %v3304_v12, %v3304_v12  ;;  %3958 = vmatpush1.bf16.msra.mxu1 %v6839_v63  ;;  %v3588_v52 = vld [vmem:[#allocation25 + $0x1f0] sm:$0xff] }
0x191d   : > { %v3310_v7 = vmul.f32 %v3308_v26, %v3302_v1 }
0x191e   : > { %v3311_v8 = vmul.f32 %v3309_v6, %v3304_v12  ;;  %v3550_v6 = vld [vmem:[#allocation25 + $0xc0] sm:$0xff] }
0x191f   : > { %v3312_v9 = vmul.f32 0.044715, %v3310_v7  ;;  %v3554_v7 = vld [vmem:[#allocation25 + $0xe0] sm:$0xff] }
0x1920   : > { %v3313_v10 = vmul.f32 0.044715, %v3311_v8  ;;  %v3551_v8 = vld [vmem:[#allocation25 + $0xc8] sm:$0xff] }
0x1921   : > { %v3314_v13 = vadd.f32 %v3312_v9, %v3302_v1  ;;  %v6848_v9 = vcombine.high %v3550_v6, %v3554_v7 }
0x1922   : > { %v3315_v58 = vadd.f32 %v3313_v10, %v3304_v12  ;;  %v3555_v10 = vld [vmem:[#allocation25 + $0xe8] sm:$0xff] }
0x1923   : > { %v3316_v14 = vmul.f32 0.7978846, %v3314_v13  ;;  %v6847_v13 = vcombine.low %v3550_v6, %v3554_v7  ;;  %3959 = vmatprep.subr.bf16.mxu1 %v6848_v9  ;;  %v3537_v6 = vld [vmem:[#allocation25 + $0x58] sm:$0xff] }
0x1924   : > { %v3317_v15 = vmul.f32 0.7978846, %v3315_v58  ;;  %v6849_v58 = vcombine.low %v3551_v8, %v3555_v10  ;;  %v3541_v7 = vld [vmem:[#allocation25 + $0x78] sm:$0xff] }
0x1925   : > { %8297 = vtanh.f32 %v3316_v14  ;;  %v6850_v14 = vcombine.high %v3551_v8, %v3555_v10  ;;  %3960 = vmatpush1.bf16.msra.mxu1 %v6847_v13  ;;  %v6838_v13 = vcombine.high %v3537_v6, %v3541_v7 }
0x1926   : > { %8299 = vtanh.f32 %v3317_v15  ;;  %v3558_v15 = vld [vmem:[#allocation25 + $0x100] sm:$0xff] }
0x192f   : > { %v8298_v16 = vpop.eup %8297 }
0x1930   : > { %v8300_v17 = vpop.eup %8299  ;;  %v3320_v18 = vadd.f32 1.0, %v8298_v16  ;;  %v3559_v16 = vld [vmem:[#allocation25 + $0x108] sm:$0xff] }
0x1931   : > { %v3321_v19 = vadd.f32 1.0, %v8300_v17 }
0x1932   : > { %v3322_v20 = vmul.f32 0.5, %v3320_v18  ;;  %v3563_v18 = vld [vmem:[#allocation25 + $0x128] sm:$0xff] }
0x1933   : > { %v3323_v21 = vmul.f32 0.5, %v3321_v19 }
0x1934   : > { %v3324_v23 = vmul.f32 %v3322_v20, %v3302_v1  ;;  %v6857_v20 = vcombine.low %v3559_v16, %v3563_v18 }
0x1935   : > { %v3325_v24 = vmul.f32 %v3323_v21, %v3304_v12  ;;  %v6858_v21 = vcombine.high %v3559_v16, %v3563_v18  ;;  %v6837_v16 = vcombine.low %v3537_v6, %v3541_v7  ;;  %v8081_v6 = vld [vmem:[#allocation28 + $0x48] sm:$0xff]  }
0x1936   : > { %v3359_v28 = vpack.c.bf16 %v3324_v23, %v3324_v23  ;;  %v3566_v23 = vld [vmem:[#allocation25 + $0x140] sm:$0xff]  ;;  %v8082_v7 = vld [vmem:[#allocation28 + $0xc8] sm:$0xff]  }
0x1937   : > { %v3360_v27 = vpack.c.bf16 %v3325_v24, %v3325_v24  ;;  %v3570_v24 = vld [vmem:[#allocation25 + $0x160] sm:$0xff] }
0x1939   : > { %3489 = vmatprep.mubr.bf16.mxu0 %v3360_v27  ;;  %v3567_v27 = vld [vmem:[#allocation25 + $0x148] sm:$0xff] }
0x193a   : > { %3490 = vmatmul.mubr.bf16.vlgmr.msra.gmra.mrb[28].mxu0 %v3359_v28  ;;  %v6864_v28 = vcombine.high %v3566_v23, %v3570_v24 }
0x193b   : > { %4026 = vmatprep.mubr.bf16.mxu0 %v8910_v40  ;;  %3995 = vmatpush1.bf16.msra.mxu0 %v6825_v45  ;;  %v3587_v45 = vld [vmem:[#allocation25 + $0x1e8] sm:$0xff] }
0x1a0d   : > { %v7240_v29 = vpop.f32.mrb[28].mxu0 }
0x1a0e   : > { %v7241_v30 = vpop.f32.mrb[29].mxu0 }
0x1a0f   : > { %v7242_v31 = vadd.f32 %v7241_v30, %v7240_v29  ;;  %v7243_v32 = vpop.f32.mrb[30].mxu0  ;;  %v3571_v29 = vld [vmem:[#allocation25 + $0x168] sm:$0xff]  ;;  %v6863_v30 = vcombine.low %v3566_v23, %v3570_v24  ;;  %v3557_v23 = vld [vmem:[#allocation25 + $0xf8] sm:$0xff] }
0x1a10   : > { %v7244_v33 = vpop.f32.mrb[31].mxu0  ;;  %v6866_v32 = vcombine.high %v3567_v27, %v3571_v29 }
0x1a11   : > { %v3497_v34 = vadd.f32 %v7242_v31, %v9733_v4  ;;  %v6834_v4 = vcombine.high %v3535_v48, %v3539_v49  ;;  %v6865_v31 = vcombine.low %v3567_v27, %v3571_v29  ;;  %v3574_v33 = vld [vmem:[#allocation25 + $0x180] sm:$0xff]  ;;  %v6881_v48 = vcombine.low %v3583_v22, %v3587_v45 }
0x1a12   : > { %v6882_v49 = vcombine.high %v3583_v22, %v3587_v45  ;;  %v3580_v45 = vld [vmem:[#allocation25 + $0x1b0] sm:$0xff] }
0x1a13   : > { %v3506_v35 = vadd.f32 %v6822_v11, %v3497_v34  ;;  %3996 = vmatprep.subr.bf16.mxu0 %v6834_v4  ;;  %v3578_v11 = vld [vmem:[#allocation25 + $0x1a0] sm:$0xff]  ;;  %v3575_v34 = vld [vmem:[#allocation25 + $0x188] sm:$0xff]  ;;  %v6828_v4 = vcombine.high %v3528_v46, %v3532_v47  ;;  %v3577_v46 = vld [vmem:[#allocation25 + $0x198] sm:$0xff] }
0x1a14   : > { %3997 = vmatpush1.bf16.msra.mxu0 %v6833_v55  ;;  %v6871_v37 = vcombine.low %v3574_v33, %v3578_v11  ;;  %v3581_v47 = vld [vmem:[#allocation25 + $0x1b8] sm:$0xff] }
0x1a15   : > { %v3510_v36 = vsel %vm3509_vm6, %v3506_v35, 0.0  ;;  %3998 = vmatprep.subr.bf16.mxu0 %v6842_v62 }
0x1a16   : > { %3511 = vadd.xlane.f32.xlu0 %v3510_v36  ;;  %v3579_v36 = vld [vmem:[#allocation25 + $0x1a8] sm:$0xff] }
0x1a17   : > { %v6873_v38 = vcombine.low %v3575_v34, %v3579_v36  ;;  %v6874_v39 = vcombine.high %v3575_v34, %v3579_v36  ;;  %v3568_v36 = vld [vmem:[#allocation25 + $0x150] sm:$0xff] }
0x1a18   : > { %3999 = vmatpush1.bf16.msra.mxu0 %v6841_v0  ;;  %v3507_v0 = vld [vmem:[%s10093_s26] sm:$0x1]  ;;  %s7080_s26 = sshll.u32 %s10075_s11, 7  ;;  %s8913_s11 = smov [#allocation29]  }
0x1a19   : > { %4000 = vmatprep.subr.bf16.mxu0 %v6850_v14  ;;  %v3548_v14 = vld [vmem:[#allocation25 + $0xb0] sm:$0xff] }
0x1a1c   : > { %4001 = vmatpush1.bf16.msra.mxu0 %v6849_v58  ;;  %v3544_v58 = vld [vmem:[#allocation25 + $0x90] sm:$0xff] }
0x1a1d   : > { %4002 = vmatprep.subr.bf16.mxu0 %v6858_v21  ;;  %v3553_v21 = vld [vmem:[#allocation25 + $0xd8] sm:$0xff]  ;;  %v6843_v24 = vcombine.low %v3544_v58, %v3548_v14 }
0x1a1e   : > { %v6854_v29 = vcombine.high %v3553_v21, %v3557_v23  ;;  %v6853_v34 = vcombine.low %v3553_v21, %v3557_v23  ;;  %v8097_v21 = vld [vmem:[#allocation28 + $0x68] sm:$0xff]  }
0x1a1f   : > { %v8098_v23 = vld [vmem:[#allocation28 + $0xe8] sm:$0xff]  }
0x1a20   : > { %4003 = vmatpush1.bf16.msra.mxu0 %v6857_v20  ;;  %v3556_v20 = vld [vmem:[#allocation25 + $0xf0] sm:$0xff] }
0x1a21   : > { %4004 = vmatprep.subr.bf16.mxu0 %v6866_v32  ;;  %v3561_v32 = vld [vmem:[#allocation25 + $0x118] sm:$0xff] }
0x1a24   : > { %4005 = vmatpush1.bf16.msra.mxu0 %v6865_v31  ;;  %v3564_v31 = vld [vmem:[#allocation25 + $0x130] sm:$0xff] }
0x1a25   : > { %4006 = vmatprep.subr.bf16.mxu0 %v6874_v39  ;;  %v3573_v39 = vld [vmem:[#allocation25 + $0x178] sm:$0xff] }
0x1a28   : > { %4007 = vmatpush1.bf16.msra.mxu0 %v6873_v38  ;;  %v3569_v38 = vld [vmem:[#allocation25 + $0x158] sm:$0xff] }
0x1a29   : > { %4008 = vmatprep.subr.bf16.mxu0 %v6882_v49  ;;  %v6869_v49 = vcombine.low %v3569_v38, %v3573_v39 }
0x1a2c   : > { %4009 = vmatpush1.bf16.msra.mxu0 %v6881_v48 }
0x1a2d   : > { %4076 = vmatprep.subr.bf16.mxu0 %v6830_v54  ;;  %v3589_v54 = vld [vmem:[#allocation25 + $0x1f8] sm:$0xff] }
0x1aa3   : > { %v3512_v1 = vpop.xlane.xlu0 %3511 }
0x1aa4   : > { %v3513_v2 = vmul.f32 0.015625, %v3512_v1 }
0x1aa6   : > { %v3514_v12 = vsub.f32 %v3506_v35, %v3513_v2  ;;  %v6872_v35 = vcombine.high %v3574_v33, %v3578_v11  ;;  %v3508_v2 = vld [vmem:[#allocation23] sm:$0x1] }
0x1aa7   : > { %v3565_v33 = vld [vmem:[#allocation25 + $0x138] sm:$0xff] }
0x1aa8   : > { %v9745_v3 = vmul.f32 %v9534_v25, %v3514_v12  ;;  %v3562_v25 = vld [vmem:[#allocation25 + $0x120] sm:$0xff]  ;;  %v6861_v42 = vcombine.low %v3561_v32, %v3565_v33 }
0x1aa9   : > { %v6856_v17 = vcombine.high %v3558_v15, %v3562_v25  ;;  %v6855_v19 = vcombine.low %v3558_v15, %v3562_v25  ;;  %v3545_v15 = vld [vmem:[#allocation25 + $0x98] sm:$0xff] }
0x1aaa   : > { %v3516_v26 = vmul.f32 %v9745_v3, %v9745_v3  ;;  %v3549_v25 = vld [vmem:[#allocation25 + $0xb8] sm:$0xff] }
0x1aab   : > { %3961 = vmatprep.subr.bf16.mxu1 %v6856_v17  ;;  %v6844_v17 = vcombine.high %v3544_v58, %v3548_v14  ;;  %v6846_v18 = vcombine.high %v3545_v15, %v3549_v25  ;;  %v6845_v27 = vcombine.low %v3545_v15, %v3549_v25  ;;  %v8086_v58 = vld [vmem:[#allocation28 + $0xd0] sm:$0xff]   ;;  %v8089_v25 = vld [vmem:[#allocation28 + $0x58] sm:$0xff]  }
0x1aac   : > { %v3517_v5 = vsel %vm3509_vm6, %v3516_v26, 0.0  ;;  %3962 = vmatpush1.bf16.msra.mxu1 %v6855_v19  ;;  %v3536_v26 = vld [vmem:[#allocation25 + $0x50] sm:$0xff]  ;;  %v8087_v14 = vld [vmem:[#allocation28 + $0x10] sm:$0xff]  }
0x1aad   : > { %3518 = vadd.xlane.f32.xlu1 %v3517_v5  ;;  %3963 = vmatprep.subr.bf16.mxu1 %v6864_v28  ;;  %v3540_v5 = vld [vmem:[#allocation25 + $0x70] sm:$0xff]  ;;  %v8088_v15 = vld [vmem:[#allocation28 + $0x90] sm:$0xff]  }
0x1aae   : > { %v6836_v10 = vcombine.high %v3536_v26, %v3540_v5  ;;  %v3552_v19 = vld [vmem:[#allocation25 + $0xd0] sm:$0xff] }
0x1aaf   : > { %v6852_v28 = vcombine.high %v3552_v19, %v3556_v20  ;;  %v6851_v11 = vcombine.low %v3552_v19, %v3556_v20  ;;  %v8095_v19 = vld [vmem:[#allocation28 + $0x20] sm:$0xff]  }
0x1ab0   : > { %3964 = vmatpush1.bf16.msra.mxu1 %v6863_v30  ;;  %v3560_v30 = vld [vmem:[#allocation25 + $0x110] sm:$0xff]  ;;  %v8096_v20 = vld [vmem:[#allocation28 + $0xa0] sm:$0xff]  }
0x1ab1   : > { %3965 = vmatprep.subr.bf16.mxu1 %v6872_v35  ;;  %v6860_v35 = vcombine.high %v3560_v30, %v3564_v31  ;;  %v6859_v41 = vcombine.low %v3560_v30, %v3564_v31  ;;  %v8103_v30 = vld [vmem:[#allocation28 + $0x30] sm:$0xff]  }
0x1ab2   : > { %v8104_v31 = vld [vmem:[#allocation28 + $0xb0] sm:$0xff]  }
0x1ab4   : > { %3966 = vmatpush1.bf16.msra.mxu1 %v6871_v37  ;;  %v3572_v37 = vld [vmem:[#allocation25 + $0x170] sm:$0xff] }
0x1ab5   : > { %3967 = vmatprep.subr.bf16.mxu1 %v6880_v44  ;;  %v6868_v22 = vcombine.high %v3568_v36, %v3572_v37  ;;  %v3576_v44 = vld [vmem:[#allocation25 + $0x190] sm:$0xff]  ;;  %v6867_v48 = vcombine.low %v3568_v36, %v3572_v37  ;;  %v8108_v36 = vld [vmem:[#allocation28 + $0xb8] sm:$0xff]  }
0x1ab8   : > { %3968 = vmatpush1.bf16.msra.mxu1 %v6879_v43  ;;  %v6870_v43 = vcombine.high %v3569_v38, %v3573_v39  ;;  %v8109_v39 = vld [vmem:[#allocation28 + $0x140] sm:$0xff]  }
0x1ab9   : > { %4035 = vmatprep.subr.bf16.mxu1 %v6828_v4  ;;  %v6878_v4 = vcombine.high %v3577_v46, %v3581_v47 }
0x1b3a   : > { %v3519_v55 = vpop.xlane.xlu1 %3518 }
0x1b3b   : > { %v3520_v60 = vmul.f32 0.015625, %v3519_v55  ;;  %v6875_v55 = vcombine.low %v3576_v44, %v3580_v45 }
0x1b3d   : > { %v3521_v62 = vadd.f32 1e-06, %v3520_v60  ;;  %v6877_v60 = vcombine.low %v3577_v46, %v3581_v47  ;;  %v3927_v46 = vsub.s32 3, %v9553_v56  ;;  %v9790_v47 = vsub.s32 4, %v9553_v56 }
0x1b3f   : > { %8301 = vrsqrt.f32 %v3521_v62  ;;  %v6884_v62 = vcombine.high %v3584_v51, %v3588_v52 }
0x1b49   : > { %v8302_v63 = vpop.eup %8301 }
0x1b4a   : > { %v3523_v1 = vmul.f32 %v8302_v63, %v9745_v3  ;;  %v6835_v3 = vcombine.low %v3536_v26, %v3540_v5  ;;  %v8079_v26 = vld [vmem:[#allocation28] sm:$0xff]  }
0x1b4b   : > { %v8080_v5 = vld [vmem:[#allocation28 + $0x80] sm:$0xff]  }
0x1b4c   : > { %v3524_v12 = vmul.f32 %v3523_v1, %v3507_v0  ;;  %v6883_v0 = vcombine.low %v3584_v51, %v3588_v52 }
0x1b4e   : > { %v3525_v8 = vadd.f32 %v3524_v12, %v3508_v2  ;;  %v8077_v2 = vld [vmem:[#allocation28 + $0x40] sm:$0xff]  }
0x1b4f   : > { %v8078_v12 = vld [vmem:[#allocation28 + $0xc0] sm:$0xff]  }
0x1b50   : > { %v9754_v9 = vpack.c.bf16 %v3525_v8, %v3525_v8  ;;  %v8083_v8 = vld [vmem:[#allocation28 + $0x8] sm:$0xff]  }
0x1b52   : > { %3986 = vmatmul.mubr.bf16.vlgmr.msra.gmra.mrb[52].mxu1 %v9754_v9  ;;  %4027 = vmatmul.mubr.bf16.vlgmr.msra.gmra.mrb[32].mxu0 %v9754_v9 }
0x1b53   : > { %4036 = vmatpush1.bf16.msra.mxu1 %v6827_v50  ;;  %4077 = vmatpush1.bf16.msra.mxu0 %v6829_v53  ;;  %v6876_v50 = vcombine.high %v3576_v44, %v3580_v45  ;;  %v3585_v53 = vld [vmem:[#allocation25 + $0x1d8] sm:$0xff]  ;;  %v9786_v45 = vld [vmem:[#allocation26] sm:$0xff] }
0x1b54   : > { %4037 = vmatprep.subr.bf16.mxu1 %v6836_v10  ;;  %4078 = vmatprep.subr.bf16.mxu0 %v6838_v13  ;;  %v6886_v63 = vcombine.high %v3585_v53, %v3589_v54  ;;  %v6885_v1 = vcombine.low %v3585_v53, %v3589_v54  ;;  %v8084_v10 = vld [vmem:[#allocation28 + $0x88] sm:$0xff]   ;;  %v8085_v13 = vld [vmem:[#allocation28 + $0x50] sm:$0xff]  }
0x1b55   : > { %4067 = vmatprep.mubr.bf16.mxu1 %v8910_v40  ;;  %4108 = vmatprep.mubr.bf16.mxu0 %v8910_v40  ;;  %v6862_v40 = vcombine.high %v3561_v32, %v3565_v33  ;;  %v9767_v32 = vld [vmem:[%s945_s28] sm:$0x77]  ;;  %v9770_v33 = vsub.s32 6, %v9553_v56 }
0x1b56   : > { %v4128_v51 = vrot.slane %v9767_v32, %v9566_v61  ;;  %v4176_v52 = vrot.slane %v9767_v32, %v9556_v57  ;;  %v4224_v53 = vrot.slane %v9767_v32, %v9562_v59 }
0x1b57   : > { %4038 = vmatpush1.bf16.msra.mxu1 %v6835_v3  ;;  %4079 = vmatpush1.bf16.msra.mxu0 %v6837_v16  ;;  %v8090_v3 = vld [vmem:[#allocation28 + $0xd8] sm:$0xff]   ;;  %v4228_v37 = vrot.slane %v9767_v32, %v9770_v33 }
0x1b58   : > { %4039 = vmatprep.subr.bf16.mxu1 %v6844_v17  ;;  %4080 = vmatprep.subr.bf16.mxu0 %v6846_v18  ;;  %v8091_v16 = vld [vmem:[#allocation28 + $0x18] sm:$0xff]   ;;  %v8093_v17 = vld [vmem:[#allocation28 + $0x60] sm:$0xff]  }
0x1b59   : > { %v8094_v18 = vld [vmem:[#allocation28 + $0xe0] sm:$0xff]  }
0x1b5b   : > { %4040 = vmatpush1.bf16.msra.mxu1 %v6843_v24  ;;  %4081 = vmatpush1.bf16.msra.mxu0 %v6845_v27  ;;  %v8099_v24 = vld [vmem:[#allocation28 + $0x28] sm:$0xff]  }
0x1b5c   : > { %4041 = vmatprep.subr.bf16.mxu1 %v6852_v28  ;;  %4082 = vmatprep.subr.bf16.mxu0 %v6854_v29  ;;  %v8100_v27 = vld [vmem:[#allocation28 + $0xa8] sm:$0xff]   ;;  %v8101_v28 = vld [vmem:[#allocation28 + $0x70] sm:$0xff]  }
0x1b5d   : > { %v8102_v29 = vld [vmem:[#allocation28 + $0xf0] sm:$0xff]  }
0x1b5f   : > { %4042 = vmatpush1.bf16.msra.mxu1 %v6851_v11  ;;  %4083 = vmatpush1.bf16.msra.mxu0 %v6853_v34  ;;  %v9772_v11 = vld [vmem:[%s945_s28 + $0x8] sm:$0x77] }
0x1b60   : > { %4043 = vmatprep.subr.bf16.mxu1 %v6860_v35  ;;  %4084 = vmatprep.subr.bf16.mxu0 %v6862_v40  ;;  %v8105_v34 = vld [vmem:[#allocation28 + $0x78] sm:$0xff]   ;;  %v4236_v38 = vrot.slane %v9772_v11, %v9770_v33  ;;  %v4136_v54 = vrot.slane %v9772_v11, %v9566_v61 }
0x1b61   : > { %v8106_v35 = vld [vmem:[#allocation28 + $0xf8] sm:$0xff]  }
0x1b62   : > { %v8107_v40 = vld [vmem:[#allocation28 + $0x38] sm:$0xff]  }
0x1b63   : > { %4044 = vmatpush1.bf16.msra.mxu1 %v6859_v41  ;;  %4085 = vmatpush1.bf16.msra.mxu0 %v6861_v42  ;;  %v8110_v41 = vld [vmem:[#allocation28 + $0x1c0] sm:$0xff]  }
0x1b64   : > { %4045 = vmatprep.subr.bf16.mxu1 %v6868_v22  ;;  %4086 = vmatprep.subr.bf16.mxu0 %v6870_v43  ;;  %v9778_v42 = vld [vmem:[%s945_s28 + $0x10] sm:$0x77]  ;;  %v9780_v22 = vld [vmem:[%s945_s28 + $0x18] sm:$0x77]  ;;  %s9933_s28 = scalar_lea.hbm %s10096_s1, %s7080_s26 }
0x1b65   : > { %v4244_v43 = vrot.slane %v9778_v42, %v9770_v33  ;;  %v4252_v44 = vrot.slane %v9780_v22, %v9770_v33 }
0x1b67   : > { %4046 = vmatpush1.bf16.msra.mxu1 %v6867_v48  ;;  %4087 = vmatpush1.bf16.msra.mxu0 %v6869_v49  ;;  %v3916_v48 = vrot.slane %v9786_v45, %v9566_v61  ;;  %v3924_v49 = vrot.slane %v9786_v45, %v9562_v59 }
0x1b68   : > { %4047 = vmatprep.subr.bf16.mxu1 %v6876_v50  ;;  %4088 = vmatprep.subr.bf16.mxu0 %v6878_v4  ;;  %v3920_v50 = vrot.slane %v9786_v45, %v9556_v57  ;;  %v3928_v4 = vrot.slane %v9786_v45, %v3927_v46  ;;  %v8123_v46 = vld [vmem:[#allocation28 + $0x118] sm:$0xff]  }
0x1b6b   : > { %4048 = vmatpush1.bf16.msra.mxu1 %v6875_v55  ;;  %4089 = vmatpush1.bf16.msra.mxu0 %v6877_v60 }
0x1b6c   : > { %4049 = vmatprep.subr.bf16.mxu1 %v6884_v62  ;;  %4090 = vmatprep.subr.bf16.mxu0 %v6886_v63  ;;  %v4184_v62 = vrot.slane %v9772_v11, %v9556_v57  ;;  %v4232_v63 = vrot.slane %v9772_v11, %v9562_v59 }
0x1b6f   : > { %4050 = vmatpush1.bf16.msra.mxu1 %v6883_v0  ;;  %4091 = vmatpush1.bf16.msra.mxu0 %v6885_v1  ;;  %v4132_v0 = vrot.slane %v9767_v32, %v9790_v47  ;;  %v4140_v1 = vrot.slane %v9772_v11, %v9790_v47 }
0x1b70   : > { %7246 = vmatprep.subr.bf16.mxu1 %v8077_v2  ;;  %7268 = vmatprep.subr.bf16.mxu0 %v8078_v12 }
0x1b72   : > { %4068 = vmatmul.mubr.bf16.vlgmr.msra.gmra.mrb[56].mxu1 %v9754_v9  ;;  %4109 = vmatmul.mubr.bf16.vlgmr.msra.gmra.mrb[36].mxu0 %v9754_v9  ;;  %v8092_v9 = vld [vmem:[#allocation28 + $0x98] sm:$0xff]  }
0x1b73   : > { %7247 = vmatpush3.bf16.msra.mxu1 %v8079_v26  ;;  %7269 = vmatpush3.bf16.msra.mxu0 %v8080_v5 }
0x1b74   : > { %7248 = vmatprep.subr.bf16.mxu1 %v8081_v6  ;;  %7270 = vmatprep.subr.bf16.mxu0 %v8082_v7 }
0x1b77   : > { %7249 = vmatpush3.bf16.msra.mxu1 %v8083_v8  ;;  %7271 = vmatpush3.bf16.msra.mxu0 %v8084_v10 }
0x1b78   : > { %7250 = vmatprep.subr.bf16.mxu1 %v8085_v13  ;;  %7272 = vmatprep.subr.bf16.mxu0 %v8086_v58 }
0x1b7b   : > { %7251 = vmatpush3.bf16.msra.mxu1 %v8087_v14  ;;  %7273 = vmatpush3.bf16.msra.mxu0 %v8088_v15 }
0x1b7c   : > { %7252 = vmatprep.subr.bf16.mxu1 %v8089_v25  ;;  %7274 = vmatprep.subr.bf16.mxu0 %v8090_v3 }
0x1b7f   : > { %7253 = vmatpush3.bf16.msra.mxu1 %v8091_v16  ;;  %7275 = vmatpush3.bf16.msra.mxu0 %v8092_v9 }
0x1b80   : > { %7254 = vmatprep.subr.bf16.mxu1 %v8093_v17  ;;  %7276 = vmatprep.subr.bf16.mxu0 %v8094_v18 }
0x1b83   : > { %7255 = vmatpush3.bf16.msra.mxu1 %v8095_v19  ;;  %7277 = vmatpush3.bf16.msra.mxu0 %v8096_v20 }
0x1b84   : > { %7256 = vmatprep.subr.bf16.mxu1 %v8097_v21  ;;  %7278 = vmatprep.subr.bf16.mxu0 %v8098_v23  ;;  %v8111_v21 = vld [vmem:[#allocation28 + $0x100] sm:$0xff]  }
0x1b85   : > { %v8112_v23 = vld [vmem:[#allocation28 + $0x180] sm:$0xff]  }
0x1b87   : > { %7257 = vmatpush3.bf16.msra.mxu1 %v8099_v24  ;;  %7279 = vmatpush3.bf16.msra.mxu0 %v8100_v27 }
0x1b88   : > { %7258 = vmatprep.subr.bf16.mxu1 %v8101_v28  ;;  %7280 = vmatprep.subr.bf16.mxu0 %v8102_v29  ;;  %v8113_v28 = vld [vmem:[#allocation28 + $0x148] sm:$0xff]  }
0x1b89   : > { %v8114_v29 = vld [vmem:[#allocation28 + $0x1c8] sm:$0xff]  }
0x1b8b   : > { %7259 = vmatpush3.bf16.msra.mxu1 %v8103_v30  ;;  %7281 = vmatpush3.bf16.msra.mxu0 %v8104_v31 }
0x1b8c   : > { %7260 = vmatprep.subr.bf16.mxu1 %v8105_v34  ;;  %7282 = vmatprep.subr.bf16.mxu0 %v8106_v35  ;;  %v8115_v34 = vld [vmem:[#allocation28 + $0x108] sm:$0xff]  }
0x1b8d   : > { %v8116_v35 = vld [vmem:[#allocation28 + $0x188] sm:$0xff]  }
0x1b8f   : > { %7261 = vmatpush3.bf16.msra.mxu1 %v8107_v40  ;;  %7283 = vmatpush3.bf16.msra.mxu0 %v8108_v36  ;;  %v8117_v40 = vld [vmem:[#allocation28 + $0x150] sm:$0xff]  }
0x1b90   : > { %7290 = vmatprep.subr.bf16.mxu1 %v8109_v39  ;;  %7312 = vmatprep.subr.bf16.mxu0 %v8110_v41  ;;  %v8118_v36 = vld [vmem:[#allocation28 + $0x1d0] sm:$0xff]   ;;  %v8122_v41 = vld [vmem:[#allocation28 + $0x1d8] sm:$0xff]  }
0x1b91   : > { %v8119_v39 = vld [vmem:[#allocation28 + $0x110] sm:$0xff]  }
0x1c25   : > { %v3987_v55 = vpop.f32.mrb[52].mxu1  ;;  %v4028_v60 = vpop.f32.mrb[32].mxu0 }
0x1c26   : > { %v3988_v2 = vadd.f32 %v3987_v55, %v3916_v48  ;;  %v4029_v12 = vadd.f32 %v4028_v60, %v3924_v49  ;;  %v3989_v26 = vpop.f32.mrb[53].mxu1  ;;  %v4030_v5 = vpop.f32.mrb[33].mxu0  ;;  %v8124_v48 = vld [vmem:[#allocation28 + $0x198] sm:$0xff]   ;;  %v8125_v49 = vld [vmem:[#allocation28 + $0x160] sm:$0xff]   ;;  %v8132_v55 = vld [vmem:[#allocation28 + $0x1a8] sm:$0xff]   ;;  %v3943_v60 = vsub.s32 7, %v9553_v56 }
0x1c27   : > { %v9815_v6 = vadd.f32 %v3989_v26, %v3920_v50  ;;  %v9817_v7 = vadd.f32 %v4030_v5, %v3928_v4  ;;  %v3991_v8 = vpop.f32.mrb[54].mxu1  ;;  %v4032_v10 = vpop.f32.mrb[34].mxu0  ;;  %v8126_v50 = vld [vmem:[#allocation28 + $0x1e0] sm:$0xff]  }
0x1c28   : > { %v4165_v13 = vmul.f32 %v4128_v51, %v3988_v2  ;;  %v9819_v58 = vmul.f32 %v4176_v52, %v3988_v2  ;;  %v9821_v14 = vmul.f32 %v4224_v53, %v3988_v2  ;;  %v4167_v15 = vmul.f32 %v4136_v54, %v4029_v12  ;;  %v3992_v25 = vpop.f32.mrb[55].mxu1  ;;  %v4033_v3 = vpop.f32.mrb[35].mxu0  ;;  %v8127_v4 = vld [vmem:[#allocation28 + $0x120] sm:$0xff]   ;;  %v8129_v52 = vld [vmem:[#allocation28 + $0x168] sm:$0xff]   ;;  %v8135_v8 = vld [vmem:[#allocation28 + $0x130] sm:$0xff]  }
0x1c29   : > { %v9823_v16 = vmul.f32 %v4184_v62, %v4029_v12  ;;  %v9825_v9 = vmul.f32 %v4232_v63, %v4029_v12  ;;  %v4166_v17 = vmul.f32 %v4132_v0, %v9815_v6  ;;  %v4168_v18 = vmul.f32 %v4140_v1, %v9817_v7  ;;  %v8128_v51 = vld [vmem:[#allocation28 + $0x1a0] sm:$0xff]   ;;  %v8130_v53 = vld [vmem:[#allocation28 + $0x1e8] sm:$0xff]   ;;  %v8133_v62 = vld [vmem:[#allocation28 + $0x170] sm:$0xff]  }
0x1c2a   : > { %v4653_v24 = vpack.c.bf16 %v4165_v13, %v4165_v13  ;;  %v4655_v27 = vpack.c.bf16 %v4167_v15, %v4167_v15  ;;  %v9830_v30 = vmul.f32 %v4228_v37, %v9815_v6  ;;  %v9833_v31 = vmul.f32 %v4236_v38, %v9817_v7  ;;  %v8120_v37 = vld [vmem:[#allocation28 + $0x190] sm:$0xff]   ;;  %v8121_v38 = vld [vmem:[#allocation28 + $0x158] sm:$0xff]   ;;  %v8131_v54 = vld [vmem:[#allocation28 + $0x128] sm:$0xff]  }
0x1c2b   : > { %v4654_v19 = vpack.c.bf16 %v4166_v17, %v4166_v17  ;;  %v4656_v20 = vpack.c.bf16 %v4168_v18, %v4168_v18  ;;  %v8134_v63 = vld [vmem:[#allocation28 + $0x1f0] sm:$0xff]   ;;  %v9837_v0 = vsub.s32 5, %v9553_v56  ;;  %v3932_v1 = vrot.slane %v9786_v45, %v9790_v47  ;;  %v8137_v25 = vld [vmem:[#allocation28 + $0x178] sm:$0xff]  }
0x1c2c   : > { %v3940_v2 = vrot.slane %v9786_v45, %v9770_v33  ;;  %v4144_v12 = vrot.slane %v9778_v42, %v9566_v61  ;;  %v3944_v5 = vrot.slane %v9786_v45, %v3943_v60  ;;  %v8136_v10 = vld [vmem:[#allocation28 + $0x1b0] sm:$0xff]   ;;  %v4192_v56 = vrot.slane %v9778_v42, %v9556_v57 }
0x1c2d   : > { %5862 = vmatprep.mubr.bf16.mxu1 %v4654_v19  ;;  %5902 = vmatprep.mubr.bf16.mxu0 %v4656_v20  ;;  %v3936_v26 = vrot.slane %v9786_v45, %v9837_v0  ;;  %v4240_v13 = vrot.slane %v9778_v42, %v9562_v59  ;;  %v4152_v15 = vrot.slane %v9780_v22, %v9566_v61  ;;  %v8138_v19 = vld [vmem:[#allocation28 + $0x1f8] sm:$0xff]   ;;  %v8151_v33 = vld [vmem:[#allocation28 + $0x210] sm:$0xff]  }
0x1c2e   : > { %5863 = vmatmul.mubr.bf16.vlgmr.msra.gmra.mrb[60].mxu1 %v4653_v24  ;;  %5903 = vmatmul.mubr.bf16.vlgmr.msra.gmra.mrb[40].mxu0 %v4655_v27  ;;  %v4200_v18 = vrot.slane %v9780_v22, %v9556_v57  ;;  %v4248_v45 = vrot.slane %v9780_v22, %v9562_v59  ;;  %v4148_v20 = vrot.slane %v9778_v42, %v9790_v47 }
0x1c2f   : > { %7291 = vmatpush3.bf16.msra.mxu1 %v8111_v21  ;;  %7313 = vmatpush3.bf16.msra.mxu0 %v8112_v23  ;;  %v4156_v21 = vrot.slane %v9780_v22, %v9790_v47  ;;  %v4188_v47 = vrot.slane %v9772_v11, %v9837_v0 }
0x1c30   : > { %7292 = vmatprep.subr.bf16.mxu1 %v8113_v28  ;;  %7314 = vmatprep.subr.bf16.mxu0 %v8114_v29  ;;  %v4180_v29 = vrot.slane %v9767_v32, %v9837_v0 }
0x1c33   : > { %7293 = vmatpush3.bf16.msra.mxu1 %v8115_v34  ;;  %7315 = vmatpush3.bf16.msra.mxu0 %v8116_v35 }
0x1c34   : > { %7294 = vmatprep.subr.bf16.mxu1 %v8117_v40  ;;  %7316 = vmatprep.subr.bf16.mxu0 %v8118_v36  ;;  %v8139_v40 = vld [vmem:[#allocation28 + $0x138] sm:$0xff]  }
0x1c35   : > { %v8140_v36 = vld [vmem:[#allocation28 + $0x1b8] sm:$0xff]  }
0x1c37   : > { %7295 = vmatpush3.bf16.msra.mxu1 %v8119_v39  ;;  %7317 = vmatpush3.bf16.msra.mxu0 %v8120_v37 }
0x1c38   : > { %7296 = vmatprep.subr.bf16.mxu1 %v8121_v38  ;;  %7318 = vmatprep.subr.bf16.mxu0 %v8122_v41 }
0x1c3b   : > { %7297 = vmatpush3.bf16.msra.mxu1 %v8123_v46  ;;  %7319 = vmatpush3.bf16.msra.mxu0 %v8124_v48  ;;  %v8141_v48 = vld [vmem:[#allocation28 + $0x240] sm:$0xff]  }
0x1c3c   : > { %7298 = vmatprep.subr.bf16.mxu1 %v8125_v49  ;;  %7320 = vmatprep.subr.bf16.mxu0 %v8126_v50  ;;  %v8142_v49 = vld [vmem:[#allocation28 + $0x2c0] sm:$0xff]  }
0x1c3f   : > { %7299 = vmatpush3.bf16.msra.mxu1 %v8127_v4  ;;  %7321 = vmatpush3.bf16.msra.mxu0 %v8128_v51 }
0x1c40   : > { %7300 = vmatprep.subr.bf16.mxu1 %v8129_v52  ;;  %7322 = vmatprep.subr.bf16.mxu0 %v8130_v53  ;;  %v4214_v52 = vmul.f32 %v4180_v29, %v9815_v6  ;;  %v8167_v29 = vld [vmem:[#allocation28 + $0x230] sm:$0xff]  }
0x1c43   : > { %7301 = vmatpush3.bf16.msra.mxu1 %v8131_v54  ;;  %7323 = vmatpush3.bf16.msra.mxu0 %v8132_v55  ;;  %v8143_v54 = vld [vmem:[#allocation28 + $0x200] sm:$0xff]   ;;  %v4216_v55 = vmul.f32 %v4188_v47, %v9817_v7  ;;  %v4662_v7 = vpack.c.bf16 %v4214_v52, %v4214_v52  ;;  %v8171_v47 = vld [vmem:[#allocation28 + $0x238] sm:$0xff]  }
0x1c44   : > { %7302 = vmatprep.subr.bf16.mxu1 %v8133_v62  ;;  %7324 = vmatprep.subr.bf16.mxu0 %v8134_v63  ;;  %v8144_v63 = vld [vmem:[#allocation28 + $0x280] sm:$0xff]  }
0x1c45   : > { %v4069_v3 = vpop.f32.mrb[56].mxu1  ;;  %v4110_v17 = vpop.f32.mrb[36].mxu0 }
0x1c46   : > { %v4070_v23 = vadd.f32 %v4069_v3, %v3932_v1  ;;  %v4111_v24 = vadd.f32 %v4110_v17, %v3940_v2  ;;  %v4071_v27 = vpop.f32.mrb[57].mxu1  ;;  %v4112_v28 = vpop.f32.mrb[37].mxu0  ;;  %v8145_v2 = vld [vmem:[#allocation28 + $0x248] sm:$0xff]   ;;  %v8156_v3 = vld [vmem:[#allocation28 + $0x298] sm:$0xff]   ;;  %v8157_v17 = vld [vmem:[#allocation28 + $0x260] sm:$0xff]  }
0x1c47   : > { %v9864_v34 = vadd.f32 %v4071_v27, %v3936_v26  ;;  %v9866_v57 = vadd.f32 %v4112_v28, %v3944_v5  ;;  %v4073_v35 = vpop.f32.mrb[58].mxu1  ;;  %v4114_v59 = vpop.f32.mrb[38].mxu0  ;;  %7303 = vmatpush3.bf16.msra.mxu1 %v8135_v8  ;;  %7325 = vmatpush3.bf16.msra.mxu0 %v8136_v10  ;;  %v8146_v26 = vld [vmem:[#allocation28 + $0x2c8] sm:$0xff]   ;;  %v4664_v5 = vpack.c.bf16 %v4216_v55, %v4216_v55  ;;  %v8165_v27 = vld [vmem:[#allocation28 + $0x270] sm:$0xff]  }
0x1c48   : > { %v4169_v39 = vmul.f32 %v4144_v12, %v4070_v23  ;;  %v9870_v37 = vmul.f32 %v4192_v56, %v4070_v23  ;;  %v9872_v38 = vmul.f32 %v4240_v13, %v4070_v23  ;;  %v4171_v41 = vmul.f32 %v4152_v15, %v4111_v24  ;;  %v4074_v32 = vpop.f32.mrb[59].mxu1  ;;  %v4115_v46 = vpop.f32.mrb[39].mxu0  ;;  %7304 = vmatprep.subr.bf16.mxu1 %v8137_v25  ;;  %v8147_v8 = vld [vmem:[#allocation28 + $0x208] sm:$0xff]   ;;  %v8149_v56 = vld [vmem:[#allocation28 + $0x250] sm:$0xff]   ;;  %v8153_v13 = vld [vmem:[#allocation28 + $0x258] sm:$0xff]  }
0x1c49   : > { %v9874_v50 = vmul.f32 %v4200_v18, %v4111_v24  ;;  %v9876_v4 = vmul.f32 %v4248_v45, %v4111_v24  ;;  %7326 = vmatprep.subr.bf16.mxu0 %v8138_v19  ;;  %v4170_v51 = vmul.f32 %v4148_v20, %v9864_v34  ;;  %v4172_v11 = vmul.f32 %v4156_v21, %v9866_v57  ;;  %v8148_v10 = vld [vmem:[#allocation28 + $0x288] sm:$0xff]   ;;  %v8154_v15 = vld [vmem:[#allocation28 + $0x2d8] sm:$0xff]   ;;  %v8158_v18 = vld [vmem:[#allocation28 + $0x2e0] sm:$0xff]  }
0x1c4a   : > { %v4657_v60 = vpack.c.bf16 %v4169_v39, %v4169_v39  ;;  %v4659_v1 = vpack.c.bf16 %v4171_v41, %v4171_v41  ;;  %v9886_v12 = vmul.f32 %v4244_v43, %v9864_v34  ;;  %v9892_v6 = vmul.f32 %v4252_v44, %v9866_v57  ;;  %v8150_v43 = vld [vmem:[#allocation28 + $0x2d0] sm:$0xff]   ;;  %v8155_v25 = vld [vmem:[#allocation28 + $0x218] sm:$0xff]   ;;  %v8159_v45 = vld [vmem:[#allocation28 + $0x220] sm:$0xff]  }
0x1c4b   : > { %7305 = vmatpush3.bf16.msra.mxu1 %v8139_v40  ;;  %7327 = vmatpush3.bf16.msra.mxu0 %v8140_v36  ;;  %v4658_v53 = vpack.c.bf16 %v4170_v51, %v4170_v51  ;;  %v4660_v62 = vpack.c.bf16 %v4172_v11, %v4172_v11  ;;  %v8152_v44 = vld [vmem:[#allocation28 + $0x290] sm:$0xff]   ;;  %v8160_v19 = vld [vmem:[#allocation28 + $0x2a0] sm:$0xff]   ;;  %v8161_v20 = vld [vmem:[#allocation28 + $0x268] sm:$0xff]   ;;  %v4196_v36 = vrot.slane %v9778_v42, %v9837_v0 }
0x1c4c   : > { %7334 = vmatprep.subr.bf16.mxu1 %v8141_v48  ;;  %7356 = vmatprep.subr.bf16.mxu0 %v8142_v49  ;;  %v8162_v21 = vld [vmem:[#allocation28 + $0x2e8] sm:$0xff]   ;;  %v8166_v28 = vld [vmem:[#allocation28 + $0x2f0] sm:$0xff]   ;;  %v8169_v59 = vld [vmem:[#allocation28 + $0x278] sm:$0xff]   ;;  %v4204_v39 = vrot.slane %v9780_v22, %v9837_v0  ;;  %v4661_v42 = vpack.c.bf16 %v9819_v58, %v9819_v58  ;;  %v4663_v22 = vpack.c.bf16 %v9823_v16, %v9823_v16 }
0x1c4d   : > { %5942 = vmatprep.mubr.bf16.mxu1 %v4658_v53  ;;  %5982 = vmatprep.mubr.bf16.mxu0 %v4660_v62  ;;  %v8163_v23 = vld [vmem:[#allocation28 + $0x228] sm:$0xff]   ;;  %v8168_v35 = vld [vmem:[#allocation28 + $0x2b0] sm:$0xff]   ;;  %v8170_v40 = vld [vmem:[#allocation28 + $0x2f8] sm:$0xff]   ;;  %v4218_v48 = vmul.f32 %v4196_v36, %v9864_v34 }
0x1c4e   : > { %5943 = vmatmul.mubr.bf16.vlgmr.msra.gmra.mrb[64].mxu1 %v4657_v60  ;;  %5983 = vmatmul.mubr.bf16.vlgmr.msra.gmra.mrb[44].mxu0 %v4659_v1  ;;  %v8164_v24 = vld [vmem:[#allocation28 + $0x2a8] sm:$0xff]   ;;  %v8172_v41 = vld [vmem:[#allocation28 + $0x2b8] sm:$0xff]   ;;  %v8173_v32 = vld [vmem:[#allocation28 + $0x340] sm:$0xff]   ;;  %v4220_v51 = vmul.f32 %v4204_v39, %v9866_v57 }
0x1c4f   : > { %7335 = vmatpush3.bf16.msra.mxu1 %v8143_v54  ;;  %6022 = vmatprep.mubr.bf16.mxu1 %v4662_v7  ;;  %v8174_v46 = vld [vmem:[#allocation28 + $0x3c0] sm:$0xff]   ;;  %v8177_v0 = vld [vmem:[#allocation28 + $0x348] sm:$0xff]   ;;  %v4666_v52 = vpack.c.bf16 %v4218_v48, %v4218_v48  ;;  %v8181_v55 = vld [vmem:[#allocation28 + $0x350] sm:$0xff]  }
0x1c50   : > { %7357 = vmatpush3.bf16.msra.mxu0 %v8144_v63  ;;  %6062 = vmatprep.mubr.bf16.mxu0 %v4664_v5  ;;  %v8175_v49 = vld [vmem:[#allocation28 + $0x300] sm:$0xff]   ;;  %v8178_v53 = vld [vmem:[#allocation28 + $0x3c8] sm:$0xff]   ;;  %v4668_v34 = vpack.c.bf16 %v4220_v51, %v4220_v51  ;;  %v8182_v58 = vld [vmem:[#allocation28 + $0x3d0] sm:$0xff]  }
0x1c51   : > { %7336 = vmatprep.subr.bf16.mxu1 %v8145_v2  ;;  %7358 = vmatprep.subr.bf16.mxu0 %v8146_v26  ;;  %v8176_v11 = vld [vmem:[#allocation28 + $0x380] sm:$0xff]   ;;  %v8179_v54 = vld [vmem:[#allocation28 + $0x308] sm:$0xff]   ;;  %v8183_v60 = vld [vmem:[#allocation28 + $0x310] sm:$0xff]  }
0x1c52   : > { %v8180_v57 = vld [vmem:[#allocation28 + $0x388] sm:$0xff]   ;;  %v8184_v16 = vld [vmem:[#allocation28 + $0x390] sm:$0xff]   ;;  %v8185_v62 = vld [vmem:[#allocation28 + $0x358] sm:$0xff]  }
0x1c53   : > { %7337 = vmatpush3.bf16.msra.mxu1 %v8147_v8  ;;  %v8186_v63 = vld [vmem:[#allocation28 + $0x3d8] sm:$0xff]   ;;  %v8189_v7 = vld [vmem:[#allocation28 + $0x360] sm:$0xff]   ;;  %v8213_v36 = vld [vmem:[#allocation28 + $0x450] sm:$0xff]  }
0x1c54   : > { %7359 = vmatpush3.bf16.msra.mxu0 %v8148_v10  ;;  %7338 = vmatprep.subr.bf16.mxu1 %v8149_v56  ;;  %v8187_v1 = vld [vmem:[#allocation28 + $0x318] sm:$0xff]   ;;  %v8190_v26 = vld [vmem:[#allocation28 + $0x3e0] sm:$0xff]   ;;  %v8193_v10 = vld [vmem:[#allocation28 + $0x368] sm:$0xff]  }
0x1c55   : > { %7360 = vmatprep.subr.bf16.mxu0 %v8150_v43  ;;  %v8188_v2 = vld [vmem:[#allocation28 + $0x398] sm:$0xff]   ;;  %v8191_v5 = vld [vmem:[#allocation28 + $0x320] sm:$0xff]   ;;  %v8194_v56 = vld [vmem:[#allocation28 + $0x3e8] sm:$0xff]  }
0x1c56   : > { %v8192_v8 = vld [vmem:[#allocation28 + $0x3a0] sm:$0xff]   ;;  %v8195_v43 = vld [vmem:[#allocation28 + $0x328] sm:$0xff]   ;;  %v8217_v39 = vld [vmem:[#allocation28 + $0x458] sm:$0xff]  }
0x1c57   : > { %7339 = vmatpush3.bf16.msra.mxu1 %v8151_v33  ;;  %v8196_v33 = vld [vmem:[#allocation28 + $0x3a8] sm:$0xff]   ;;  %v8222_v48 = vld [vmem:[#allocation28 + $0x4e0] sm:$0xff]  }
0x1c58   : > { %7361 = vmatpush3.bf16.msra.mxu0 %v8152_v44  ;;  %7340 = vmatprep.subr.bf16.mxu1 %v8153_v13  ;;  %v8197_v44 = vld [vmem:[#allocation28 + $0x370] sm:$0xff]   ;;  %v8224_v51 = vld [vmem:[#allocation28 + $0x4a0] sm:$0xff]  }
0x1c59   : > { %7362 = vmatprep.subr.bf16.mxu0 %v8154_v15  ;;  %v8198_v13 = vld [vmem:[#allocation28 + $0x3f0] sm:$0xff]  }
0x1c5a   : > { %v8199_v15 = vld [vmem:[#allocation28 + $0x330] sm:$0xff]  }
0x1c5b   : > { %7341 = vmatpush3.bf16.msra.mxu1 %v8155_v25  ;;  %v8200_v25 = vld [vmem:[#allocation28 + $0x3b0] sm:$0xff]  }
0x1c5c   : > { %7363 = vmatpush3.bf16.msra.mxu0 %v8156_v3  ;;  %7342 = vmatprep.subr.bf16.mxu1 %v8157_v17  ;;  %v8201_v3 = vld [vmem:[#allocation28 + $0x378] sm:$0xff]  }
0x1c5d   : > { %7364 = vmatprep.subr.bf16.mxu0 %v8158_v18  ;;  %v8202_v17 = vld [vmem:[#allocation28 + $0x3f8] sm:$0xff]  }
0x1c5e   : > { %v8203_v18 = vld [vmem:[#allocation28 + $0x338] sm:$0xff]  }
0x1c5f   : > { %7343 = vmatpush3.bf16.msra.mxu1 %v8159_v45  ;;  %v8204_v45 = vld [vmem:[#allocation28 + $0x3b8] sm:$0xff]  }
0x1c60   : > { %7365 = vmatpush3.bf16.msra.mxu0 %v8160_v19  ;;  %7344 = vmatprep.subr.bf16.mxu1 %v8161_v20  ;;  %v8205_v19 = vld [vmem:[#allocation28 + $0x440] sm:$0xff]  }
0x1c61   : > { %7366 = vmatprep.subr.bf16.mxu0 %v8162_v21  ;;  %v8206_v20 = vld [vmem:[#allocation28 + $0x4c0] sm:$0xff]  }
0x1c62   : > { %v8207_v21 = vld [vmem:[#allocation28 + $0x400] sm:$0xff]  }
0x1c63   : > { %7345 = vmatpush3.bf16.msra.mxu1 %v8163_v23  ;;  %v4665_v23 = vpack.c.bf16 %v9870_v37, %v9870_v37  ;;  %v8212_v37 = vld [vmem:[#allocation28 + $0x488] sm:$0xff]  }
0x1c64   : > { %7367 = vmatpush3.bf16.msra.mxu0 %v8164_v24  ;;  %7346 = vmatprep.subr.bf16.mxu1 %v8165_v27  ;;  %v8208_v24 = vld [vmem:[#allocation28 + $0x480] sm:$0xff]   ;;  %v4667_v27 = vpack.c.bf16 %v9874_v50, %v9874_v50  ;;  %v8214_v50 = vld [vmem:[#allocation28 + $0x4d0] sm:$0xff]  }
0x1c65   : > { %7368 = vmatprep.subr.bf16.mxu0 %v8166_v28  ;;  %v8209_v28 = vld [vmem:[#allocation28 + $0x448] sm:$0xff]  }
0x1c67   : > { %7347 = vmatpush3.bf16.msra.mxu1 %v8167_v29  ;;  %v4670_v29 = vpack.c.bf16 %v9830_v30, %v9830_v30  ;;  %v8216_v30 = vld [vmem:[#allocation28 + $0x490] sm:$0xff]  }
0x1c68   : > { %7369 = vmatpush3.bf16.msra.mxu0 %v8168_v35  ;;  %7348 = vmatprep.subr.bf16.mxu1 %v8169_v59  ;;  %v8210_v35 = vld [vmem:[#allocation28 + $0x4c8] sm:$0xff]   ;;  %v4672_v59 = vpack.c.bf16 %v9833_v31, %v9833_v31  ;;  %v8220_v31 = vld [vmem:[#allocation28 + $0x498] sm:$0xff]  }
0x1c69   : > { %7370 = vmatprep.subr.bf16.mxu0 %v8170_v40  ;;  %v8211_v40 = vld [vmem:[#allocation28 + $0x408] sm:$0xff]  }
0x1c6b   : > { %7349 = vmatpush3.bf16.msra.mxu1 %v8171_v47  ;;  %v8215_v47 = vld [vmem:[#allocation28 + $0x410] sm:$0xff]  }
0x1c6c   : > { %7371 = vmatpush3.bf16.msra.mxu0 %v8172_v41  ;;  %7378 = vmatprep.subr.bf16.mxu1 %v8173_v32  ;;  %v8218_v41 = vld [vmem:[#allocation28 + $0x4d8] sm:$0xff]  }
0x1c6d   : > { %7400 = vmatprep.subr.bf16.mxu0 %v8174_v46  ;;  %v8219_v32 = vld [vmem:[#allocation28 + $0x418] sm:$0xff]   ;;  %v8221_v46 = vld [vmem:[#allocation28 + $0x460] sm:$0xff]  }
0x1c6e   : > { %6023 = vmatmul.mubr.bf16.vlgmr.msra.gmra.mrb[68].mxu1 %v4661_v42  ;;  %v8225_v42 = vld [vmem:[#allocation28 + $0x468] sm:$0xff]  }
0x1c6f   : > { %6063 = vmatmul.mubr.bf16.vlgmr.msra.gmra.mrb[48].mxu0 %v4663_v22  ;;  %7379 = vmatpush3.bf16.msra.mxu1 %v8175_v49  ;;  %v8223_v49 = vld [vmem:[#allocation28 + $0x420] sm:$0xff]   ;;  %v8227_v22 = vld [vmem:[#allocation28 + $0x428] sm:$0xff]  }
0x1c70   : > { %6102 = vmatprep.mubr.bf16.mxu1 %v4666_v52  ;;  %7401 = vmatpush3.bf16.msra.mxu0 %v8176_v11  ;;  %v8226_v11 = vld [vmem:[#allocation28 + $0x4e8] sm:$0xff]   ;;  %v8229_v52 = vld [vmem:[#allocation28 + $0x470] sm:$0xff]  }
0x1c71   : > { %6142 = vmatprep.mubr.bf16.mxu0 %v4668_v34  ;;  %7380 = vmatprep.subr.bf16.mxu1 %v8177_v0  ;;  %v8228_v0 = vld [vmem:[#allocation28 + $0x4a8] sm:$0xff]   ;;  %v8231_v34 = vld [vmem:[#allocation28 + $0x430] sm:$0xff]  }
0x1c72   : > { %7402 = vmatprep.subr.bf16.mxu0 %v8178_v53  ;;  %v8230_v53 = vld [vmem:[#allocation28 + $0x4f0] sm:$0xff]  }
0x1c73   : > { %7381 = vmatpush3.bf16.msra.mxu1 %v8179_v54  ;;  %v8232_v54 = vld [vmem:[#allocation28 + $0x4b0] sm:$0xff]  }
0x1c74   : > { %7403 = vmatpush3.bf16.msra.mxu0 %v8180_v57  ;;  %7382 = vmatprep.subr.bf16.mxu1 %v8181_v55  ;;  %v8233_v57 = vld [vmem:[#allocation28 + $0x478] sm:$0xff]  }
0x1c75   : > { %7404 = vmatprep.subr.bf16.mxu0 %v8182_v58  ;;  %v8234_v55 = vld [vmem:[#allocation28 + $0x4f8] sm:$0xff]  }
0x1c76   : > { %v8235_v58 = vld [vmem:[#allocation28 + $0x438] sm:$0xff]  }
0x1c77   : > { %7383 = vmatpush3.bf16.msra.mxu1 %v8183_v60  ;;  %v8236_v60 = vld [vmem:[#allocation28 + $0x4b8] sm:$0xff]  }
0x1c78   : > { %7405 = vmatpush3.bf16.msra.mxu0 %v8184_v16  ;;  %7384 = vmatprep.subr.bf16.mxu1 %v8185_v62  ;;  %v8237_v16 = vld [vmem:[#allocation28 + $0x540] sm:$0xff]  }
0x1c79   : > { %7406 = vmatprep.subr.bf16.mxu0 %v8186_v63  ;;  %v8238_v62 = vld [vmem:[#allocation28 + $0x5c0] sm:$0xff]  }
0x1c7a   : > { %v8239_v63 = vld [vmem:[#allocation28 + $0x500] sm:$0xff]  }
0x1c7b   : > { %7385 = vmatpush3.bf16.msra.mxu1 %v8187_v1  ;;  %v4669_v1 = vpack.c.bf16 %v9821_v14, %v9821_v14  ;;  %v8244_v14 = vld [vmem:[#allocation28 + $0x588] sm:$0xff]  }
0x1c7c   : > { %7407 = vmatpush3.bf16.msra.mxu0 %v8188_v2  ;;  %7386 = vmatprep.subr.bf16.mxu1 %v8189_v7  ;;  %v8240_v2 = vld [vmem:[#allocation28 + $0x580] sm:$0xff]   ;;  %v4671_v7 = vpack.c.bf16 %v9825_v9, %v9825_v9  ;;  %v8246_v9 = vld [vmem:[#allocation28 + $0x5d0] sm:$0xff]  }
0x1c7d   : > { %7408 = vmatprep.subr.bf16.mxu0 %v8190_v26  ;;  %v8241_v26 = vld [vmem:[#allocation28 + $0x548] sm:$0xff]  }
0x1c7f   : > { %7387 = vmatpush3.bf16.msra.mxu1 %v8191_v5  ;;  %v4674_v5 = vpack.c.bf16 %v9886_v12, %v9886_v12  ;;  %v8248_v12 = vld [vmem:[#allocation28 + $0x590] sm:$0xff]  }
0x1c80   : > { %7409 = vmatpush3.bf16.msra.mxu0 %v8192_v8  ;;  %7388 = vmatprep.subr.bf16.mxu1 %v8193_v10  ;;  %v8242_v8 = vld [vmem:[#allocation28 + $0x5c8] sm:$0xff]   ;;  %v4676_v10 = vpack.c.bf16 %v9892_v6, %v9892_v6  ;;  %v8252_v6 = vld [vmem:[#allocation28 + $0x598] sm:$0xff]  }
0x1c81   : > { %7410 = vmatprep.subr.bf16.mxu0 %v8194_v56  ;;  %v8243_v56 = vld [vmem:[#allocation28 + $0x508] sm:$0xff]  }
0x1c83   : > { %7389 = vmatpush3.bf16.msra.mxu1 %v8195_v43  ;;  %v8245_v43 = vld [vmem:[#allocation28 + $0x550] sm:$0xff]  }
0x1c84   : > { %7411 = vmatpush3.bf16.msra.mxu0 %v8196_v33  ;;  %7390 = vmatprep.subr.bf16.mxu1 %v8197_v44  ;;  %v8247_v33 = vld [vmem:[#allocation28 + $0x510] sm:$0xff]   ;;  %v8249_v44 = vld [vmem:[#allocation28 + $0x558] sm:$0xff]  }
0x1c85   : > { %7412 = vmatprep.subr.bf16.mxu0 %v8198_v13  ;;  %v8250_v13 = vld [vmem:[#allocation28 + $0x5d8] sm:$0xff]  }
0x1c87   : > { %7391 = vmatpush3.bf16.msra.mxu1 %v8199_v15  ;;  %v8251_v15 = vld [vmem:[#allocation28 + $0x518] sm:$0xff]  }
0x1c88   : > { %7413 = vmatpush3.bf16.msra.mxu0 %v8200_v25  ;;  %7392 = vmatprep.subr.bf16.mxu1 %v8201_v3  ;;  %v8253_v25 = vld [vmem:[#allocation28 + $0x560] sm:$0xff]  }
0x1c89   : > { %7414 = vmatprep.subr.bf16.mxu0 %v8202_v17  ;;  %v8254_v3 = vld [vmem:[#allocation28 + $0x5e0] sm:$0xff]  }
0x1c8a   : > { %v8255_v17 = vld [vmem:[#allocation28 + $0x520] sm:$0xff]  }
0x1c8b   : > { %7393 = vmatpush3.bf16.msra.mxu1 %v8203_v18  ;;  %v8256_v18 = vld [vmem:[#allocation28 + $0x5a0] sm:$0xff]  }
0x1c8c   : > { %7415 = vmatpush3.bf16.msra.mxu0 %v8204_v45  ;;  %7422 = vmatprep.subr.bf16.mxu1 %v8205_v19  ;;  %v8257_v45 = vld [vmem:[#allocation28 + $0x568] sm:$0xff]  }
0x1c8d   : > { %7444 = vmatprep.subr.bf16.mxu0 %v8206_v20  ;;  %v8258_v19 = vld [vmem:[#allocation28 + $0x5e8] sm:$0xff]  }
0x1c8e   : > { %6103 = vmatmul.mubr.bf16.vlgmr.msra.gmra.mrb[72].mxu1 %v4665_v23  ;;  %v8259_v20 = vld [vmem:[#allocation28 + $0x528] sm:$0xff]   ;;  %v8261_v23 = vld [vmem:[#allocation28 + $0x570] sm:$0xff]  }
0x1c8f   : > { %6143 = vmatmul.mubr.bf16.vlgmr.msra.gmra.mrb[52].mxu0 %v4667_v27  ;;  %7423 = vmatpush3.bf16.msra.mxu1 %v8207_v21  ;;  %v8260_v21 = vld [vmem:[#allocation28 + $0x5a8] sm:$0xff]   ;;  %v8263_v27 = vld [vmem:[#allocation28 + $0x530] sm:$0xff]  }
0x1c90   : > { %6182 = vmatprep.mubr.bf16.mxu1 %v4670_v29  ;;  %7445 = vmatpush3.bf16.msra.mxu0 %v8208_v24  ;;  %v8262_v24 = vld [vmem:[#allocation28 + $0x5f0] sm:$0xff]   ;;  %v8265_v29 = vld [vmem:[#allocation28 + $0x578] sm:$0xff]  }
0x1c91   : > { %6222 = vmatprep.mubr.bf16.mxu0 %v4672_v59  ;;  %7424 = vmatprep.subr.bf16.mxu1 %v8209_v28  ;;  %v8264_v28 = vld [vmem:[#allocation28 + $0x5b0] sm:$0xff]   ;;  %v8267_v59 = vld [vmem:[#allocation28 + $0x538] sm:$0xff]  }
0x1c92   : > { %7446 = vmatprep.subr.bf16.mxu0 %v8210_v35  ;;  %v8266_v35 = vld [vmem:[#allocation28 + $0x5f8] sm:$0xff]  }
0x1c93   : > { %7425 = vmatpush3.bf16.msra.mxu1 %v8211_v40  ;;  %v8268_v40 = vld [vmem:[#allocation28 + $0x5b8] sm:$0xff]  }
0x1c94   : > { %7447 = vmatpush3.bf16.msra.mxu0 %v8212_v37  ;;  %7426 = vmatprep.subr.bf16.mxu1 %v8213_v36  ;;  %v4673_v37 = vpack.c.bf16 %v9872_v38, %v9872_v38  ;;  %v4675_v36 = vpack.c.bf16 %v9876_v4, %v9876_v4 }
0x1c95   : > { %7448 = vmatprep.subr.bf16.mxu0 %v8214_v50 }
0x1c97   : > { %7427 = vmatpush3.bf16.msra.mxu1 %v8215_v47 }
0x1c98   : > { %7449 = vmatpush3.bf16.msra.mxu0 %v8216_v30  ;;  %7428 = vmatprep.subr.bf16.mxu1 %v8217_v39  ;;  %v4677_v30 = vld [vmem:[%s10095_s27] sm:$0x1]  ;;  %s8785_s27 = sshll.u32 %s8913_s11, 4  ;;  %s8786_s27 = int_to_ptr.vmem [resolvable:$false] %s8785_s27 }
0x1c99   : > { %7450 = vmatprep.subr.bf16.mxu0 %v8218_v41  ;;  %s8787_s6 = scalar_lea.vmem %s8786_s27, 256  ;;  %p8788_p13 = scmp.lt.s32.totalorder %s9935_s25, %s8786_s27 }
0x1c9a   : > { %p8789_p5 = scmp.lt.s32.totalorder %s8787_s6, %s8781_s23 }
0x1c9b   : > { %7429 = vmatpush3.bf16.msra.mxu1 %v8219_v32 }
0x1c9c   : > { %7451 = vmatpush3.bf16.msra.mxu0 %v8220_v31  ;;  %7430 = vmatprep.subr.bf16.mxu1 %v8221_v46  ;;  %p8790_p7 = por %p8789_p5, %p8788_p13 }
0x1c9d   : > { %7452 = vmatprep.subr.bf16.mxu0 %v8222_v48 }
0x1c9e   : > { %p8791_p4 = pnand %p8790_p7, %p8784_p11 }
0x1c9f   : > { %7431 = vmatpush3.bf16.msra.mxu1 %v8223_v49 }
0x1ca0   : > { %7453 = vmatpush3.bf16.msra.mxu0 %v8224_v51  ;;  %7432 = vmatprep.subr.bf16.mxu1 %v8225_v42 }
0x1ca1   : > { %7454 = vmatprep.subr.bf16.mxu0 %v8226_v11 }
0x1ca3   : > { %7433 = vmatpush3.bf16.msra.mxu1 %v8227_v22 }
0x1ca4   : > { %7455 = vmatpush3.bf16.msra.mxu0 %v8228_v0  ;;  %7434 = vmatprep.subr.bf16.mxu1 %v8229_v52 }
0x1ca5   : > { %7456 = vmatprep.subr.bf16.mxu0 %v8230_v53 }
0x1ca7   : > { %7435 = vmatpush3.bf16.msra.mxu1 %v8231_v34 }
0x1ca8   : > { %7457 = vmatpush3.bf16.msra.mxu0 %v8232_v54  ;;  %7436 = vmatprep.subr.bf16.mxu1 %v8233_v57 }
0x1ca9   : > { %7458 = vmatprep.subr.bf16.mxu0 %v8234_v55 }
0x1cab   : > { %7437 = vmatpush3.bf16.msra.mxu1 %v8235_v58 }
0x1cac   : > { %7459 = vmatpush3.bf16.msra.mxu0 %v8236_v60  ;;  %7466 = vmatprep.subr.bf16.mxu1 %v8237_v16 }
0x1cad   : > { %7488 = vmatprep.subr.bf16.mxu0 %v8238_v62 }
0x1cae   : > { %6183 = vmatmul.mubr.bf16.vlgmr.msra.gmra.mrb[76].mxu1 %v4669_v1 }
0x1caf   : > { %6223 = vmatmul.mubr.bf16.vlgmr.msra.gmra.mrb[56].mxu0 %v4671_v7  ;;  %7467 = vmatpush3.bf16.msra.mxu1 %v8239_v63 }
0x1cb0   : > { %6262 = vmatprep.mubr.bf16.mxu1 %v4674_v5  ;;  %7489 = vmatpush3.bf16.msra.mxu0 %v8240_v2 }
0x1cb1   : > { %6302 = vmatprep.mubr.bf16.mxu0 %v4676_v10  ;;  %7468 = vmatprep.subr.bf16.mxu1 %v8241_v26 }
0x1cb2   : > { %7490 = vmatprep.subr.bf16.mxu0 %v8242_v8 }
0x1cb3   : > { %7469 = vmatpush3.bf16.msra.mxu1 %v8243_v56 }
0x1cb4   : > { %7491 = vmatpush3.bf16.msra.mxu0 %v8244_v14  ;;  %7470 = vmatprep.subr.bf16.mxu1 %v8245_v43 }
0x1cb5   : > { %7492 = vmatprep.subr.bf16.mxu0 %v8246_v9 }
0x1cb7   : > { %7471 = vmatpush3.bf16.msra.mxu1 %v8247_v33 }
0x1cb8   : > { %7493 = vmatpush3.bf16.msra.mxu0 %v8248_v12  ;;  %7472 = vmatprep.subr.bf16.mxu1 %v8249_v44 }
0x1cb9   : > { %7494 = vmatprep.subr.bf16.mxu0 %v8250_v13 }
0x1cbb   : > { %7473 = vmatpush3.bf16.msra.mxu1 %v8251_v15 }
0x1cbc   : > { %7495 = vmatpush3.bf16.msra.mxu0 %v8252_v6  ;;  %7474 = vmatprep.subr.bf16.mxu1 %v8253_v25 }
0x1cbd   : > { %7496 = vmatprep.subr.bf16.mxu0 %v8254_v3 }
0x1cbf   : > { %7475 = vmatpush3.bf16.msra.mxu1 %v8255_v17 }
0x1cc0   : > { %7497 = vmatpush3.bf16.msra.mxu0 %v8256_v18  ;;  %7476 = vmatprep.subr.bf16.mxu1 %v8257_v45 }
0x1cc1   : > { %7498 = vmatprep.subr.bf16.mxu0 %v8258_v19 }
0x1cc3   : > { %7477 = vmatpush3.bf16.msra.mxu1 %v8259_v20 }
0x1cc4   : > { %7499 = vmatpush3.bf16.msra.mxu0 %v8260_v21  ;;  %7478 = vmatprep.subr.bf16.mxu1 %v8261_v23 }
0x1cc5   : > { %7500 = vmatprep.subr.bf16.mxu0 %v8262_v24 }
0x1cc7   : > { %7479 = vmatpush3.bf16.msra.mxu1 %v8263_v27 }
0x1cc8   : > { %7501 = vmatpush3.bf16.msra.mxu0 %v8264_v28  ;;  %7480 = vmatprep.subr.bf16.mxu1 %v8265_v29 }
0x1cc9   : > { %7502 = vmatprep.subr.bf16.mxu0 %v8266_v35 }
0x1ccb   : > { %7481 = vmatpush3.bf16.msra.mxu1 %v8267_v59 }
0x1ccc   : > { %7503 = vmatpush3.bf16.msra.mxu0 %v8268_v40 }
0x1cce   : > { %6263 = vmatmul.mubr.bf16.vlgmr.msra.gmra.mrb[80].mxu1 %v4673_v37 }
0x1ccf   : > { %6303 = vmatmul.mubr.bf16.vlgmr.msra.gmra.mrb[60].mxu0 %v4675_v36 }
0x1d01   : > { %v7262_v50 = vpop.f32.mrb[60].mxu1  ;;  %v7284_v47 = vpop.f32.mrb[40].mxu0 }
0x1d02   : > { %v7263_v39 = vpop.f32.mrb[61].mxu1  ;;  %v7285_v41 = vpop.f32.mrb[41].mxu0 }
0x1d03   : > { %v7264_v32 = vadd.f32 %v7263_v39, %v7262_v50  ;;  %v7286_v31 = vadd.f32 %v7285_v41, %v7284_v47  ;;  %v7265_v46 = vpop.f32.mrb[62].mxu1  ;;  %v7287_v48 = vpop.f32.mrb[42].mxu0 }
0x1d04   : > { %v7266_v49 = vpop.f32.mrb[63].mxu1  ;;  %v7288_v38 = vpop.f32.mrb[43].mxu0 }
0x1d05   : > { %v5865_v51 = vadd.f32 %v7264_v32, %v4677_v30 }
0x1d07   : > { %v5905_v42 = vadd.f32 %v7286_v31, %v5865_v51 }
0x1d21   : > { %v7306_v11 = vpop.f32.mrb[64].mxu1  ;;  %v7328_v4 = vpop.f32.mrb[44].mxu0 }
0x1d22   : > { %v7307_v22 = vpop.f32.mrb[65].mxu1  ;;  %v7329_v52 = vpop.f32.mrb[45].mxu0 }
0x1d23   : > { %v7308_v0 = vadd.f32 %v7307_v22, %v7306_v11  ;;  %v7309_v53 = vpop.f32.mrb[66].mxu1  ;;  %v7330_v34 = vadd.f32 %v7329_v52, %v7328_v4  ;;  %v7331_v54 = vpop.f32.mrb[46].mxu0 }
0x1d24   : > { %v7310_v57 = vpop.f32.mrb[67].mxu1  ;;  %v7332_v58 = vpop.f32.mrb[47].mxu0 }
0x1d25   : > { %v5945_v55 = vadd.f32 %v7308_v0, %v5905_v42 }
0x1d27   : > { %v5985_v60 = vadd.f32 %v7330_v34, %v5945_v55 }
0x1d41   : > { %v7350_v16 = vpop.f32.mrb[68].mxu1 }
0x1d42   : > { %v7372_v62 = vpop.f32.mrb[48].mxu0  ;;  %v7351_v63 = vpop.f32.mrb[69].mxu1 }
0x1d43   : > { %v7352_v1 = vadd.f32 %v7351_v63, %v7350_v16  ;;  %v7373_v2 = vpop.f32.mrb[49].mxu0  ;;  %v7353_v7 = vpop.f32.mrb[70].mxu1 }
0x1d44   : > { %v7374_v26 = vadd.f32 %v7373_v2, %v7372_v62  ;;  %v7375_v5 = vpop.f32.mrb[50].mxu0  ;;  %v7354_v8 = vpop.f32.mrb[71].mxu1 }
0x1d45   : > { %v6025_v10 = vadd.f32 %v7352_v1, %v5985_v60  ;;  %v7376_v56 = vpop.f32.mrb[51].mxu0 }
0x1d47   : > { %v6065_v14 = vadd.f32 %v7374_v26, %v6025_v10 }
0x1d61   : > { %v7394_v43 = vpop.f32.mrb[72].mxu1 }
0x1d62   : > { %v7416_v9 = vpop.f32.mrb[52].mxu0  ;;  %v7395_v33 = vpop.f32.mrb[73].mxu1 }
0x1d63   : > { %v7396_v12 = vadd.f32 %v7395_v33, %v7394_v43  ;;  %v7417_v44 = vpop.f32.mrb[53].mxu0  ;;  %v7397_v13 = vpop.f32.mrb[74].mxu1 }
0x1d64   : > { %v7418_v15 = vadd.f32 %v7417_v44, %v7416_v9  ;;  %v7419_v6 = vpop.f32.mrb[54].mxu0  ;;  %v7398_v25 = vpop.f32.mrb[75].mxu1 }
0x1d65   : > { %v6105_v3 = vadd.f32 %v7396_v12, %v6065_v14  ;;  %v7420_v17 = vpop.f32.mrb[55].mxu0 }
0x1d67   : > { %v6145_v18 = vadd.f32 %v7418_v15, %v6105_v3 }
0x1d81   : > { %v7438_v45 = vpop.f32.mrb[76].mxu1 }
0x1d82   : > { %v7460_v19 = vpop.f32.mrb[56].mxu0  ;;  %v7439_v20 = vpop.f32.mrb[77].mxu1 }
0x1d83   : > { %v7440_v21 = vadd.f32 %v7439_v20, %v7438_v45  ;;  %v7461_v23 = vpop.f32.mrb[57].mxu0  ;;  %v7441_v24 = vpop.f32.mrb[78].mxu1 }
0x1d84   : > { %v7462_v27 = vadd.f32 %v7461_v23, %v7460_v19  ;;  %v7463_v28 = vpop.f32.mrb[58].mxu0  ;;  %v7442_v29 = vpop.f32.mrb[79].mxu1 }
0x1d85   : > { %v6185_v35 = vadd.f32 %v7440_v21, %v6145_v18  ;;  %v7464_v59 = vpop.f32.mrb[59].mxu0 }
0x1d87   : > { %v6225_v40 = vadd.f32 %v7462_v27, %v6185_v35 }
0x1da1   : > { %v7482_v37 = vpop.f32.mrb[80].mxu1 }
0x1da2   : > { %v7504_v36 = vpop.f32.mrb[60].mxu0  ;;  %v7483_v50 = vpop.f32.mrb[81].mxu1 }
0x1da3   : > { %v7484_v47 = vadd.f32 %v7483_v50, %v7482_v37  ;;  %v7505_v30 = vpop.f32.mrb[61].mxu0  ;;  %v7485_v39 = vpop.f32.mrb[82].mxu1 }
0x1da4   : > { %v7506_v41 = vadd.f32 %v7505_v30, %v7504_v36  ;;  %v7507_v32 = vpop.f32.mrb[62].mxu0  ;;  %v7486_v31 = vpop.f32.mrb[83].mxu1 }
0x1da5   : > { %v6265_v46 = vadd.f32 %v7484_v47, %v6225_v40  ;;  %v7508_v48 = vpop.f32.mrb[63].mxu0 }
0x1da7   : > { %v6305_v49 = vadd.f32 %v7506_v41, %v6265_v46 }
0x1da9   : > { %v6313_v38 = vrot.slane %v6305_v49, %v9566_v61 }
0x1dab   : > { %6314 = vst [vmem:[%s940_s0] sm:$0xff] %v6313_v38 }
0x1dac   : > { %8794 = shalt.err (!%p8791_p4)
}
0x1dad   : > { %s8795_s22 = scalar_lea.hbm %s9933_s28, 128  ;;  %s8799_s24 = scalar_lea.hbm %s10096_s1, 256 }
0x1dae   : > { %p8796_p1 = scmp.ne.s32.totalorder %s9933_s28, %s8795_s22  ;;  %p8800_p6 = scmp.lt.u32.totalorder %s9933_s28, %s10096_s1 }
0x1daf   : > { %p8801_p0 = scmp.lt.u32.totalorder %s8799_s24, %s8795_s22  ;;  %p8803_p8 = scmp.lt.u32.totalorder %s8795_s22, %s9933_s28 }
0x1db0   : > { %p8797_p3 = pnand %p8796_p1, %p10097_p10 }
0x1db1   : > { %p8802_p2 = por %p8801_p0, %p8800_p6 }
0x1db2   : > { %p8798_p9 = pneg %p8797_p3 }
0x1db3   : > { %p8804_p12 = por %p8803_p8, %p8802_p2 }
0x1db5   : > { %p8805_p11 = pnand %p8804_p12, %p8798_p9 }
0x1db7   : > { %8808 = shalt.err (!%p8805_p11)
}
0x1db8   : > { %7707 = dma.vmem_to_hbm [thread:$0]  (%p10097_p10), %s9935_s25, 128, %s9933_s28, %s6316_s3  }
0x1db9 PF: > { %s10098_s23 = sld [smem:[#allocation40_spill]]  ;;  %p10099_p13 = scmp.ne.s32.totalorder %s10069_s29, 0 }
0x1dba   : > { %p10100_p5 = scmp.ge.s32.totalorder %s8879_s30, 2 }
0x1dbc   : > { %p7763_p7 = pnand %p10100_p5, %p10099_p13 }
0x1dbf   : > { %s6341_s27 = sand.u32 1, %s10098_s23  }
0x1dc0   : > { %s6342_s6 = scalar_lea.sflag [#allocation4], %s6341_s27 }
0x1dc1   : > { %8862 = dma.done.wait (!%p7763_p7), %s6342_s6, 128  }
0x1dc2   : > { %8864 = vsyncadd (!%p7763_p7), %s6342_s6, 4294967168  ;;  %s10101_s3 = sld [smem:[#allocation41_spill]]  ;;  %s10102_s28 = sld [smem:[#allocation42_spill]] }
0x1dc3   : > { %p43_p4 = scmp.ge.s32.totalorder %s9408_s4, 4   ;;  %s10103_s29 = smov %s9420_s15 }
0x1dc4   : > { %s10104_s30 = smov %s9408_s4 }
0x1dc5   :  { %45 = sbr.rel (!%p43_p4) target bundleno = 28 (0x1c), region = 232 }
0x1dcc   :  { %6347 = vsyncpa [#allocation3], 1 }
0x1dcd   :  { %6349 = vsyncpa [#allocation3 + $0x1], 1 }
0x1dce   :  { %6350 = vsyncpa [#allocation6], 1 }
0x1dcf   :  { %6351 = vsyncpa [#allocation9], 1 }
0x1dd0   :  { %6352 = vsyncpa [#allocation12], 1 }
0x1dd1   :  { %6353 = vsyncpa [#allocation15], 1 }
0x1dd2   :  { %6354 = vsyncpa [#allocation18], 1 }
0x1dd3   :  { %6355 = vsyncpa [#allocation21], 1 }
0x1dd4   :  { %6356 = vsyncpa [#allocation24], 1 }
0x1dd5   :  { %6357 = vsyncpa [#allocation27], 1 }
0x1dd6   :  { %6358 = vsyncpa [#allocation4], 1 }
0x1dd7   :  { %6360 = vsyncpa [#allocation4 + $0x1], 1 }

</bundles_post_ra>
